<compile_context>
chip_gen: v7x
topology: tpu7x:2x2x1
jax: 0.10.0
libtpu: 0.0.40
codegen_flags: <defaults>
</compile_context>

<pallas_src>
import functools
import math

import jax
import jax.numpy as jnp
from jax import lax
from jax.experimental import pallas as pl
from jax.experimental.pallas import tpu as pltpu

_KPAD = 128     # conv1 contraction dim (C*25) zero-padded to one lane tile
_NPAD = 128     # Q-output lanes padded to one lane tile (lane-dense stores)


def _round_up(x, m):
    return (x + m - 1) // m * m


# ---------------------------------------------------------------------------
# Fused forward kernel (one batch tile per grid step)
# ---------------------------------------------------------------------------
def _dqn_fused_kernel(p_ref, w1_ref, b1_ref, w2_ref, b2_ref,
                      wh_ref, bh_ref, wq_ref, bq_ref,
                      q_ref, h1_ref, h1g_ref, feat_ref,
                      *, tb, n_sp, n_kp):
    R = tb * n_sp                         # conv2 output rows in this batch tile

    # --- conv1: ONE matmul over all (kernel-pos, spatial, batch) rows --------
    h1 = jnp.dot(p_ref[...], w1_ref[...], preferred_element_type=jnp.float32)
    h1_ref[...] = jnp.maximum(h1 + b1_ref[...], 0.0)          # (25*R, 32) f32

    # Regroup the 25 conv2-kernel positions from sublane blocks into lane
    # blocks so conv2 is also a single matmul.  All slices are static and
    # sublane-aligned (R is a multiple of 8).
    for k in range(n_kp):
        h1g_ref[:, k * 32:(k + 1) * 32] = h1_ref[k * R:(k + 1) * R, :]

    # --- conv2: ONE matmul (R, 800) @ (800, 64) -------------------------------
    h2 = jnp.dot(h1g_ref[...].astype(jnp.bfloat16), w2_ref[...],
                 preferred_element_type=jnp.float32)
    h2 = jnp.maximum(h2 + b2_ref[...], 0.0)                    # (R, 64) f32

    # Regroup the 9 conv2 spatial positions into per-sample feature rows;
    # PyTorch's channel-major .view(-1, 576) is absorbed into wh's row order.
    for s in range(n_sp):
        feat_ref[:, s * 64:(s + 1) * 64] = h2[s * tb:(s + 1) * tb, :]

    # --- fc_h_v / fc_h_a merged along N: (tb, 576) @ (576, 2H) ----------------
    h = jnp.dot(feat_ref[...].astype(jnp.bfloat16), wh_ref[...],
                preferred_element_type=jnp.float32)
    h = jnp.maximum(h + bh_ref[...], 0.0).astype(jnp.bfloat16)   # (tb, 2H)

    # --- fc_z_v / fc_z_a and the dueling "- mean(a)" are folded into wq/bq ----
    q_ref[...] = jnp.dot(h, wq_ref[...],
                         preferred_element_type=jnp.float32) + bq_ref[...]


# ---------------------------------------------------------------------------
# Wrapper
# ---------------------------------------------------------------------------
@functools.partial(jax.jit, static_argnames=("action_space",))
def dqn_forward(x_nchw, kp, action_space):
    """x: (B, C, H, W) float32 -> Q values (B, action_space) float32."""
    B, C, H, W = x_nchw.shape
    OH1 = (H - 5) // 5 + 1
    OW1 = (W - 5) // 5 + 1
    OH2 = (OH1 - 5) // 5 + 1
    OW2 = (OW1 - 5) // 5 + 1
    n_sp = OH2 * OW2
    n_kp = 25
    assert C * 25 <= _KPAD, "history_length too large for the padded K tile"
    assert n_sp * 64 == kp["wh"].shape[0], "weights built for a different geometry"
    assert action_space <= _NPAD

    # Batch tile: multiple of 8 (sublane alignment), capped so double-buffered
    # patches + scratch stay well inside every generation's scoped VMEM.
    tb = min(64, _round_up(B, 8))
    Bp = _round_up(B, tb)
    nbt = Bp // tb
    R = tb * n_sp
    rows_per_tile = n_kp * R

    # Non-overlapping im2col (k=5, s=5, no padding) as pure layout ops, rows
    # ordered (tile | kh2,kw2 | oh2,ow2 | b) so each grid step reads one
    # contiguous batch tile.  Conv1 positions never used by conv2 are dropped.
    # TODO(synk): at training-scale batches fold this relayout into the kernel
    #             via memory_space=pl.ANY + per-grid-step DMA of x.
    x = x_nchw.astype(jnp.bfloat16)
    if Bp > B:
        x = jnp.pad(x, ((0, Bp - B), (0, 0), (0, 0), (0, 0)))
    x = x[:, :, :OH2 * 25, :OW2 * 25]
    x = x.reshape(nbt, tb, C, OH2, 5, 5, OW2, 5, 5)       # t b c oh2 kh2 kh1 ow2 kw2 kw1
    x = jnp.transpose(x, (0, 4, 7, 3, 6, 1, 2, 5, 8))     # t kh2 kw2 oh2 ow2 b c kh1 kw1
    patches = x.reshape(nbt * rows_per_tile, C * 25)
    patches = jnp.pad(patches, ((0, 0), (0, _KPAD - C * 25)))   # lane-dense K

    weights = (kp["w1"], kp["b1"], kp["w2"], kp["b2"],
               kp["wh"], kp["bh"], kp["wq"], kp["bq"])

    hid2 = kp["bh"].shape[1]
    flops = 2 * nbt * (rows_per_tile * _KPAD * 32
                       + R * (n_kp * 32) * 64
                       + tb * (n_sp * 64) * hid2
                       + tb * hid2 * _NPAD)
    weight_bytes = sum(int(a.size) * a.dtype.itemsize for a in weights)
    bytes_accessed = (int(patches.size) * 2 + weight_bytes + Bp * _NPAD * 4)

    # Explicit scoped-VMEM budget: main buffers (double-buffered patch/out
    # tiles, weights, scratch with lane padding) plus headroom, clamped to a
    # range that is safe on v5e/v6e (128 MiB) and v7x (64 MiB).
    vmem_est = (2 * rows_per_tile * _KPAD * 2
                + 2 * tb * _NPAD * 4
                + 2 * weight_bytes
                + (n_kp * R * 128 + R * _round_up(n_kp * 32, 128)
                   + tb * _round_up(n_sp * 64, 128)) * 4)
    vmem_limit = int(min(max(1.5 * vmem_est + (4 << 20), 16 << 20), 40 << 20))

    kernel = functools.partial(_dqn_fused_kernel, tb=tb, n_sp=n_sp, n_kp=n_kp)
    q_pad = pl.pallas_call(
        kernel,
        out_shape=jax.ShapeDtypeStruct((Bp, _NPAD), jnp.float32),
        grid_spec=pltpu.PrefetchScalarGridSpec(
            num_scalar_prefetch=0,
            grid=(nbt,),
            in_specs=[pl.BlockSpec((rows_per_tile, _KPAD), lambda i: (i, 0))]
                     + [pl.BlockSpec(w.shape, lambda i: (0, 0)) for w in weights],
            out_specs=pl.BlockSpec((tb, _NPAD), lambda i: (i, 0)),
            scratch_shapes=[pltpu.VMEM((n_kp * R, 32), jnp.float32),
                            pltpu.VMEM((R, n_kp * 32), jnp.float32),
                            pltpu.VMEM((tb, n_sp * 64), jnp.float32)]),
        compiler_params=pltpu.CompilerParams(
            dimension_semantics=("parallel",),
            vmem_limit_bytes=vmem_limit),
        cost_estimate=pl.CostEstimate(flops=flops, transcendentals=0,
                                      bytes_accessed=bytes_accessed),
    )(patches, *weights)
    return q_pad[:B, :action_space]


# ---------------------------------------------------------------------------
# Parameter construction (torch-layout effective weights + kernel layouts)
# ---------------------------------------------------------------------------
def _scale_noise(x):
    return jnp.sign(x) * jnp.sqrt(jnp.abs(x))


def _make_noisy_linear(key, in_f, out_f, std_init=0.5):
    """Training-mode effective weight (out_f, in_f) and bias (out_f,)."""
    k1, k2, k3, k4 = jax.random.split(key, 4)
    mu_range = 1.0 / math.sqrt(in_f)
    w_mu = jax.random.uniform(k1, (out_f, in_f), jnp.float32, -mu_range, mu_range)
    w_sigma = jnp.full((out_f, in_f), std_init / math.sqrt(in_f), jnp.float32)
    b_mu = jax.random.uniform(k2, (out_f,), jnp.float32, -mu_range, mu_range)
    b_sigma = jnp.full((out_f,), std_init / math.sqrt(out_f), jnp.float32)
    eps_in = _scale_noise(jax.random.normal(k3, (in_f,), jnp.float32))
    eps_out = _scale_noise(jax.random.normal(k4, (out_f,), jnp.float32))
    w_eff = w_mu + w_sigma * jnp.outer(eps_out, eps_in)
    b_eff = b_mu + b_sigma * eps_out
    return w_eff, b_eff


def make_params(key, history_length, hidden_size, action_space, noisy_std):
    ks = jax.random.split(key, 6)
    C, H2, A = history_length, hidden_size, action_space
    conv_output_size = 576                    # data-efficient architecture
    n_sp = conv_output_size // 64             # 3*3 conv2 spatial positions

    # torch-layout parameters (also used by the pure-JAX reference)
    w1 = 0.05 * jax.random.normal(ks[0], (32, C, 5, 5), jnp.float32)
    b1 = jnp.zeros((32,), jnp.float32)
    w2 = 0.05 * jax.random.normal(ks[1], (64, 32, 5, 5), jnp.float32)
    b2 = jnp.zeros((64,), jnp.float32)
    whv, bhv = _make_noisy_linear(ks[2], conv_output_size, H2, noisy_std)
    wha, bha = _make_noisy_linear(ks[3], conv_output_size, H2, noisy_std)
    wzv, bzv = _make_noisy_linear(ks[4], H2, 1, noisy_std)
    wza, bza = _make_noisy_linear(ks[5], H2, A, noisy_std)

    ref_p = dict(w1=w1, b1=b1, w2=w2, b2=b2, whv=whv, bhv=bhv, wha=wha,
                 bha=bha, wzv=wzv, bzv=bzv, wza=wza, bza=bza)

    # ---- kernel-layout parameters (all permutations / padding done once) ----
    kp = {}
    w1_flat = w1.reshape(32, C * 25).T                                     # (C*25, 32)
    kp["w1"] = jnp.pad(w1_flat, ((0, _KPAD - C * 25), (0, 0))).astype(jnp.bfloat16)
    kp["b1"] = b1.reshape(1, 32)
    # conv2 weight rows ordered (kh2, kw2, in-channel) to match h1g lanes
    kp["w2"] = jnp.transpose(w2, (2, 3, 1, 0)).reshape(25 * 32, 64).astype(jnp.bfloat16)
    kp["b2"] = b2.reshape(1, 64)
    # fc_h_v / fc_h_a merged along N; torch's channel-major flatten is folded
    # into the (spatial-major, channel-minor) row order of wh.
    wh_cat = jnp.concatenate([whv, wha], axis=0)                           # (2H, 576)
    kp["wh"] = jnp.transpose(wh_cat.reshape(2 * H2, 64, n_sp),
                             (2, 1, 0)).reshape(n_sp * 64, 2 * H2).astype(jnp.bfloat16)
    kp["bh"] = jnp.concatenate([bhv, bha]).reshape(1, 2 * H2)
    # fc_z_v / fc_z_a + dueling combine folded into one lane-dense matmul:
    #   q_j = hv.wzv + ha.(wza_j - mean_k wza_k) + (bzv + bza_j - mean(bza))
    wza_c = wza - jnp.mean(wza, axis=0, keepdims=True)
    bza_c = bza - jnp.mean(bza)
    wq = jnp.zeros((2 * H2, _NPAD), jnp.float32)
    wq = wq.at[:H2, :A].set(jnp.broadcast_to(wzv.T, (H2, A)))
    wq = wq.at[H2:, :A].set(wza_c.T)
    kp["wq"] = wq.astype(jnp.bfloat16)
    bq = jnp.zeros((1, _NPAD), jnp.float32)
    bq = bq.at[0, :A].set(bzv[0] + bza_c)
    kp["bq"] = bq
    return kp, ref_p


# ---------------------------------------------------------------------------
# Pure-JAX reference (mirrors the PyTorch forward exactly, f32)
# ---------------------------------------------------------------------------
def _reference_forward(x, p):
    dn = ("NCHW", "OIHW", "NCHW")
    y = lax.conv_general_dilated(x, p["w1"], window_strides=(5, 5),
                                 padding="VALID", dimension_numbers=dn)
    y = jnp.maximum(y + p["b1"][None, :, None, None], 0.0)
    y = lax.conv_general_dilated(y, p["w2"], window_strides=(5, 5),
                                 padding="VALID", dimension_numbers=dn)
    y = jnp.maximum(y + p["b2"][None, :, None, None], 0.0)
    feat = y.reshape(y.shape[0], -1)                      # channel-major .view(-1, 576)
    hv = jnp.maximum(feat @ p["whv"].T + p["bhv"], 0.0)
    ha = jnp.maximum(feat @ p["wha"].T + p["bha"], 0.0)
    v = hv @ p["wzv"].T + p["bzv"]                        # (B, 1)
    a = ha @ p["wza"].T + p["bza"]                        # (B, A)
    return v + a - jnp.mean(a, axis=1, keepdims=True)


# ---------------------------------------------------------------------------
if __name__ == "__main__":
    key = jax.random.PRNGKey(0)
    k_param, k_input = jax.random.split(key)

    batch = 2
    history_length = 4
    hidden_size = 32
    action_space = 6
    noisy_std = 0.5
    H = W = 84   # data-efficient arch: 84 ->(5,5)-> 16 ->(5,5)-> 3 ; 64*3*3 = 576

    kp, ref_p = make_params(k_param, history_length, hidden_size,
                            action_space, noisy_std)
    x = jax.random.uniform(k_input, (batch, history_length, H, W), jnp.float32)

    q = dqn_forward(x, kp, action_space)
    q = jax.block_until_ready(q)

    assert q.shape == (batch, action_space), q.shape
    assert bool(jnp.all(jnp.isfinite(q)))

    q_ref = _reference_forward(x, ref_p)
    err = float(jnp.max(jnp.abs(q - q_ref)))
    assert err < 3e-2, f"max abs error vs reference: {err}"

    print("KERNEL_OK")
</pallas_src>

<mosaic_0001>
module attributes {stable_mosaic.version = 11 : i64} {
  func.func @_dqn_fused_kernel(%arg0: i32, %arg1: memref<1800x128xbf16, #tpu.memory_space<vmem>>, %arg2: memref<128x32xbf16, #tpu.memory_space<vmem>>, %arg3: memref<1x32xf32, #tpu.memory_space<vmem>>, %arg4: memref<800x64xbf16, #tpu.memory_space<vmem>>, %arg5: memref<1x64xf32, #tpu.memory_space<vmem>>, %arg6: memref<576x64xbf16, #tpu.memory_space<vmem>>, %arg7: memref<1x64xf32, #tpu.memory_space<vmem>>, %arg8: memref<64x128xbf16, #tpu.memory_space<vmem>>, %arg9: memref<1x128xf32, #tpu.memory_space<vmem>>, %arg10: memref<8x128xf32, #tpu.memory_space<vmem>>, %arg11: memref<1800x32xf32, #tpu.memory_space<vmem>>, %arg12: memref<72x800xf32, #tpu.memory_space<vmem>>, %arg13: memref<8x576xf32, #tpu.memory_space<vmem>>) attributes {dimension_semantics = [#tpu.dimension_semantics<parallel>], iteration_bounds = array<i64: 1>, scalar_prefetch = 0 : i64, scratch_operands = 3 : i64, tpu.core_type = #tpu.core_type<tc>, window_params = [{transform_indices = @transform_0, window_bounds = array<i64: 1800, 128>}, {pipeline_mode = #tpu.pipeline_mode<synchronous>, transform_indices = @transform_1, window_bounds = array<i64: 128, 32>}, {pipeline_mode = #tpu.pipeline_mode<synchronous>, transform_indices = @transform_2, window_bounds = array<i64: 1, 32>}, {pipeline_mode = #tpu.pipeline_mode<synchronous>, transform_indices = @transform_3, window_bounds = array<i64: 800, 64>}, {pipeline_mode = #tpu.pipeline_mode<synchronous>, transform_indices = @transform_4, window_bounds = array<i64: 1, 64>}, {pipeline_mode = #tpu.pipeline_mode<synchronous>, transform_indices = @transform_5, window_bounds = array<i64: 576, 64>}, {pipeline_mode = #tpu.pipeline_mode<synchronous>, transform_indices = @transform_6, window_bounds = array<i64: 1, 64>}, {pipeline_mode = #tpu.pipeline_mode<synchronous>, transform_indices = @transform_7, window_bounds = array<i64: 64, 128>}, {pipeline_mode = #tpu.pipeline_mode<synchronous>, transform_indices = @transform_8, window_bounds = array<i64: 1, 128>}, {transform_indices = @transform_9, window_bounds = array<i64: 8, 128>}]} {
    %c0 = arith.constant 0 : index
    %c0_0 = arith.constant 0 : index
    %0 = vector.load %arg1[%c0, %c0_0] : memref<1800x128xbf16, #tpu.memory_space<vmem>>, vector<1800x128xbf16>
    %c0_1 = arith.constant 0 : index
    %c0_2 = arith.constant 0 : index
    %1 = vector.load %arg2[%c0_1, %c0_2] : memref<128x32xbf16, #tpu.memory_space<vmem>>, vector<128x32xbf16>
    %cst = arith.constant dense<0.000000e+00> : vector<1800x32xf32>
    %2 = tpu.matmul %0, %1, %cst {dimension_numbers = #tpu.dot_dimension_numbers<[1], [0], [0], [1], [0, 0, 1, 1], [], []>} : vector<1800x128xbf16>, vector<128x32xbf16>, vector<1800x32xf32> -> vector<1800x32xf32>
    %c0_3 = arith.constant 0 : index
    %c0_4 = arith.constant 0 : index
    %3 = vector.load %arg3[%c0_3, %c0_4] : memref<1x32xf32, #tpu.memory_space<vmem>>, vector<1x32xf32>
    %4 = vector.broadcast %3 : vector<1x32xf32> to vector<1800x32xf32>
    %5 = arith.addf %2, %4 : vector<1800x32xf32>
    %cst_5 = arith.constant 0.000000e+00 : f32
    %6 = vector.broadcast %cst_5 : f32 to vector<1800x32xf32>
    %7 = arith.maximumf %5, %6 : vector<1800x32xf32>
    %c0_6 = arith.constant 0 : index
    %c0_7 = arith.constant 0 : index
    %8 = vector.load %arg11[%c0_6, %c0_7] : memref<1800x32xf32, #tpu.memory_space<vmem>>, vector<1800x32xf32>
    tpu.vector_store %arg11[%c0_6, %c0_7], %7 {strides = array<i32>} : memref<1800x32xf32, #tpu.memory_space<vmem>>, vector<1800x32xf32>,
    %c0_8 = arith.constant 0 : index
    %c0_9 = arith.constant 0 : index
    %9 = vector.load %arg11[%c0_8, %c0_9] : memref<1800x32xf32, #tpu.memory_space<vmem>>, vector<72x32xf32>
    %c0_10 = arith.constant 0 : index
    %c0_11 = arith.constant 0 : index
    %10 = vector.load %arg12[%c0_10, %c0_11] : memref<72x800xf32, #tpu.memory_space<vmem>>, vector<72x32xf32>
    tpu.vector_store %arg12[%c0_10, %c0_11], %9 {strides = array<i32>} : memref<72x800xf32, #tpu.memory_space<vmem>>, vector<72x32xf32>,
    %c72 = arith.constant 72 : index
    %c0_12 = arith.constant 0 : index
    %11 = vector.load %arg11[%c72, %c0_12] : memref<1800x32xf32, #tpu.memory_space<vmem>>, vector<72x32xf32>
    %c0_13 = arith.constant 0 : index
    %c32 = arith.constant 32 : index
    %12 = vector.load %arg12[%c0_13, %c32] : memref<72x800xf32, #tpu.memory_space<vmem>>, vector<72x32xf32>
    tpu.vector_store %arg12[%c0_13, %c32], %11 {strides = array<i32>} : memref<72x800xf32, #tpu.memory_space<vmem>>, vector<72x32xf32>,
    %c144 = arith.constant 144 : index
    %c0_14 = arith.constant 0 : index
    %13 = vector.load %arg11[%c144, %c0_14] : memref<1800x32xf32, #tpu.memory_space<vmem>>, vector<72x32xf32>
    %c0_15 = arith.constant 0 : index
    %c64 = arith.constant 64 : index
    %14 = vector.load %arg12[%c0_15, %c64] : memref<72x800xf32, #tpu.memory_space<vmem>>, vector<72x32xf32>
    tpu.vector_store %arg12[%c0_15, %c64], %13 {strides = array<i32>} : memref<72x800xf32, #tpu.memory_space<vmem>>, vector<72x32xf32>,
    %c216 = arith.constant 216 : index
    %c0_16 = arith.constant 0 : index
    %15 = vector.load %arg11[%c216, %c0_16] : memref<1800x32xf32, #tpu.memory_space<vmem>>, vector<72x32xf32>
    %c0_17 = arith.constant 0 : index
    %c96 = arith.constant 96 : index
    %16 = vector.load %arg12[%c0_17, %c96] : memref<72x800xf32, #tpu.memory_space<vmem>>, vector<72x32xf32>
    tpu.vector_store %arg12[%c0_17, %c96], %15 {strides = array<i32>} : memref<72x800xf32, #tpu.memory_space<vmem>>, vector<72x32xf32>,
    %c288 = arith.constant 288 : index
    %c0_18 = arith.constant 0 : index
    %17 = vector.load %arg11[%c288, %c0_18] : memref<1800x32xf32, #tpu.memory_space<vmem>>, vector<72x32xf32>
    %c0_19 = arith.constant 0 : index
    %c128 = arith.constant 128 : index
    %18 = vector.load %arg12[%c0_19, %c128] : memref<72x800xf32, #tpu.memory_space<vmem>>, vector<72x32xf32>
    tpu.vector_store %arg12[%c0_19, %c128], %17 {strides = array<i32>} : memref<72x800xf32, #tpu.memory_space<vmem>>, vector<72x32xf32>,
    %c360 = arith.constant 360 : index
    %c0_20 = arith.constant 0 : index
    %19 = vector.load %arg11[%c360, %c0_20] : memref<1800x32xf32, #tpu.memory_space<vmem>>, vector<72x32xf32>
    %c0_21 = arith.constant 0 : index
    %c160 = arith.constant 160 : index
    %20 = vector.load %arg12[%c0_21, %c160] : memref<72x800xf32, #tpu.memory_space<vmem>>, vector<72x32xf32>
    tpu.vector_store %arg12[%c0_21, %c160], %19 {strides = array<i32>} : memref<72x800xf32, #tpu.memory_space<vmem>>, vector<72x32xf32>,
    %c432 = arith.constant 432 : index
    %c0_22 = arith.constant 0 : index
    %21 = vector.load %arg11[%c432, %c0_22] : memref<1800x32xf32, #tpu.memory_space<vmem>>, vector<72x32xf32>
    %c0_23 = arith.constant 0 : index
    %c192 = arith.constant 192 : index
    %22 = vector.load %arg12[%c0_23, %c192] : memref<72x800xf32, #tpu.memory_space<vmem>>, vector<72x32xf32>
    tpu.vector_store %arg12[%c0_23, %c192], %21 {strides = array<i32>} : memref<72x800xf32, #tpu.memory_space<vmem>>, vector<72x32xf32>,
    %c504 = arith.constant 504 : index
    %c0_24 = arith.constant 0 : index
    %23 = vector.load %arg11[%c504, %c0_24] : memref<1800x32xf32, #tpu.memory_space<vmem>>, vector<72x32xf32>
    %c0_25 = arith.constant 0 : index
    %c224 = arith.constant 224 : index
    %24 = vector.load %arg12[%c0_25, %c224] : memref<72x800xf32, #tpu.memory_space<vmem>>, vector<72x32xf32>
    tpu.vector_store %arg12[%c0_25, %c224], %23 {strides = array<i32>} : memref<72x800xf32, #tpu.memory_space<vmem>>, vector<72x32xf32>,
    %c576 = arith.constant 576 : index
    %c0_26 = arith.constant 0 : index
    %25 = vector.load %arg11[%c576, %c0_26] : memref<1800x32xf32, #tpu.memory_space<vmem>>, vector<72x32xf32>
    %c0_27 = arith.constant 0 : index
    %c256 = arith.constant 256 : index
    %26 = vector.load %arg12[%c0_27, %c256] : memref<72x800xf32, #tpu.memory_space<vmem>>, vector<72x32xf32>
    tpu.vector_store %arg12[%c0_27, %c256], %25 {strides = array<i32>} : memref<72x800xf32, #tpu.memory_space<vmem>>, vector<72x32xf32>,
    %c648 = arith.constant 648 : index
    %c0_28 = arith.constant 0 : index
    %27 = vector.load %arg11[%c648, %c0_28] : memref<1800x32xf32, #tpu.memory_space<vmem>>, vector<72x32xf32>
    %c0_29 = arith.constant 0 : index
    %c288_30 = arith.constant 288 : index
    %28 = vector.load %arg12[%c0_29, %c288_30] : memref<72x800xf32, #tpu.memory_space<vmem>>, vector<72x32xf32>
    tpu.vector_store %arg12[%c0_29, %c288_30], %27 {strides = array<i32>} : memref<72x800xf32, #tpu.memory_space<vmem>>, vector<72x32xf32>,
    %c720 = arith.constant 720 : index
    %c0_31 = arith.constant 0 : index
    %29 = vector.load %arg11[%c720, %c0_31] : memref<1800x32xf32, #tpu.memory_space<vmem>>, vector<72x32xf32>
    %c0_32 = arith.constant 0 : index
    %c320 = arith.constant 320 : index
    %30 = vector.load %arg12[%c0_32, %c320] : memref<72x800xf32, #tpu.memory_space<vmem>>, vector<72x32xf32>
    tpu.vector_store %arg12[%c0_32, %c320], %29 {strides = array<i32>} : memref<72x800xf32, #tpu.memory_space<vmem>>, vector<72x32xf32>,
    %c792 = arith.constant 792 : index
    %c0_33 = arith.constant 0 : index
    %31 = vector.load %arg11[%c792, %c0_33] : memref<1800x32xf32, #tpu.memory_space<vmem>>, vector<72x32xf32>
    %c0_34 = arith.constant 0 : index
    %c352 = arith.constant 352 : index
    %32 = vector.load %arg12[%c0_34, %c352] : memref<72x800xf32, #tpu.memory_space<vmem>>, vector<72x32xf32>
    tpu.vector_store %arg12[%c0_34, %c352], %31 {strides = array<i32>} : memref<72x800xf32, #tpu.memory_space<vmem>>, vector<72x32xf32>,
    %c864 = arith.constant 864 : index
    %c0_35 = arith.constant 0 : index
    %33 = vector.load %arg11[%c864, %c0_35] : memref<1800x32xf32, #tpu.memory_space<vmem>>, vector<72x32xf32>
    %c0_36 = arith.constant 0 : index
    %c384 = arith.constant 384 : index
    %34 = vector.load %arg12[%c0_36, %c384] : memref<72x800xf32, #tpu.memory_space<vmem>>, vector<72x32xf32>
    tpu.vector_store %arg12[%c0_36, %c384], %33 {strides = array<i32>} : memref<72x800xf32, #tpu.memory_space<vmem>>, vector<72x32xf32>,
    %c936 = arith.constant 936 : index
    %c0_37 = arith.constant 0 : index
    %35 = vector.load %arg11[%c936, %c0_37] : memref<1800x32xf32, #tpu.memory_space<vmem>>, vector<72x32xf32>
    %c0_38 = arith.constant 0 : index
    %c416 = arith.constant 416 : index
    %36 = vector.load %arg12[%c0_38, %c416] : memref<72x800xf32, #tpu.memory_space<vmem>>, vector<72x32xf32>
    tpu.vector_store %arg12[%c0_38, %c416], %35 {strides = array<i32>} : memref<72x800xf32, #tpu.memory_space<vmem>>, vector<72x32xf32>,
    %c1008 = arith.constant 1008 : index
    %c0_39 = arith.constant 0 : index
    %37 = vector.load %arg11[%c1008, %c0_39] : memref<1800x32xf32, #tpu.memory_space<vmem>>, vector<72x32xf32>
    %c0_40 = arith.constant 0 : index
    %c448 = arith.constant 448 : index
    %38 = vector.load %arg12[%c0_40, %c448] : memref<72x800xf32, #tpu.memory_space<vmem>>, vector<72x32xf32>
    tpu.vector_store %arg12[%c0_40, %c448], %37 {strides = array<i32>} : memref<72x800xf32, #tpu.memory_space<vmem>>, vector<72x32xf32>,
    %c1080 = arith.constant 1080 : index
    %c0_41 = arith.constant 0 : index
    %39 = vector.load %arg11[%c1080, %c0_41] : memref<1800x32xf32, #tpu.memory_space<vmem>>, vector<72x32xf32>
    %c0_42 = arith.constant 0 : index
    %c480 = arith.constant 480 : index
    %40 = vector.load %arg12[%c0_42, %c480] : memref<72x800xf32, #tpu.memory_space<vmem>>, vector<72x32xf32>
    tpu.vector_store %arg12[%c0_42, %c480], %39 {strides = array<i32>} : memref<72x800xf32, #tpu.memory_space<vmem>>, vector<72x32xf32>,
    %c1152 = arith.constant 1152 : index
    %c0_43 = arith.constant 0 : index
    %41 = vector.load %arg11[%c1152, %c0_43] : memref<1800x32xf32, #tpu.memory_space<vmem>>, vector<72x32xf32>
    %c0_44 = arith.constant 0 : index
    %c512 = arith.constant 512 : index
    %42 = vector.load %arg12[%c0_44, %c512] : memref<72x800xf32, #tpu.memory_space<vmem>>, vector<72x32xf32>
    tpu.vector_store %arg12[%c0_44, %c512], %41 {strides = array<i32>} : memref<72x800xf32, #tpu.memory_space<vmem>>, vector<72x32xf32>,
    %c1224 = arith.constant 1224 : index
    %c0_45 = arith.constant 0 : index
    %43 = vector.load %arg11[%c1224, %c0_45] : memref<1800x32xf32, #tpu.memory_space<vmem>>, vector<72x32xf32>
    %c0_46 = arith.constant 0 : index
    %c544 = arith.constant 544 : index
    %44 = vector.load %arg12[%c0_46, %c544] : memref<72x800xf32, #tpu.memory_space<vmem>>, vector<72x32xf32>
    tpu.vector_store %arg12[%c0_46, %c544], %43 {strides = array<i32>} : memref<72x800xf32, #tpu.memory_space<vmem>>, vector<72x32xf32>,
    %c1296 = arith.constant 1296 : index
    %c0_47 = arith.constant 0 : index
    %45 = vector.load %arg11[%c1296, %c0_47] : memref<1800x32xf32, #tpu.memory_space<vmem>>, vector<72x32xf32>
    %c0_48 = arith.constant 0 : index
    %c576_49 = arith.constant 576 : index
    %46 = vector.load %arg12[%c0_48, %c576_49] : memref<72x800xf32, #tpu.memory_space<vmem>>, vector<72x32xf32>
    tpu.vector_store %arg12[%c0_48, %c576_49], %45 {strides = array<i32>} : memref<72x800xf32, #tpu.memory_space<vmem>>, vector<72x32xf32>,
    %c1368 = arith.constant 1368 : index
    %c0_50 = arith.constant 0 : index
    %47 = vector.load %arg11[%c1368, %c0_50] : memref<1800x32xf32, #tpu.memory_space<vmem>>, vector<72x32xf32>
    %c0_51 = arith.constant 0 : index
    %c608 = arith.constant 608 : index
    %48 = vector.load %arg12[%c0_51, %c608] : memref<72x800xf32, #tpu.memory_space<vmem>>, vector<72x32xf32>
    tpu.vector_store %arg12[%c0_51, %c608], %47 {strides = array<i32>} : memref<72x800xf32, #tpu.memory_space<vmem>>, vector<72x32xf32>,
    %c1440 = arith.constant 1440 : index
    %c0_52 = arith.constant 0 : index
    %49 = vector.load %arg11[%c1440, %c0_52] : memref<1800x32xf32, #tpu.memory_space<vmem>>, vector<72x32xf32>
    %c0_53 = arith.constant 0 : index
    %c640 = arith.constant 640 : index
    %50 = vector.load %arg12[%c0_53, %c640] : memref<72x800xf32, #tpu.memory_space<vmem>>, vector<72x32xf32>
    tpu.vector_store %arg12[%c0_53, %c640], %49 {strides = array<i32>} : memref<72x800xf32, #tpu.memory_space<vmem>>, vector<72x32xf32>,
    %c1512 = arith.constant 1512 : index
    %c0_54 = arith.constant 0 : index
    %51 = vector.load %arg11[%c1512, %c0_54] : memref<1800x32xf32, #tpu.memory_space<vmem>>, vector<72x32xf32>
    %c0_55 = arith.constant 0 : index
    %c672 = arith.constant 672 : index
    %52 = vector.load %arg12[%c0_55, %c672] : memref<72x800xf32, #tpu.memory_space<vmem>>, vector<72x32xf32>
    tpu.vector_store %arg12[%c0_55, %c672], %51 {strides = array<i32>} : memref<72x800xf32, #tpu.memory_space<vmem>>, vector<72x32xf32>,
    %c1584 = arith.constant 1584 : index
    %c0_56 = arith.constant 0 : index
    %53 = vector.load %arg11[%c1584, %c0_56] : memref<1800x32xf32, #tpu.memory_space<vmem>>, vector<72x32xf32>
    %c0_57 = arith.constant 0 : index
    %c704 = arith.constant 704 : index
    %54 = vector.load %arg12[%c0_57, %c704] : memref<72x800xf32, #tpu.memory_space<vmem>>, vector<72x32xf32>
    tpu.vector_store %arg12[%c0_57, %c704], %53 {strides = array<i32>} : memref<72x800xf32, #tpu.memory_space<vmem>>, vector<72x32xf32>,
    %c1656 = arith.constant 1656 : index
    %c0_58 = arith.constant 0 : index
    %55 = vector.load %arg11[%c1656, %c0_58] : memref<1800x32xf32, #tpu.memory_space<vmem>>, vector<72x32xf32>
    %c0_59 = arith.constant 0 : index
    %c736 = arith.constant 736 : index
    %56 = vector.load %arg12[%c0_59, %c736] : memref<72x800xf32, #tpu.memory_space<vmem>>, vector<72x32xf32>
    tpu.vector_store %arg12[%c0_59, %c736], %55 {strides = array<i32>} : memref<72x800xf32, #tpu.memory_space<vmem>>, vector<72x32xf32>,
    %c1728 = arith.constant 1728 : index
    %c0_60 = arith.constant 0 : index
    %57 = vector.load %arg11[%c1728, %c0_60] : memref<1800x32xf32, #tpu.memory_space<vmem>>, vector<72x32xf32>
    %c0_61 = arith.constant 0 : index
    %c768 = arith.constant 768 : index
    %58 = vector.load %arg12[%c0_61, %c768] : memref<72x800xf32, #tpu.memory_space<vmem>>, vector<72x32xf32>
    tpu.vector_store %arg12[%c0_61, %c768], %57 {strides = array<i32>} : memref<72x800xf32, #tpu.memory_space<vmem>>, vector<72x32xf32>,
    %c0_62 = arith.constant 0 : index
    %c0_63 = arith.constant 0 : index
    %59 = vector.load %arg12[%c0_62, %c0_63] : memref<72x800xf32, #tpu.memory_space<vmem>>, vector<72x800xf32>
    %60 = arith.truncf %59 : vector<72x800xf32> to vector<72x800xbf16>
    %c0_64 = arith.constant 0 : index
    %c0_65 = arith.constant 0 : index
    %61 = vector.load %arg4[%c0_64, %c0_65] : memref<800x64xbf16, #tpu.memory_space<vmem>>, vector<800x64xbf16>
    %cst_66 = arith.constant dense<0.000000e+00> : vector<72x64xf32>
    %62 = tpu.matmul %60, %61, %cst_66 {dimension_numbers = #tpu.dot_dimension_numbers<[1], [0], [0], [1], [0, 0, 1, 1], [], []>} : vector<72x800xbf16>, vector<800x64xbf16>, vector<72x64xf32> -> vector<72x64xf32>
    %c0_67 = arith.constant 0 : index
    %c0_68 = arith.constant 0 : index
    %63 = vector.load %arg5[%c0_67, %c0_68] : memref<1x64xf32, #tpu.memory_space<vmem>>, vector<1x64xf32>
    %64 = vector.broadcast %63 : vector<1x64xf32> to vector<72x64xf32>
    %65 = arith.addf %62, %64 : vector<72x64xf32>
    %cst_69 = arith.constant 0.000000e+00 : f32
    %66 = vector.broadcast %cst_69 : f32 to vector<72x64xf32>
    %67 = arith.maximumf %65, %66 : vector<72x64xf32>
    %68 = vector.extract_strided_slice %67 {offsets = [0, 0], sizes = [8, 64], strides = [1, 1]} : vector<72x64xf32> to vector<8x64xf32>
    %c0_70 = arith.constant 0 : index
    %c0_71 = arith.constant 0 : index
    %69 = vector.load %arg13[%c0_70, %c0_71] : memref<8x576xf32, #tpu.memory_space<vmem>>, vector<8x64xf32>
    tpu.vector_store %arg13[%c0_70, %c0_71], %68 {strides = array<i32>} : memref<8x576xf32, #tpu.memory_space<vmem>>, vector<8x64xf32>,
    %70 = vector.extract_strided_slice %67 {offsets = [8, 0], sizes = [8, 64], strides = [1, 1]} : vector<72x64xf32> to vector<8x64xf32>
    %c0_72 = arith.constant 0 : index
    %c64_73 = arith.constant 64 : index
    %71 = vector.load %arg13[%c0_72, %c64_73] : memref<8x576xf32, #tpu.memory_space<vmem>>, vector<8x64xf32>
    tpu.vector_store %arg13[%c0_72, %c64_73], %70 {strides = array<i32>} : memref<8x576xf32, #tpu.memory_space<vmem>>, vector<8x64xf32>,
    %72 = vector.extract_strided_slice %67 {offsets = [16, 0], sizes = [8, 64], strides = [1, 1]} : vector<72x64xf32> to vector<8x64xf32>
    %c0_74 = arith.constant 0 : index
    %c128_75 = arith.constant 128 : index
    %73 = vector.load %arg13[%c0_74, %c128_75] : memref<8x576xf32, #tpu.memory_space<vmem>>, vector<8x64xf32>
    tpu.vector_store %arg13[%c0_74, %c128_75], %72 {strides = array<i32>} : memref<8x576xf32, #tpu.memory_space<vmem>>, vector<8x64xf32>,
    %74 = vector.extract_strided_slice %67 {offsets = [24, 0], sizes = [8, 64], strides = [1, 1]} : vector<72x64xf32> to vector<8x64xf32>
    %c0_76 = arith.constant 0 : index
    %c192_77 = arith.constant 192 : index
    %75 = vector.load %arg13[%c0_76, %c192_77] : memref<8x576xf32, #tpu.memory_space<vmem>>, vector<8x64xf32>
    tpu.vector_store %arg13[%c0_76, %c192_77], %74 {strides = array<i32>} : memref<8x576xf32, #tpu.memory_space<vmem>>, vector<8x64xf32>,
    %76 = vector.extract_strided_slice %67 {offsets = [32, 0], sizes = [8, 64], strides = [1, 1]} : vector<72x64xf32> to vector<8x64xf32>
    %c0_78 = arith.constant 0 : index
    %c256_79 = arith.constant 256 : index
    %77 = vector.load %arg13[%c0_78, %c256_79] : memref<8x576xf32, #tpu.memory_space<vmem>>, vector<8x64xf32>
    tpu.vector_store %arg13[%c0_78, %c256_79], %76 {strides = array<i32>} : memref<8x576xf32, #tpu.memory_space<vmem>>, vector<8x64xf32>,
    %78 = vector.extract_strided_slice %67 {offsets = [40, 0], sizes = [8, 64], strides = [1, 1]} : vector<72x64xf32> to vector<8x64xf32>
    %c0_80 = arith.constant 0 : index
    %c320_81 = arith.constant 320 : index
    %79 = vector.load %arg13[%c0_80, %c320_81] : memref<8x576xf32, #tpu.memory_space<vmem>>, vector<8x64xf32>
    tpu.vector_store %arg13[%c0_80, %c320_81], %78 {strides = array<i32>} : memref<8x576xf32, #tpu.memory_space<vmem>>, vector<8x64xf32>,
    %80 = vector.extract_strided_slice %67 {offsets = [48, 0], sizes = [8, 64], strides = [1, 1]} : vector<72x64xf32> to vector<8x64xf32>
    %c0_82 = arith.constant 0 : index
    %c384_83 = arith.constant 384 : index
    %81 = vector.load %arg13[%c0_82, %c384_83] : memref<8x576xf32, #tpu.memory_space<vmem>>, vector<8x64xf32>
    tpu.vector_store %arg13[%c0_82, %c384_83], %80 {strides = array<i32>} : memref<8x576xf32, #tpu.memory_space<vmem>>, vector<8x64xf32>,
    %82 = vector.extract_strided_slice %67 {offsets = [56, 0], sizes = [8, 64], strides = [1, 1]} : vector<72x64xf32> to vector<8x64xf32>
    %c0_84 = arith.constant 0 : index
    %c448_85 = arith.constant 448 : index
    %83 = vector.load %arg13[%c0_84, %c448_85] : memref<8x576xf32, #tpu.memory_space<vmem>>, vector<8x64xf32>
    tpu.vector_store %arg13[%c0_84, %c448_85], %82 {strides = array<i32>} : memref<8x576xf32, #tpu.memory_space<vmem>>, vector<8x64xf32>,
    %84 = vector.extract_strided_slice %67 {offsets = [64, 0], sizes = [8, 64], strides = [1, 1]} : vector<72x64xf32> to vector<8x64xf32>
    %c0_86 = arith.constant 0 : index
    %c512_87 = arith.constant 512 : index
    %85 = vector.load %arg13[%c0_86, %c512_87] : memref<8x576xf32, #tpu.memory_space<vmem>>, vector<8x64xf32>
    tpu.vector_store %arg13[%c0_86, %c512_87], %84 {strides = array<i32>} : memref<8x576xf32, #tpu.memory_space<vmem>>, vector<8x64xf32>,
    %c0_88 = arith.constant 0 : index
    %c0_89 = arith.constant 0 : index
    %86 = vector.load %arg13[%c0_88, %c0_89] : memref<8x576xf32, #tpu.memory_space<vmem>>, vector<8x576xf32>
    %87 = arith.truncf %86 : vector<8x576xf32> to vector<8x576xbf16>
    %c0_90 = arith.constant 0 : index
    %c0_91 = arith.constant 0 : index
    %88 = vector.load %arg6[%c0_90, %c0_91] : memref<576x64xbf16, #tpu.memory_space<vmem>>, vector<576x64xbf16>
    %cst_92 = arith.constant dense<0.000000e+00> : vector<8x64xf32>
    %89 = tpu.matmul %87, %88, %cst_92 {dimension_numbers = #tpu.dot_dimension_numbers<[1], [0], [0], [1], [0, 0, 1, 1], [], []>} : vector<8x576xbf16>, vector<576x64xbf16>, vector<8x64xf32> -> vector<8x64xf32>
    %c0_93 = arith.constant 0 : index
    %c0_94 = arith.constant 0 : index
    %90 = vector.load %arg7[%c0_93, %c0_94] : memref<1x64xf32, #tpu.memory_space<vmem>>, vector<1x64xf32>
    %91 = vector.broadcast %90 : vector<1x64xf32> to vector<8x64xf32>
    %92 = arith.addf %89, %91 : vector<8x64xf32>
    %cst_95 = arith.constant 0.000000e+00 : f32
    %93 = vector.broadcast %cst_95 : f32 to vector<8x64xf32>
    %94 = arith.maximumf %92, %93 : vector<8x64xf32>
    %95 = arith.truncf %94 : vector<8x64xf32> to vector<8x64xbf16>
    %c0_96 = arith.constant 0 : index
    %c0_97 = arith.constant 0 : index
    %96 = vector.load %arg8[%c0_96, %c0_97] : memref<64x128xbf16, #tpu.memory_space<vmem>>, vector<64x128xbf16>
    %cst_98 = arith.constant dense<0.000000e+00> : vector<8x128xf32>
    %97 = tpu.matmul %95, %96, %cst_98 {dimension_numbers = #tpu.dot_dimension_numbers<[1], [0], [0], [1], [0, 0, 1, 1], [], []>} : vector<8x64xbf16>, vector<64x128xbf16>, vector<8x128xf32> -> vector<8x128xf32>
    %c0_99 = arith.constant 0 : index
    %c0_100 = arith.constant 0 : index
    %98 = vector.load %arg9[%c0_99, %c0_100] : memref<1x128xf32, #tpu.memory_space<vmem>>, vector<1x128xf32>
    %99 = vector.broadcast %98 : vector<1x128xf32> to vector<8x128xf32>
    %100 = arith.addf %97, %99 : vector<8x128xf32>
    %c0_101 = arith.constant 0 : index
    %c0_102 = arith.constant 0 : index
    %101 = vector.load %arg10[%c0_101, %c0_102] : memref<8x128xf32, #tpu.memory_space<vmem>>, vector<8x128xf32>
    tpu.vector_store %arg10[%c0_101, %c0_102], %100 {strides = array<i32>} : memref<8x128xf32, #tpu.memory_space<vmem>>, vector<8x128xf32>,
    return
  }
  func.func @transform_0(%arg0: i32) -> (i32, i32) {
    %c0_i32 = arith.constant 0 : i32
    %c0_i32_0 = arith.constant 0 : i32
    return %arg0, %c0_i32 : i32, i32
  }
  func.func @transform_1(%arg0: i32) -> (i32, i32) {
    %c0_i32 = arith.constant 0 : i32
    %c0_i32_0 = arith.constant 0 : i32
    %c0_i32_1 = arith.constant 0 : i32
    return %c0_i32, %c0_i32_0 : i32, i32
  }
  func.func @transform_2(%arg0: i32) -> (i32, i32) {
    %c0_i32 = arith.constant 0 : i32
    %c0_i32_0 = arith.constant 0 : i32
    %c0_i32_1 = arith.constant 0 : i32
    return %c0_i32, %c0_i32_0 : i32, i32
  }
  func.func @transform_3(%arg0: i32) -> (i32, i32) {
    %c0_i32 = arith.constant 0 : i32
    %c0_i32_0 = arith.constant 0 : i32
    %c0_i32_1 = arith.constant 0 : i32
    return %c0_i32, %c0_i32_0 : i32, i32
  }
  func.func @transform_4(%arg0: i32) -> (i32, i32) {
    %c0_i32 = arith.constant 0 : i32
    %c0_i32_0 = arith.constant 0 : i32
    %c0_i32_1 = arith.constant 0 : i32
    return %c0_i32, %c0_i32_0 : i32, i32
  }
  func.func @transform_5(%arg0: i32) -> (i32, i32) {
    %c0_i32 = arith.constant 0 : i32
    %c0_i32_0 = arith.constant 0 : i32
    %c0_i32_1 = arith.constant 0 : i32
    return %c0_i32, %c0_i32_0 : i32, i32
  }
  func.func @transform_6(%arg0: i32) -> (i32, i32) {
    %c0_i32 = arith.constant 0 : i32
    %c0_i32_0 = arith.constant 0 : i32
    %c0_i32_1 = arith.constant 0 : i32
    return %c0_i32, %c0_i32_0 : i32, i32
  }
  func.func @transform_7(%arg0: i32) -> (i32, i32) {
    %c0_i32 = arith.constant 0 : i32
    %c0_i32_0 = arith.constant 0 : i32
    %c0_i32_1 = arith.constant 0 : i32
    return %c0_i32, %c0_i32_0 : i32, i32
  }
  func.func @transform_8(%arg0: i32) -> (i32, i32) {
    %c0_i32 = arith.constant 0 : i32
    %c0_i32_0 = arith.constant 0 : i32
    %c0_i32_1 = arith.constant 0 : i32
    return %c0_i32, %c0_i32_0 : i32, i32
  }
  func.func @transform_9(%arg0: i32) -> (i32, i32) {
    %c0_i32 = arith.constant 0 : i32
    %c0_i32_0 = arith.constant 0 : i32
    return %arg0, %c0_i32 : i32, i32
  }
}

</mosaic_0001>

<bundles_post_ra>
// kernel: dqn_forward.1
= control target key start
LH: loop header
LB: loop body
LE: loop exit
PB: predicated region body
PF: predicated region fallthrough
CT: control target
= control target key end

     0   :  { %v6148_v0 = vmov 0.0   ;;  %vm6149_vm0 = vmmov 0   ;;  %vm2166_vm1 = vcmask 261120   ;;  %s6150_s11 = smov 96   ;;  %s6151_s28 = smov 32   ;;  %vm2455_vm2 = vcmask 523520   ;;  %s8036_s1 = inlined_call_operand.vmem [shape: bf16[128,32], index: 1, kind: input, shape index: {}]   ;;  %s8037_s0 = inlined_call_operand.vmem [shape: bf16[1800,128], index: 0, kind: input, shape index: {}]   ;;  %s8038_s2 = inlined_call_operand.vmem [shape: f32[1,32], index: 2, kind: input, shape index: {}]   ;;  %s8039_s3 = inlined_call_operand.vmem [shape: bf16[800,64], index: 3, kind: input, shape index: {}]   ;;  %s8040_s4 = inlined_call_operand.vmem [shape: f32[1,64], index: 4, kind: input, shape index: {}]   ;;  %s8041_s5 = inlined_call_operand.vmem [shape: bf16[576,64], index: 5, kind: input, shape index: {}]   ;;  %s8042_s7 = inlined_call_operand.vmem [shape: bf16[64,128], index: 7, kind: input, shape index: {}]   ;;  %s8043_s6 = inlined_call_operand.vmem [shape: f32[1,64], index: 6, kind: input, shape index: {}]   ;;  %s8044_s8 = inlined_call_operand.vmem [shape: f32[1,128], index: 8, kind: input, shape index: {}]   ;;  %s8045_s9 = inlined_call_operand.vmem [shape: f32[8,128], index: 9, kind: output, shape index: {}]  }
   0x1   :  { %5396 = vmatprep.subr.bf16.mxu0 %v6148_v0  ;;  %v5933_v1 = vld [vmem:[%s8036_s1] sm:$0xff]   ;;  %5912 = vmatprep.subr.bf16.mxu1 %v6148_v0  ;;  %v5934_v2 = vld [vmem:[%s8036_s1 + $0x8] sm:$0xff]   ;;  %v5935_v3 = vld [vmem:[%s8036_s1 + $0x10] sm:$0xff]   ;;  %s6152_s20 = smov 64   ;;  %vm2510_vm3 = vcmask 785920   ;;  %vm2565_vm4 = vcmask 1048320  }
   0x2   :  { %5412 = vmatprep.mubr.msk.bf16.mxu0 %vm6149_vm0, %v6148_v0  ;;  %5696 = vmatprep.mubr.msk.bf16.mxu1 %vm6149_vm0, %v6148_v0  ;;  %v5936_v4 = vld [vmem:[%s8036_s1 + $0x18] sm:$0xff]   ;;  %v5937_v5 = vld [vmem:[%s8036_s1 + $0x20] sm:$0xff]   ;;  %v5938_v6 = vld [vmem:[%s8036_s1 + $0x28] sm:$0xff]   ;;  %vm4310_vm5 = vcmask 523264   ;;  %vm4316_vm6 = vcmask 1048064  }
   0x3   :  { %5397 = vmatpush3.bf16.msra.mxu0 %v5933_v1  ;;  %5920 = vmatpush3.bf16.msra.mxu1 %v5933_v1  ;;  %v5939_v7 = vld [vmem:[%s8036_s1 + $0x30] sm:$0xff]   ;;  %v5940_v8 = vld [vmem:[%s8036_s1 + $0x38] sm:$0xff]   ;;  %v5941_v9 = vld [vmem:[%s8037_s0] sm:$0xff]  }
   0x4   :  { %5398 = vmatprep.subr.bf16.mxu0 %v6148_v0  ;;  %5913 = vmatprep.subr.bf16.mxu1 %v6148_v0  ;;  %v5942_v10 = vld [vmem:[%s8037_s0 + $0x238] sm:$0xff]   ;;  %v5943_v11 = vld [vmem:[%s8037_s0 + $0x8] sm:$0xff]   ;;  %v5944_v12 = vld [vmem:[%s8037_s0 + $0x240] sm:$0xff]  }
   0x5   :  { %v5945_v13 = vld [vmem:[%s8037_s0 + $0x10] sm:$0xff]   ;;  %v5946_v14 = vld [vmem:[%s8037_s0 + $0x248] sm:$0xff]   ;;  %v5947_v15 = vld [vmem:[%s8037_s0 + $0x18] sm:$0xff]  }
   0x6   :  { %v5948_v16 = vld [vmem:[%s8037_s0 + $0x250] sm:$0xff]   ;;  %v5949_v17 = vld [vmem:[%s8037_s0 + $0x20] sm:$0xff]   ;;  %v5950_v18 = vld [vmem:[%s8037_s0 + $0x258] sm:$0xff]  }
   0x7   :  { %5399 = vmatpush3.bf16.msra.mxu0 %v5934_v2  ;;  %5921 = vmatpush3.bf16.msra.mxu1 %v5934_v2  ;;  %v5951_v19 = vld [vmem:[%s8037_s0 + $0x28] sm:$0xff]   ;;  %v5952_v20 = vld [vmem:[%s8037_s0 + $0x260] sm:$0xff]   ;;  %v5953_v21 = vld [vmem:[%s8037_s0 + $0x30] sm:$0xff]  }
   0x8   :  { %5400 = vmatprep.subr.bf16.mxu0 %v6148_v0  ;;  %5914 = vmatprep.subr.bf16.mxu1 %v6148_v0  ;;  %v5954_v22 = vld [vmem:[%s8037_s0 + $0x268] sm:$0xff]   ;;  %v5955_v23 = vld [vmem:[%s8037_s0 + $0x38] sm:$0xff]   ;;  %v5956_v24 = vld [vmem:[%s8037_s0 + $0x270] sm:$0xff]  }
   0x9   :  { %v5957_v25 = vld [vmem:[%s8037_s0 + $0x40] sm:$0xff]   ;;  %v5958_v26 = vld [vmem:[%s8037_s0 + $0x278] sm:$0xff]   ;;  %v5959_v27 = vld [vmem:[%s8037_s0 + $0x48] sm:$0xff]  }
   0xa   :  { %v5960_v28 = vld [vmem:[%s8037_s0 + $0x280] sm:$0xff]   ;;  %v5961_v29 = vld [vmem:[%s8037_s0 + $0x50] sm:$0xff]   ;;  %v5962_v30 = vld [vmem:[%s8037_s0 + $0x288] sm:$0xff]  }
   0xb   :  { %5401 = vmatpush3.bf16.msra.mxu0 %v5935_v3  ;;  %5922 = vmatpush3.bf16.msra.mxu1 %v5935_v3  ;;  %v5963_v31 = vld [vmem:[%s8037_s0 + $0x58] sm:$0xff]   ;;  %v5964_v32 = vld [vmem:[%s8037_s0 + $0x290] sm:$0xff]   ;;  %v5965_v33 = vld [vmem:[%s8037_s0 + $0x60] sm:$0xff]  }
   0xc   :  { %5402 = vmatprep.subr.bf16.mxu0 %v6148_v0  ;;  %5915 = vmatprep.subr.bf16.mxu1 %v6148_v0  ;;  %v5966_v34 = vld [vmem:[%s8037_s0 + $0x298] sm:$0xff]   ;;  %v5967_v35 = vld [vmem:[%s8037_s0 + $0x68] sm:$0xff]   ;;  %v5968_v36 = vld [vmem:[%s8037_s0 + $0x2a0] sm:$0xff]  }
   0xd   :  { %v5969_v37 = vld [vmem:[%s8037_s0 + $0x70] sm:$0xff]   ;;  %v5970_v38 = vld [vmem:[%s8037_s0 + $0x2a8] sm:$0xff]   ;;  %v5971_v39 = vld [vmem:[%s8037_s0 + $0x78] sm:$0xff]  }
   0xe   :  { %v5972_v40 = vld [vmem:[%s8037_s0 + $0x2b0] sm:$0xff]   ;;  %v5973_v41 = vld [vmem:[%s8037_s0 + $0x80] sm:$0xff]   ;;  %v5974_v42 = vld [vmem:[%s8037_s0 + $0x2b8] sm:$0xff]  }
   0xf   :  { %5403 = vmatpush3.bf16.msra.mxu0 %v5936_v4  ;;  %5923 = vmatpush3.bf16.msra.mxu1 %v5936_v4  ;;  %v5975_v43 = vld [vmem:[%s8037_s0 + $0x88] sm:$0xff]   ;;  %v5976_v44 = vld [vmem:[%s8037_s0 + $0x2c0] sm:$0xff]   ;;  %v5977_v45 = vld [vmem:[%s8037_s0 + $0x90] sm:$0xff]  }
  0x10   :  { %5404 = vmatprep.subr.bf16.mxu0 %v6148_v0  ;;  %5916 = vmatprep.subr.bf16.mxu1 %v6148_v0  ;;  %v5978_v46 = vld [vmem:[%s8037_s0 + $0x2c8] sm:$0xff]   ;;  %v5979_v47 = vld [vmem:[%s8037_s0 + $0x98] sm:$0xff]   ;;  %v5980_v48 = vld [vmem:[%s8037_s0 + $0x2d0] sm:$0xff]  }
  0x11   :  { %v5981_v49 = vld [vmem:[%s8037_s0 + $0xa0] sm:$0xff]   ;;  %v5982_v50 = vld [vmem:[%s8037_s0 + $0x2d8] sm:$0xff]   ;;  %v5983_v51 = vld [vmem:[%s8037_s0 + $0xa8] sm:$0xff]  }
  0x12   :  { %v5984_v52 = vld [vmem:[%s8037_s0 + $0x2e0] sm:$0xff]   ;;  %v5985_v53 = vld [vmem:[%s8037_s0 + $0xb0] sm:$0xff]   ;;  %v5986_v54 = vld [vmem:[%s8037_s0 + $0x2e8] sm:$0xff]  }
  0x13   :  { %5405 = vmatpush3.bf16.msra.mxu0 %v5937_v5  ;;  %5924 = vmatpush3.bf16.msra.mxu1 %v5937_v5  ;;  %v5987_v55 = vld [vmem:[%s8037_s0 + $0xb8] sm:$0xff]   ;;  %v5988_v56 = vld [vmem:[%s8037_s0 + $0x2f0] sm:$0xff]   ;;  %v5989_v57 = vld [vmem:[%s8037_s0 + $0xc0] sm:$0xff]  }
  0x14   :  { %5406 = vmatprep.subr.bf16.mxu0 %v6148_v0  ;;  %5917 = vmatprep.subr.bf16.mxu1 %v6148_v0  ;;  %v5990_v58 = vld [vmem:[%s8037_s0 + $0x2f8] sm:$0xff]   ;;  %v5991_v59 = vld [vmem:[%s8037_s0 + $0xc8] sm:$0xff]   ;;  %v5992_v60 = vld [vmem:[%s8037_s0 + $0x300] sm:$0xff]  }
  0x15   :  { %v5993_v61 = vld [vmem:[%s8037_s0 + $0xd0] sm:$0xff]   ;;  %v5994_v62 = vld [vmem:[%s8037_s0 + $0x308] sm:$0xff]   ;;  %v6516_v63 = vld [vmem:[%s8038_s2] ss:$0 sm:$0xff] }
  0x16   :  { %v5995_v5 = vld [vmem:[%s8037_s0 + $0xd8] sm:$0xff]  }
  0x17   :  { %5407 = vmatpush3.bf16.msra.mxu0 %v5938_v6  ;;  %5925 = vmatpush3.bf16.msra.mxu1 %v5938_v6  ;;  %v5996_v6 = vld [vmem:[%s8037_s0 + $0x310] sm:$0xff]  }
  0x18   :  { %5408 = vmatprep.subr.bf16.mxu0 %v6148_v0  ;;  %5918 = vmatprep.subr.bf16.mxu1 %v6148_v0 }
  0x1b   :  { %5409 = vmatpush3.bf16.msra.mxu0 %v5939_v7  ;;  %5926 = vmatpush3.bf16.msra.mxu1 %v5939_v7 }
  0x1c   :  { %5410 = vmatprep.subr.bf16.mxu0 %v6148_v0  ;;  %5919 = vmatprep.subr.bf16.mxu1 %v6148_v0 }
  0x1f   :  { %5411 = vmatpush3.bf16.msra.mxu0 %v5940_v8  ;;  %5927 = vmatpush3.bf16.msra.mxu1 %v5940_v8 }
  0x22   :  { %5413 = vmatmul.mubr.bf16.vlgmr.msra.gmra.mrb[0].mxu0 %v5941_v9  ;;  %5697 = vmatmul.mubr.bf16.vlgmr.msra.gmra.mrb[0].mxu1 %v5942_v10 }
  0x23   :  { %5416 = vmatprep.mubr.msk.bf16.mxu0 %vm6149_vm0, %v6148_v0  ;;  %5700 = vmatprep.mubr.msk.bf16.mxu1 %vm6149_vm0, %v6148_v0 }
  0x2a   :  { %5417 = vmatmul.mubr.bf16.gmra.mrb[4].mxu0 %v5943_v11  ;;  %5701 = vmatmul.mubr.bf16.gmra.mrb[4].mxu1 %v5944_v12 }
  0x2b   :  { %5420 = vmatprep.mubr.msk.bf16.mxu0 %vm6149_vm0, %v6148_v0  ;;  %5704 = vmatprep.mubr.msk.bf16.mxu1 %vm6149_vm0, %v6148_v0 }
  0x32   :  { %5421 = vmatmul.mubr.bf16.gmra.mrb[8].mxu0 %v5945_v13  ;;  %5705 = vmatmul.mubr.bf16.gmra.mrb[8].mxu1 %v5946_v14 }
  0x33   :  { %5424 = vmatprep.mubr.msk.bf16.mxu0 %vm6149_vm0, %v6148_v0  ;;  %5708 = vmatprep.mubr.msk.bf16.mxu1 %vm6149_vm0, %v6148_v0 }
  0x3a   :  { %5425 = vmatmul.mubr.bf16.gmra.mrb[12].mxu0 %v5947_v15  ;;  %5709 = vmatmul.mubr.bf16.gmra.mrb[12].mxu1 %v5948_v16 }
  0x3b   :  { %5428 = vmatprep.mubr.msk.bf16.mxu0 %vm6149_vm0, %v6148_v0  ;;  %5712 = vmatprep.mubr.msk.bf16.mxu1 %vm6149_vm0, %v6148_v0 }
  0x42   :  { %5429 = vmatmul.mubr.bf16.gmra.mrb[16].mxu0 %v5949_v17  ;;  %5713 = vmatmul.mubr.bf16.gmra.mrb[16].mxu1 %v5950_v18 }
  0x43   :  { %5432 = vmatprep.mubr.msk.bf16.mxu0 %vm6149_vm0, %v6148_v0  ;;  %5716 = vmatprep.mubr.msk.bf16.mxu1 %vm6149_vm0, %v6148_v0 }
  0x4a   :  { %5433 = vmatmul.mubr.bf16.gmra.mrb[20].mxu0 %v5951_v19  ;;  %5717 = vmatmul.mubr.bf16.gmra.mrb[20].mxu1 %v5952_v20 }
  0x4b   :  { %5436 = vmatprep.mubr.msk.bf16.mxu0 %vm6149_vm0, %v6148_v0  ;;  %5720 = vmatprep.mubr.msk.bf16.mxu1 %vm6149_vm0, %v6148_v0 }
  0x52   :  { %5437 = vmatmul.mubr.bf16.gmra.mrb[24].mxu0 %v5953_v21  ;;  %5721 = vmatmul.mubr.bf16.gmra.mrb[24].mxu1 %v5954_v22 }
  0x53   :  { %5440 = vmatprep.mubr.msk.bf16.mxu0 %vm6149_vm0, %v6148_v0  ;;  %5724 = vmatprep.mubr.msk.bf16.mxu1 %vm6149_vm0, %v6148_v0 }
  0x5a   :  { %5441 = vmatmul.mubr.bf16.gmra.mrb[28].mxu0 %v5955_v23  ;;  %5725 = vmatmul.mubr.bf16.gmra.mrb[28].mxu1 %v5956_v24  ;;  %v5997_v23 = vld [vmem:[%s8037_s0 + $0xe0] sm:$0xff]   ;;  %v5998_v24 = vld [vmem:[%s8037_s0 + $0x318] sm:$0xff]  }
  0x5b   :  { %5444 = vmatprep.mubr.msk.bf16.mxu0 %vm6149_vm0, %v6148_v0  ;;  %5728 = vmatprep.mubr.msk.bf16.mxu1 %vm6149_vm0, %v6148_v0 }
  0x62   :  { %5445 = vmatmul.mubr.bf16.gmra.mrb[32].mxu0 %v5957_v25  ;;  %5729 = vmatmul.mubr.bf16.gmra.mrb[32].mxu1 %v5958_v26 }
  0x63   :  { %5448 = vmatprep.mubr.msk.bf16.mxu0 %vm6149_vm0, %v6148_v0  ;;  %5732 = vmatprep.mubr.msk.bf16.mxu1 %vm6149_vm0, %v6148_v0 }
  0x6a   :  { %5449 = vmatmul.mubr.bf16.gmra.mrb[36].mxu0 %v5959_v27  ;;  %5733 = vmatmul.mubr.bf16.gmra.mrb[36].mxu1 %v5960_v28 }
  0x6b   :  { %5452 = vmatprep.mubr.msk.bf16.mxu0 %vm6149_vm0, %v6148_v0  ;;  %5736 = vmatprep.mubr.msk.bf16.mxu1 %vm6149_vm0, %v6148_v0 }
  0x72   :  { %5453 = vmatmul.mubr.bf16.gmra.mrb[40].mxu0 %v5961_v29  ;;  %5737 = vmatmul.mubr.bf16.gmra.mrb[40].mxu1 %v5962_v30 }
  0x73   :  { %5456 = vmatprep.mubr.msk.bf16.mxu0 %vm6149_vm0, %v6148_v0  ;;  %5740 = vmatprep.mubr.msk.bf16.mxu1 %vm6149_vm0, %v6148_v0 }
  0x7a   :  { %5457 = vmatmul.mubr.bf16.gmra.mrb[44].mxu0 %v5963_v31  ;;  %5741 = vmatmul.mubr.bf16.gmra.mrb[44].mxu1 %v5964_v32 }
  0x7b   :  { %5460 = vmatprep.mubr.msk.bf16.mxu0 %vm6149_vm0, %v6148_v0  ;;  %5744 = vmatprep.mubr.msk.bf16.mxu1 %vm6149_vm0, %v6148_v0 }
  0x82   :  { %5461 = vmatmul.mubr.bf16.gmra.mrb[48].mxu0 %v5965_v33  ;;  %5745 = vmatmul.mubr.bf16.gmra.mrb[48].mxu1 %v5966_v34 }
  0x83   :  { %5464 = vmatprep.mubr.msk.bf16.mxu0 %vm6149_vm0, %v6148_v0  ;;  %5748 = vmatprep.mubr.msk.bf16.mxu1 %vm6149_vm0, %v6148_v0 }
  0x8a   :  { %5465 = vmatmul.mubr.bf16.gmra.mrb[52].mxu0 %v5967_v35  ;;  %5749 = vmatmul.mubr.bf16.gmra.mrb[52].mxu1 %v5968_v36 }
  0x8b   :  { %5468 = vmatprep.mubr.msk.bf16.mxu0 %vm6149_vm0, %v6148_v0  ;;  %5752 = vmatprep.mubr.msk.bf16.mxu1 %vm6149_vm0, %v6148_v0 }
  0x92   :  { %5469 = vmatmul.mubr.bf16.gmra.mrb[56].mxu0 %v5969_v37  ;;  %5753 = vmatmul.mubr.bf16.gmra.mrb[56].mxu1 %v5970_v38 }
  0x93   :  { %5472 = vmatprep.mubr.msk.bf16.mxu0 %vm6149_vm0, %v6148_v0  ;;  %5756 = vmatprep.mubr.msk.bf16.mxu1 %vm6149_vm0, %v6148_v0 }
  0x9a   :  { %5473 = vmatmul.mubr.bf16.gmra.mrb[60].mxu0 %v5971_v39  ;;  %5757 = vmatmul.mubr.bf16.gmra.mrb[60].mxu1 %v5972_v40 }
  0x9b   :  { %5476 = vmatprep.mubr.msk.bf16.mxu0 %vm6149_vm0, %v6148_v0  ;;  %5760 = vmatprep.mubr.msk.bf16.mxu1 %vm6149_vm0, %v6148_v0 }
  0xa2   :  { %5477 = vmatmul.mubr.bf16.gmra.mrb[64].mxu0 %v5973_v41  ;;  %5761 = vmatmul.mubr.bf16.gmra.mrb[64].mxu1 %v5974_v42 }
  0xa3   :  { %5480 = vmatprep.mubr.msk.bf16.mxu0 %vm6149_vm0, %v6148_v0  ;;  %5764 = vmatprep.mubr.msk.bf16.mxu1 %vm6149_vm0, %v6148_v0 }
  0xaa   :  { %5481 = vmatmul.mubr.bf16.gmra.mrb[68].mxu0 %v5975_v43  ;;  %5765 = vmatmul.mubr.bf16.gmra.mrb[68].mxu1 %v5976_v44 }
  0xab   :  { %5484 = vmatprep.mubr.msk.bf16.mxu0 %vm6149_vm0, %v6148_v0  ;;  %5768 = vmatprep.mubr.msk.bf16.mxu1 %vm6149_vm0, %v6148_v0 }
  0xb2   :  { %5485 = vmatmul.mubr.bf16.gmra.mrb[72].mxu0 %v5977_v45  ;;  %5769 = vmatmul.mubr.bf16.gmra.mrb[72].mxu1 %v5978_v46  ;;  %v5999_v45 = vld [vmem:[%s8037_s0 + $0xe8] sm:$0xff]   ;;  %v6000_v46 = vld [vmem:[%s8037_s0 + $0x320] sm:$0xff]  }
  0xb3   :  { %5488 = vmatprep.mubr.msk.bf16.mxu0 %vm6149_vm0, %v6148_v0  ;;  %5772 = vmatprep.mubr.msk.bf16.mxu1 %vm6149_vm0, %v6148_v0 }
  0xba   :  { %5489 = vmatmul.mubr.bf16.gmra.mrb[76].mxu0 %v5979_v47  ;;  %5773 = vmatmul.mubr.bf16.gmra.mrb[76].mxu1 %v5980_v48 }
  0xbb   :  { %5492 = vmatprep.mubr.msk.bf16.mxu0 %vm6149_vm0, %v6148_v0  ;;  %5776 = vmatprep.mubr.msk.bf16.mxu1 %vm6149_vm0, %v6148_v0 }
  0xc2   :  { %5493 = vmatmul.mubr.bf16.gmra.mrb[80].mxu0 %v5981_v49  ;;  %5777 = vmatmul.mubr.bf16.gmra.mrb[80].mxu1 %v5982_v50 }
  0xc3   :  { %5496 = vmatprep.mubr.msk.bf16.mxu0 %vm6149_vm0, %v6148_v0  ;;  %5780 = vmatprep.mubr.msk.bf16.mxu1 %vm6149_vm0, %v6148_v0 }
  0xca   :  { %5497 = vmatmul.mubr.bf16.gmra.mrb[84].mxu0 %v5983_v51  ;;  %5781 = vmatmul.mubr.bf16.gmra.mrb[84].mxu1 %v5984_v52 }
  0xcb   :  { %5500 = vmatprep.mubr.msk.bf16.mxu0 %vm6149_vm0, %v6148_v0  ;;  %5784 = vmatprep.mubr.msk.bf16.mxu1 %vm6149_vm0, %v6148_v0 }
  0xd2   :  { %5501 = vmatmul.mubr.bf16.gmra.mrb[88].mxu0 %v5985_v53  ;;  %5785 = vmatmul.mubr.bf16.gmra.mrb[88].mxu1 %v5986_v54 }
  0xd3   :  { %5504 = vmatprep.mubr.msk.bf16.mxu0 %vm6149_vm0, %v6148_v0  ;;  %5788 = vmatprep.mubr.msk.bf16.mxu1 %vm6149_vm0, %v6148_v0 }
  0xda   :  { %5505 = vmatmul.mubr.bf16.gmra.mrb[92].mxu0 %v5987_v55  ;;  %5789 = vmatmul.mubr.bf16.gmra.mrb[92].mxu1 %v5988_v56 }
  0xdb   :  { %5508 = vmatprep.mubr.msk.bf16.mxu0 %vm6149_vm0, %v6148_v0  ;;  %5792 = vmatprep.mubr.msk.bf16.mxu1 %vm6149_vm0, %v6148_v0 }
  0xe2   :  { %5509 = vmatmul.mubr.bf16.gmra.mrb[96].mxu0 %v5989_v57  ;;  %5793 = vmatmul.mubr.bf16.gmra.mrb[96].mxu1 %v5990_v58 }
  0xe3   :  { %5512 = vmatprep.mubr.msk.bf16.mxu0 %vm6149_vm0, %v6148_v0  ;;  %5796 = vmatprep.mubr.msk.bf16.mxu1 %vm6149_vm0, %v6148_v0 }
  0xea   :  { %5513 = vmatmul.mubr.bf16.gmra.mrb[100].mxu0 %v5991_v59  ;;  %5797 = vmatmul.mubr.bf16.gmra.mrb[100].mxu1 %v5992_v60 }
  0xeb   :  { %5516 = vmatprep.mubr.msk.bf16.mxu0 %vm6149_vm0, %v6148_v0  ;;  %5800 = vmatprep.mubr.msk.bf16.mxu1 %vm6149_vm0, %v6148_v0 }
  0xf2   :  { %5517 = vmatmul.mubr.bf16.gmra.mrb[104].mxu0 %v5993_v61  ;;  %5801 = vmatmul.mubr.bf16.gmra.mrb[104].mxu1 %v5994_v62 }
  0xf3   :  { %5520 = vmatprep.mubr.msk.bf16.mxu0 %vm6149_vm0, %v6148_v0  ;;  %5804 = vmatprep.mubr.msk.bf16.mxu1 %vm6149_vm0, %v6148_v0 }
  0xf5   :  { %v1039_v1 = vpop.f32.mrb[0].mxu0  ;;  %v1607_v2 = vpop.f32.mrb[0].mxu1 }
  0xf6   :  { %v1040_v3 = vadd.f32 %v6516_v63, %v1039_v1  ;;  %v5414_v4 = vpop.f32.mrb[1].mxu0  ;;  %v1608_v7 = vadd.f32 %v6516_v63, %v1607_v2  ;;  %v5698_v8 = vpop.f32.mrb[1].mxu1 }
  0xf7   :  { %v1042_v9 = vpop.f32.mrb[2].mxu0  ;;  %v1610_v10 = vpop.f32.mrb[2].mxu1  ;;  %v6002_v4 = vld [vmem:[%s8037_s0 + $0x328] sm:$0xff]  }
  0xf8   :  { %v1941_v11 = vmax.f32 %v1040_v3, 0.0  ;;  %v1043_v12 = vadd.f32 %v6516_v63, %v1042_v9  ;;  %v5415_v13 = vpop.f32.mrb[3].mxu0  ;;  %v2083_v14 = vmax.f32 %v1608_v7, 0.0  ;;  %v1611_v15 = vadd.f32 %v6516_v63, %v1610_v10  ;;  %v5699_v16 = vpop.f32.mrb[3].mxu1  ;;  %v6001_v3 = vld [vmem:[%s8037_s0 + $0xf0] sm:$0xff]  }
  0xfa   :  { %2167 = vst.msk [vmem:[#allocation2] sm:$0xff] %vm2166_vm1, %v1941_v11  ;;  %v1942_v17 = vmax.f32 %v1043_v12, 0.0  ;;  %5521 = vmatmul.mubr.bf16.gmra.mrb[108].mxu0 %v5995_v5  ;;  %5805 = vmatmul.mubr.bf16.gmra.mrb[108].mxu1 %v5996_v6  ;;  %2309 = vst.msk [vmem:[#allocation2 + $0x470] sm:$0xff] %vm2166_vm1, %v2083_v14  ;;  %v2084_v18 = vmax.f32 %v1611_v15, 0.0 }
  0xfb   :  { %5524 = vmatprep.mubr.msk.bf16.mxu0 %vm6149_vm0, %v6148_v0  ;;  %5808 = vmatprep.mubr.msk.bf16.mxu1 %vm6149_vm0, %v6148_v0 }
  0xfc   :  { %2168 = vst.msk [vmem:[#allocation2 + $0x8] sm:$0xff] %vm2166_vm1, %v1942_v17  ;;  %2310 = vst.msk [vmem:[#allocation2 + $0x478] sm:$0xff] %vm2166_vm1, %v2084_v18 }
  0xfd   :  { %v1047_v19 = vpop.f32.mrb[4].mxu0  ;;  %v1615_v20 = vpop.f32.mrb[4].mxu1 }
  0xfe   :  { %v1048_v21 = vadd.f32 %v6516_v63, %v1047_v19  ;;  %v5418_v22 = vpop.f32.mrb[5].mxu0  ;;  %v1616_v25 = vadd.f32 %v6516_v63, %v1615_v20  ;;  %v5702_v26 = vpop.f32.mrb[5].mxu1 }
  0xff   :  { %v1050_v27 = vpop.f32.mrb[6].mxu0  ;;  %v1618_v28 = vpop.f32.mrb[6].mxu1  ;;  %v6004_v26 = vld [vmem:[%s8037_s0 + $0x330] sm:$0xff]  }
 0x100   :  { %v1943_v29 = vmax.f32 %v1048_v21, 0.0  ;;  %v1051_v30 = vadd.f32 %v6516_v63, %v1050_v27  ;;  %v5419_v31 = vpop.f32.mrb[7].mxu0  ;;  %v2085_v32 = vmax.f32 %v1616_v25, 0.0  ;;  %v1619_v33 = vadd.f32 %v6516_v63, %v1618_v28  ;;  %v5703_v34 = vpop.f32.mrb[7].mxu1 }
 0x101   :  { %v3068_v35 = vld [vmem:[#allocation2 + $0x470] sm:$0xff]  ;;  %v2392_v36 = vld [vmem:[#allocation2] sm:$0xff] }
 0x102   :  { %2169 = vst.msk [vmem:[#allocation2 + $0x10] sm:$0xff] %vm2166_vm1, %v1943_v29  ;;  %v1944_v37 = vmax.f32 %v1051_v30, 0.0  ;;  %5525 = vmatmul.mubr.bf16.gmra.mrb[112].mxu0 %v5997_v23  ;;  %5809 = vmatmul.mubr.bf16.gmra.mrb[112].mxu1 %v5998_v24  ;;  %2311 = vst.msk [vmem:[#allocation2 + $0x480] sm:$0xff] %vm2166_vm1, %v2085_v32  ;;  %v2086_v38 = vmax.f32 %v1619_v33, 0.0  ;;  %v6003_v23 = vld [vmem:[%s8037_s0 + $0xf8] sm:$0xff]  }
 0x103   :  { %2401 = vst.msk [vmem:[#allocation3] sm:$0xff] %vm2166_vm1, %v2392_v36  ;;  %5528 = vmatprep.mubr.msk.bf16.mxu0 %vm6149_vm0, %v6148_v0  ;;  %5812 = vmatprep.mubr.msk.bf16.mxu1 %vm6149_vm0, %v6148_v0  ;;  %v3069_v39 = vld [vmem:[#allocation2 + $0x478] sm:$0xff]  ;;  %v2393_v40 = vld [vmem:[#allocation2 + $0x8] sm:$0xff] }
 0x104   :  { %2170 = vst.msk [vmem:[#allocation2 + $0x18] sm:$0xff] %vm2166_vm1, %v1944_v37  ;;  %2312 = vst.msk [vmem:[#allocation2 + $0x488] sm:$0xff] %vm2166_vm1, %v2086_v38  ;;  %3093 = vrot.lane.b32.xlu1 %v3068_v35, %s6150_s11  ;;  %3095 = vrot.lane.b32.xlu0 %v3069_v39, %s6150_s11 }
 0x105   :  { %2402 = vst.msk [vmem:[#allocation3 + $0x38] sm:$0xff] %vm2166_vm1, %v2393_v40  ;;  %v1055_v41 = vpop.f32.mrb[8].mxu0  ;;  %v1623_v42 = vpop.f32.mrb[8].mxu1 }
 0x106   :  { %v1056_v43 = vadd.f32 %v6516_v63, %v1055_v41  ;;  %v5422_v44 = vpop.f32.mrb[9].mxu0  ;;  %v1624_v47 = vadd.f32 %v6516_v63, %v1623_v42  ;;  %v5706_v48 = vpop.f32.mrb[9].mxu1 }
 0x107   :  { %v1058_v49 = vpop.f32.mrb[10].mxu0  ;;  %v1626_v50 = vpop.f32.mrb[10].mxu1  ;;  %v6005_v44 = vld [vmem:[%s8037_s0 + $0x100] sm:$0xff]  }
 0x108   :  { %v1945_v51 = vmax.f32 %v1056_v43, 0.0  ;;  %v1059_v52 = vadd.f32 %v6516_v63, %v1058_v49  ;;  %v5423_v53 = vpop.f32.mrb[11].mxu0  ;;  %v2087_v54 = vmax.f32 %v1624_v47, 0.0  ;;  %v1627_v55 = vadd.f32 %v6516_v63, %v1626_v50  ;;  %v5707_v56 = vpop.f32.mrb[11].mxu1 }
 0x109   :  { %v2394_v57 = vld [vmem:[#allocation2 + $0x10] sm:$0xff] }
 0x10a   :  { %2171 = vst.msk [vmem:[#allocation2 + $0x20] sm:$0xff] %vm2166_vm1, %v1945_v51  ;;  %v1946_v58 = vmax.f32 %v1059_v52, 0.0  ;;  %5529 = vmatmul.mubr.bf16.gmra.mrb[116].mxu0 %v5999_v45  ;;  %5813 = vmatmul.mubr.bf16.gmra.mrb[116].mxu1 %v6000_v46  ;;  %2313 = vst.msk [vmem:[#allocation2 + $0x490] sm:$0xff] %vm2166_vm1, %v2087_v54  ;;  %v2088_v59 = vmax.f32 %v1627_v55, 0.0  ;;  %v6006_v46 = vld [vmem:[%s8037_s0 + $0x338] sm:$0xff]  }
 0x10b   :  { %2403 = vst.msk [vmem:[#allocation3 + $0x70] sm:$0xff] %vm2166_vm1, %v2394_v57  ;;  %5532 = vmatprep.mubr.msk.bf16.mxu0 %vm6149_vm0, %v6148_v0  ;;  %5816 = vmatprep.mubr.msk.bf16.mxu1 %vm6149_vm0, %v6148_v0  ;;  %v2395_v60 = vld [vmem:[#allocation2 + $0x18] sm:$0xff] }
 0x10c   :  { %2172 = vst.msk [vmem:[#allocation2 + $0x28] sm:$0xff] %vm2166_vm1, %v1946_v58  ;;  %2314 = vst.msk [vmem:[#allocation2 + $0x498] sm:$0xff] %vm2166_vm1, %v2088_v59  ;;  %v3115_v59 = vld [vmem:[#allocation2 + $0x480] sm:$0xff] }
 0x10d   :  { %2404 = vst.msk [vmem:[#allocation3 + $0xa8] sm:$0xff] %vm2166_vm1, %v2395_v60  ;;  %v1063_v61 = vpop.f32.mrb[12].mxu0  ;;  %v1631_v62 = vpop.f32.mrb[12].mxu1  ;;  %3124 = vst.msk [vmem:[#allocation3 + $0x20] sm:$0xff] %vm2166_vm1, %v3115_v59 }
 0x10e   :  { %v1064_v1 = vadd.f32 %v6516_v63, %v1063_v61  ;;  %v5426_v2 = vpop.f32.mrb[13].mxu0  ;;  %v1632_v5 = vadd.f32 %v6516_v63, %v1631_v62  ;;  %v5710_v6 = vpop.f32.mrb[13].mxu1 }
 0x10f   :  { %v1066_v7 = vpop.f32.mrb[14].mxu0  ;;  %v1634_v8 = vpop.f32.mrb[14].mxu1 }
 0x110   :  { %v1947_v9 = vmax.f32 %v1064_v1, 0.0  ;;  %v1067_v10 = vadd.f32 %v6516_v63, %v1066_v7  ;;  %v5427_v11 = vpop.f32.mrb[15].mxu0  ;;  %v2089_v12 = vmax.f32 %v1632_v5, 0.0  ;;  %v1635_v13 = vadd.f32 %v6516_v63, %v1634_v8  ;;  %v5711_v14 = vpop.f32.mrb[15].mxu1  ;;  %v6008_v7 = vld [vmem:[%s8037_s0 + $0x340] sm:$0xff]  }
 0x111   :  { %v2396_v15 = vld [vmem:[#allocation2 + $0x20] sm:$0xff] }
 0x112   :  { %2173 = vst.msk [vmem:[#allocation2 + $0x30] sm:$0xff] %vm2166_vm1, %v1947_v9  ;;  %v1948_v16 = vmax.f32 %v1067_v10, 0.0  ;;  %5533 = vmatmul.mubr.bf16.gmra.mrb[120].mxu0 %v6001_v3  ;;  %5817 = vmatmul.mubr.bf16.gmra.mrb[120].mxu1 %v6002_v4  ;;  %2315 = vst.msk [vmem:[#allocation2 + $0x4a0] sm:$0xff] %vm2166_vm1, %v2089_v12  ;;  %v2090_v17 = vmax.f32 %v1635_v13, 0.0  ;;  %v6007_v3 = vld [vmem:[%s8037_s0 + $0x108] sm:$0xff]  }
 0x113   :  { %2405 = vst.msk [vmem:[#allocation3 + $0xe0] sm:$0xff] %vm2166_vm1, %v2396_v15  ;;  %5536 = vmatprep.mubr.msk.bf16.mxu0 %vm6149_vm0, %v6148_v0  ;;  %5820 = vmatprep.mubr.msk.bf16.mxu1 %vm6149_vm0, %v6148_v0  ;;  %v2397_v18 = vld [vmem:[#allocation2 + $0x28] sm:$0xff] }
 0x114   :  { %2174 = vst.msk [vmem:[#allocation2 + $0x38] sm:$0xff] %vm2166_vm1, %v1948_v16  ;;  %2316 = vst.msk [vmem:[#allocation2 + $0x4a8] sm:$0xff] %vm2166_vm1, %v2090_v17 }
 0x115   :  { %2406 = vst.msk [vmem:[#allocation3 + $0x118] sm:$0xff] %vm2166_vm1, %v2397_v18  ;;  %v1071_v19 = vpop.f32.mrb[16].mxu0  ;;  %v1639_v20 = vpop.f32.mrb[16].mxu1  ;;  %v3116_v18 = vld [vmem:[#allocation2 + $0x488] sm:$0xff] }
 0x116   :  { %v1072_v21 = vadd.f32 %v6516_v63, %v1071_v19  ;;  %v5430_v22 = vpop.f32.mrb[17].mxu0  ;;  %v1640_v24 = vadd.f32 %v6516_v63, %v1639_v20  ;;  %v5714_v25 = vpop.f32.mrb[17].mxu1  ;;  %v3117_v19 = vld [vmem:[#allocation2 + $0x490] sm:$0xff]  ;;  %3125 = vst.msk [vmem:[#allocation3 + $0x58] sm:$0xff] %vm2166_vm1, %v3116_v18 }
 0x117   :  { %v1074_v27 = vpop.f32.mrb[18].mxu0  ;;  %v1642_v28 = vpop.f32.mrb[18].mxu1  ;;  %3126 = vst.msk [vmem:[#allocation3 + $0x90] sm:$0xff] %vm2166_vm1, %v3117_v19 }
 0x118   :  { %v1949_v29 = vmax.f32 %v1072_v21, 0.0  ;;  %v1075_v30 = vadd.f32 %v6516_v63, %v1074_v27  ;;  %v5431_v31 = vpop.f32.mrb[19].mxu0  ;;  %v2091_v32 = vmax.f32 %v1640_v24, 0.0  ;;  %v1643_v33 = vadd.f32 %v6516_v63, %v1642_v28  ;;  %v5715_v34 = vpop.f32.mrb[19].mxu1 }
 0x119   :  { %v2398_v35 = vld [vmem:[#allocation2 + $0x30] sm:$0xff] }
 0x11a   :  { %2175 = vst.msk [vmem:[#allocation2 + $0x40] sm:$0xff] %vm2166_vm1, %v1949_v29  ;;  %v1950_v36 = vmax.f32 %v1075_v30, 0.0  ;;  %5537 = vmatmul.mubr.bf16.gmra.mrb[124].mxu0 %v6003_v23  ;;  %2317 = vst.msk [vmem:[#allocation2 + $0x4b0] sm:$0xff] %vm2166_vm1, %v2091_v32  ;;  %5821 = vmatmul.mubr.bf16.gmra.mrb[124].mxu1 %v6004_v26  ;;  %v2092_v37 = vmax.f32 %v1643_v33, 0.0  ;;  %v6009_v26 = vld [vmem:[%s8037_s0 + $0x110] sm:$0xff]  }
 0x11b   :  { %2407 = vst.msk [vmem:[#allocation3 + $0x150] sm:$0xff] %vm2166_vm1, %v2398_v35  ;;  %5540 = vmatprep.mubr.msk.bf16.mxu0 %vm6149_vm0, %v6148_v0  ;;  %5824 = vmatprep.mubr.msk.bf16.mxu1 %vm6149_vm0, %v6148_v0  ;;  %v2399_v38 = vld [vmem:[#allocation2 + $0x38] sm:$0xff] }
 0x11c   :  { %2176 = vst.msk [vmem:[#allocation2 + $0x48] sm:$0xff] %vm2166_vm1, %v1950_v36  ;;  %2318 = vst.msk [vmem:[#allocation2 + $0x4b8] sm:$0xff] %vm2166_vm1, %v2092_v37 }
 0x11d   :  { %2408 = vst.msk [vmem:[#allocation3 + $0x188] sm:$0xff] %vm2166_vm1, %v2399_v38  ;;  %v1079_v39 = vpop.f32.mrb[20].mxu0  ;;  %v1647_v40 = vpop.f32.mrb[20].mxu1 }
 0x11e   :  { %v1080_v41 = vadd.f32 %v6516_v63, %v1079_v39  ;;  %v5434_v42 = vpop.f32.mrb[21].mxu0  ;;  %v1648_v43 = vadd.f32 %v6516_v63, %v1647_v40  ;;  %v5718_v45 = vpop.f32.mrb[21].mxu1 }
 0x11f   :  { %v1082_v47 = vpop.f32.mrb[22].mxu0  ;;  %v1650_v48 = vpop.f32.mrb[22].mxu1 }
 0x120   :  { %v1951_v49 = vmax.f32 %v1080_v41, 0.0  ;;  %v1083_v50 = vadd.f32 %v6516_v63, %v1082_v47  ;;  %v5435_v51 = vpop.f32.mrb[23].mxu0  ;;  %v2093_v52 = vmax.f32 %v1648_v43, 0.0  ;;  %v1651_v53 = vadd.f32 %v6516_v63, %v1650_v48  ;;  %v5719_v54 = vpop.f32.mrb[23].mxu1  ;;  %v3118_v41 = vld [vmem:[#allocation2 + $0x498] sm:$0xff] }
 0x121   :  { %v2400_v55 = vld [vmem:[#allocation2 + $0x40] sm:$0xff]  ;;  %3127 = vst.msk [vmem:[#allocation3 + $0xc8] sm:$0xff] %vm2166_vm1, %v3118_v41  ;;  %v6010_v47 = vld [vmem:[%s8037_s0 + $0x118] sm:$0xff]  }
 0x122   :  { %2177 = vst.msk [vmem:[#allocation2 + $0x50] sm:$0xff] %vm2166_vm1, %v1951_v49  ;;  %v1952_v56 = vmax.f32 %v1083_v50, 0.0  ;;  %2319 = vst.msk [vmem:[#allocation2 + $0x4c0] sm:$0xff] %vm2166_vm1, %v2093_v52  ;;  %5541 = vmatmul.mubr.bf16.gmra.mrb[128].mxu0 %v6005_v44  ;;  %v2094_v57 = vmax.f32 %v1651_v53, 0.0  ;;  %5825 = vmatmul.mubr.bf16.gmra.mrb[128].mxu1 %v6006_v46 }
 0x123   :  { %2409 = vst.msk [vmem:[#allocation3 + $0x1c0] sm:$0xff] %vm2166_vm1, %v2400_v55  ;;  %v2410_v58 = vld [vmem:[#allocation2 + $0x48] sm:$0xff]  ;;  %5544 = vmatprep.mubr.msk.bf16.mxu0 %vm6149_vm0, %v6148_v0  ;;  %5828 = vmatprep.mubr.msk.bf16.mxu1 %vm6149_vm0, %v6148_v0 }
 0x124   :  { %2178 = vst.msk [vmem:[#allocation2 + $0x58] sm:$0xff] %vm2166_vm1, %v1952_v56  ;;  %2320 = vst.msk [vmem:[#allocation2 + $0x4c8] sm:$0xff] %vm2166_vm1, %v2094_v57  ;;  %2428 = vrot.lane.b32.xlu1 %v2410_v58, %s6151_s28 }
 0x125   :  { %v1087_v60 = vpop.f32.mrb[24].mxu0  ;;  %v1655_v61 = vpop.f32.mrb[24].mxu1 }
 0x126   :  { %v1088_v62 = vadd.f32 %v6516_v63, %v1087_v60  ;;  %v5438_v1 = vpop.f32.mrb[25].mxu0  ;;  %v1656_v2 = vadd.f32 %v6516_v63, %v1655_v61  ;;  %v5722_v4 = vpop.f32.mrb[25].mxu1 }
 0x127   :  { %v1090_v5 = vpop.f32.mrb[26].mxu0  ;;  %v1658_v6 = vpop.f32.mrb[26].mxu1 }
 0x128   :  { %v1953_v8 = vmax.f32 %v1088_v62, 0.0  ;;  %v1091_v9 = vadd.f32 %v6516_v63, %v1090_v5  ;;  %v5439_v10 = vpop.f32.mrb[27].mxu0  ;;  %v2095_v11 = vmax.f32 %v1656_v2, 0.0  ;;  %v1659_v12 = vadd.f32 %v6516_v63, %v1658_v6  ;;  %v5723_v13 = vpop.f32.mrb[27].mxu1  ;;  %v6011_v5 = vld [vmem:[%s8037_s0 + $0x120] sm:$0xff]  }
 0x129   :  { %v2411_v14 = vld [vmem:[#allocation2 + $0x50] sm:$0xff] }
 0x12a   :  { %2179 = vst.msk [vmem:[#allocation2 + $0x60] sm:$0xff] %vm2166_vm1, %v1953_v8  ;;  %v1954_v15 = vmax.f32 %v1091_v9, 0.0  ;;  %2321 = vst.msk [vmem:[#allocation2 + $0x4d0] sm:$0xff] %vm2166_vm1, %v2095_v11  ;;  %5545 = vmatmul.mubr.bf16.gmra.mrb[132].mxu0 %v6007_v3  ;;  %2430 = vrot.lane.b32.xlu1 %v2411_v14, %s6151_s28  ;;  %v2096_v16 = vmax.f32 %v1659_v12, 0.0 }
 0x12b   :  { %v2412_v17 = vld [vmem:[#allocation2 + $0x58] sm:$0xff]  ;;  %5829 = vmatmul.mubr.bf16.gmra.mrb[132].mxu1 %v6008_v7  ;;  %5548 = vmatprep.mubr.msk.bf16.mxu0 %vm6149_vm0, %v6148_v0  ;;  %v3133_v21 = vld [vmem:[#allocation2 + $0x4c8] sm:$0xff] }
 0x12c   :  { %2180 = vst.msk [vmem:[#allocation2 + $0x68] sm:$0xff] %vm2166_vm1, %v1954_v15  ;;  %2322 = vst.msk [vmem:[#allocation2 + $0x4d8] sm:$0xff] %vm2166_vm1, %v2096_v16  ;;  %2432 = vrot.lane.b32.xlu0 %v2412_v17, %s6151_s28  ;;  %5832 = vmatprep.mubr.msk.bf16.mxu1 %vm6149_vm0, %v6148_v0 }
 0x12d   :  { %v1095_v20 = vpop.f32.mrb[28].mxu0  ;;  %v1663_v22 = vpop.f32.mrb[28].mxu1 }
 0x12e   :  { %v1096_v23 = vadd.f32 %v6516_v63, %v1095_v20  ;;  %v5442_v24 = vpop.f32.mrb[29].mxu0  ;;  %v1664_v25 = vadd.f32 %v6516_v63, %v1663_v22  ;;  %v5726_v27 = vpop.f32.mrb[29].mxu1 }
 0x12f   :  { %v1098_v28 = vpop.f32.mrb[30].mxu0  ;;  %v1666_v29 = vpop.f32.mrb[30].mxu1 }
 0x130   :  { %v1955_v30 = vmax.f32 %v1096_v23, 0.0  ;;  %v1099_v31 = vadd.f32 %v6516_v63, %v1098_v28  ;;  %3151 = vrot.lane.b32.xlu0 %v3133_v21, %s6151_s28  ;;  %v5443_v32 = vpop.f32.mrb[31].mxu0  ;;  %v2097_v33 = vmax.f32 %v1664_v25, 0.0  ;;  %v1667_v34 = vadd.f32 %v6516_v63, %v1666_v29  ;;  %v5727_v35 = vpop.f32.mrb[31].mxu1  ;;  %v6012_v25 = vld [vmem:[%s8037_s0 + $0x128] sm:$0xff]  }
 0x131   :  { %v2413_v36 = vld [vmem:[#allocation2 + $0x60] sm:$0xff]  ;;  %v3134_v40 = vld [vmem:[#allocation2 + $0x4d0] sm:$0xff] }
 0x132   :  { %2181 = vst.msk [vmem:[#allocation2 + $0x70] sm:$0xff] %vm2166_vm1, %v1955_v30  ;;  %v1956_v37 = vmax.f32 %v1099_v31, 0.0  ;;  %2323 = vst.msk [vmem:[#allocation2 + $0x4e0] sm:$0xff] %vm2166_vm1, %v2097_v33  ;;  %5549 = vmatmul.mubr.bf16.gmra.mrb[136].mxu0 %v6009_v26  ;;  %2434 = vrot.lane.b32.xlu1 %v2413_v36, %s6151_s28  ;;  %v2098_v38 = vmax.f32 %v1667_v34, 0.0 }
 0x133   :  { %v2414_v39 = vld [vmem:[#allocation2 + $0x68] sm:$0xff]  ;;  %5552 = vmatprep.mubr.msk.bf16.mxu0 %vm6149_vm0, %v6148_v0  ;;  %v3135_v43 = vld [vmem:[#allocation2 + $0x4d8] sm:$0xff] }
 0x134   :  { %2182 = vst.msk [vmem:[#allocation2 + $0x78] sm:$0xff] %vm2166_vm1, %v1956_v37  ;;  %2436 = vrot.lane.b32.xlu0 %v2414_v39, %s6151_s28  ;;  %2324 = vst.msk [vmem:[#allocation2 + $0x4e8] sm:$0xff] %vm2166_vm1, %v2098_v38  ;;  %v3119_v38 = vld [vmem:[#allocation2 + $0x4a0] sm:$0xff]  ;;  %v3120_v39 = vld [vmem:[#allocation2 + $0x4a8] sm:$0xff] }
 0x135   :  { %v1103_v42 = vpop.f32.mrb[32].mxu0  ;;  %v1671_v44 = vpop.f32.mrb[32].mxu1  ;;  %3128 = vst.msk [vmem:[#allocation3 + $0x100] sm:$0xff] %vm2166_vm1, %v3119_v38  ;;  %3129 = vst.msk [vmem:[#allocation3 + $0x138] sm:$0xff] %vm2166_vm1, %v3120_v39 }
 0x136   :  { %v1104_v45 = vadd.f32 %v6516_v63, %v1103_v42  ;;  %3153 = vrot.lane.b32.xlu1 %v3134_v40, %s6151_s28  ;;  %v5446_v46 = vpop.f32.mrb[33].mxu0  ;;  %v1672_v48 = vadd.f32 %v6516_v63, %v1671_v44  ;;  %v5730_v49 = vpop.f32.mrb[33].mxu1 }
 0x137   :  { %v1106_v50 = vpop.f32.mrb[34].mxu0  ;;  %v1674_v51 = vpop.f32.mrb[34].mxu1  ;;  %v6013_v46 = vld [vmem:[%s8037_s0 + $0x130] sm:$0xff]  }
 0x138   :  { %v1957_v52 = vmax.f32 %v1104_v45, 0.0  ;;  %v1107_v53 = vadd.f32 %v6516_v63, %v1106_v50  ;;  %3155 = vrot.lane.b32.xlu0 %v3135_v43, %s6151_s28  ;;  %v5447_v54 = vpop.f32.mrb[35].mxu0  ;;  %v2099_v55 = vmax.f32 %v1672_v48, 0.0  ;;  %v1675_v56 = vadd.f32 %v6516_v63, %v1674_v51  ;;  %v5731_v57 = vpop.f32.mrb[35].mxu1 }
 0x139   :  { %v2415_v58 = vld [vmem:[#allocation2 + $0x70] sm:$0xff]  ;;  %v3136_v62 = vld [vmem:[#allocation2 + $0x4e0] sm:$0xff] }
 0x13a   :  { %2183 = vst.msk [vmem:[#allocation2 + $0x80] sm:$0xff] %vm2166_vm1, %v1957_v52  ;;  %v1958_v59 = vmax.f32 %v1107_v53, 0.0  ;;  %5553 = vmatmul.mubr.bf16.gmra.mrb[140].mxu0 %v6010_v47  ;;  %2438 = vrot.lane.b32.xlu1 %v2415_v58, %s6151_s28  ;;  %2325 = vst.msk [vmem:[#allocation2 + $0x4f0] sm:$0xff] %vm2166_vm1, %v2099_v55  ;;  %v2100_v60 = vmax.f32 %v1675_v56, 0.0 }
 0x13b   :  { %v2416_v61 = vld [vmem:[#allocation2 + $0x78] sm:$0xff]  ;;  %5556 = vmatprep.mubr.msk.bf16.mxu0 %vm6149_vm0, %v6148_v0 }
 0x13c   :  { %2184 = vst.msk [vmem:[#allocation2 + $0x88] sm:$0xff] %vm2166_vm1, %v1958_v59  ;;  %2440 = vrot.lane.b32.xlu0 %v2416_v61, %s6151_s28  ;;  %2326 = vst.msk [vmem:[#allocation2 + $0x4f8] sm:$0xff] %vm2166_vm1, %v2100_v60  ;;  %v3121_v59 = vld [vmem:[#allocation2 + $0x4b0] sm:$0xff]  ;;  %v3122_v60 = vld [vmem:[#allocation2 + $0x4b8] sm:$0xff] }
 0x13d   :  { %v1111_v1 = vpop.f32.mrb[36].mxu0  ;;  %v1679_v2 = vpop.f32.mrb[36].mxu1  ;;  %3130 = vst.msk [vmem:[#allocation3 + $0x170] sm:$0xff] %vm2166_vm1, %v3121_v59  ;;  %3131 = vst.msk [vmem:[#allocation3 + $0x1a8] sm:$0xff] %vm2166_vm1, %v3122_v60 }
 0x13e   :  { %v1112_v3 = vadd.f32 %v6516_v63, %v1111_v1  ;;  %3157 = vrot.lane.b32.xlu1 %v3136_v62, %s6151_s28  ;;  %v5450_v4 = vpop.f32.mrb[37].mxu0  ;;  %v1680_v6 = vadd.f32 %v6516_v63, %v1679_v2  ;;  %v5734_v7 = vpop.f32.mrb[37].mxu1 }
 0x13f   :  { %v1114_v8 = vpop.f32.mrb[38].mxu0  ;;  %v1682_v9 = vpop.f32.mrb[38].mxu1 }
 0x140   :  { %v1959_v10 = vmax.f32 %v1112_v3, 0.0  ;;  %v1115_v11 = vadd.f32 %v6516_v63, %v1114_v8  ;;  %v5451_v12 = vpop.f32.mrb[39].mxu0  ;;  %v2101_v13 = vmax.f32 %v1680_v6, 0.0  ;;  %v1683_v14 = vadd.f32 %v6516_v63, %v1682_v9  ;;  %v5735_v15 = vpop.f32.mrb[39].mxu1  ;;  %v6014_v6 = vld [vmem:[%s8037_s0 + $0x138] sm:$0xff]  }
 0x141   :  { %v2417_v16 = vld [vmem:[#allocation2 + $0x80] sm:$0xff] }
 0x142   :  { %2185 = vst.msk [vmem:[#allocation2 + $0x90] sm:$0xff] %vm2166_vm1, %v1959_v10  ;;  %v1960_v17 = vmax.f32 %v1115_v11, 0.0  ;;  %5557 = vmatmul.mubr.bf16.gmra.mrb[144].mxu0 %v6011_v5  ;;  %2442 = vrot.lane.b32.xlu1 %v2417_v16, %s6151_s28  ;;  %2327 = vst.msk [vmem:[#allocation2 + $0x500] sm:$0xff] %vm2166_vm1, %v2101_v13  ;;  %v2102_v18 = vmax.f32 %v1683_v14, 0.0 }
 0x143   :  { %5560 = vmatprep.mubr.msk.bf16.mxu0 %vm6149_vm0, %v6148_v0  ;;  %v2418_v20 = vld [vmem:[#allocation2 + $0x88] sm:$0xff] }
 0x144   :  { %2186 = vst.msk [vmem:[#allocation2 + $0x98] sm:$0xff] %vm2166_vm1, %v1960_v17  ;;  %2328 = vst.msk [vmem:[#allocation2 + $0x508] sm:$0xff] %vm2166_vm1, %v2102_v18 }
 0x145   :  { %v1119_v19 = vpop.f32.mrb[40].mxu0  ;;  %v1687_v21 = vpop.f32.mrb[40].mxu1 }
 0x146   :  { %v1120_v22 = vadd.f32 %v6516_v63, %v1119_v19  ;;  %2444 = vrot.lane.b32.xlu1 %v2418_v20, %s6151_s28  ;;  %v5454_v23 = vpop.f32.mrb[41].mxu0  ;;  %v1688_v24 = vadd.f32 %v6516_v63, %v1687_v21  ;;  %v5738_v26 = vpop.f32.mrb[41].mxu1  ;;  %v3123_v20 = vld [vmem:[#allocation2 + $0x4c0] sm:$0xff] }
 0x147   :  { %v1122_v27 = vpop.f32.mrb[42].mxu0  ;;  %v1690_v28 = vpop.f32.mrb[42].mxu1  ;;  %3132 = vst.msk [vmem:[#allocation3 + $0x1e0] sm:$0xff] %vm2166_vm1, %v3123_v20 }
 0x148   :  { %v1961_v29 = vmax.f32 %v1120_v22, 0.0  ;;  %v1123_v30 = vadd.f32 %v6516_v63, %v1122_v27  ;;  %v5455_v31 = vpop.f32.mrb[43].mxu0  ;;  %v2103_v32 = vmax.f32 %v1688_v24, 0.0  ;;  %v1691_v33 = vadd.f32 %v6516_v63, %v1690_v28  ;;  %v5739_v34 = vpop.f32.mrb[43].mxu1  ;;  %v6015_v28 = vld [vmem:[%s8037_s0 + $0x140] sm:$0xff]  }
 0x149   :  { %v2465_v35 = vld [vmem:[#allocation2 + $0x90] sm:$0xff] }
 0x14a   :  { %2187 = vst.msk [vmem:[#allocation2 + $0xa0] sm:$0xff] %vm2166_vm1, %v1961_v29  ;;  %v1962_v36 = vmax.f32 %v1123_v30, 0.0  ;;  %2329 = vst.msk [vmem:[#allocation2 + $0x510] sm:$0xff] %vm2166_vm1, %v2103_v32  ;;  %5561 = vmatmul.mubr.bf16.gmra.mrb[148].mxu0 %v6012_v25  ;;  %2483 = vrot.lane.b32.xlu0 %v2465_v35, %s6152_s20  ;;  %v2104_v37 = vmax.f32 %v1691_v33, 0.0 }
 0x14b   :  { %v2466_v40 = vld [vmem:[#allocation2 + $0x98] sm:$0xff]  ;;  %5564 = vmatprep.mubr.msk.bf16.mxu0 %vm6149_vm0, %v6148_v0 }
 0x14c   :  { %2188 = vst.msk [vmem:[#allocation2 + $0xa8] sm:$0xff] %vm2166_vm1, %v1962_v36  ;;  %2330 = vst.msk [vmem:[#allocation2 + $0x518] sm:$0xff] %vm2166_vm1, %v2104_v37  ;;  %2485 = vrot.lane.b32.xlu1 %v2466_v40, %s6152_s20 }
 0x14d   :  { %v1127_v41 = vpop.f32.mrb[44].mxu0  ;;  %v1695_v42 = vpop.f32.mrb[44].mxu1 }
 0x14e   :  { %v1128_v43 = vadd.f32 %v6516_v63, %v1127_v41  ;;  %v5458_v44 = vpop.f32.mrb[45].mxu0  ;;  %v1696_v45 = vadd.f32 %v6516_v63, %v1695_v42  ;;  %v5742_v47 = vpop.f32.mrb[45].mxu1 }
 0x14f   :  { %v1130_v48 = vpop.f32.mrb[46].mxu0  ;;  %v1698_v49 = vpop.f32.mrb[46].mxu1 }
 0x150   :  { %v1963_v50 = vmax.f32 %v1128_v43, 0.0  ;;  %v1131_v51 = vadd.f32 %v6516_v63, %v1130_v48  ;;  %v5459_v52 = vpop.f32.mrb[47].mxu0  ;;  %v2105_v53 = vmax.f32 %v1696_v45, 0.0  ;;  %v1699_v54 = vadd.f32 %v6516_v63, %v1698_v49  ;;  %v5743_v55 = vpop.f32.mrb[47].mxu1  ;;  %v6016_v48 = vld [vmem:[%s8037_s0 + $0x148] sm:$0xff]  }
 0x151   :  { %v2467_v56 = vld [vmem:[#allocation2 + $0xa0] sm:$0xff]  ;;  %v3187_v62 = vld [vmem:[#allocation2 + $0x510] sm:$0xff] }
 0x152   :  { %2189 = vst.msk [vmem:[#allocation2 + $0xb0] sm:$0xff] %vm2166_vm1, %v1963_v50  ;;  %v1964_v57 = vmax.f32 %v1131_v51, 0.0  ;;  %2331 = vst.msk [vmem:[#allocation2 + $0x520] sm:$0xff] %vm2166_vm1, %v2105_v53  ;;  %5565 = vmatmul.mubr.bf16.gmra.mrb[152].mxu0 %v6013_v46  ;;  %2487 = vrot.lane.b32.xlu0 %v2467_v56, %s6152_s20  ;;  %v2106_v58 = vmax.f32 %v1699_v54, 0.0 }
 0x153   :  { %v2468_v61 = vld [vmem:[#allocation2 + $0xa8] sm:$0xff]  ;;  %5568 = vmatprep.mubr.msk.bf16.mxu0 %vm6149_vm0, %v6148_v0  ;;  %v3188_v2 = vld [vmem:[#allocation2 + $0x518] sm:$0xff] }
 0x154   :  { %2190 = vst.msk [vmem:[#allocation2 + $0xb8] sm:$0xff] %vm2166_vm1, %v1964_v57  ;;  %2332 = vst.msk [vmem:[#allocation2 + $0x528] sm:$0xff] %vm2166_vm1, %v2106_v58  ;;  %2489 = vrot.lane.b32.xlu1 %v2468_v61, %s6152_s20 }
 0x155   :  { %v1135_v1 = vpop.f32.mrb[48].mxu0  ;;  %v1703_v3 = vpop.f32.mrb[48].mxu1 }
 0x156   :  { %v1136_v4 = vadd.f32 %v6516_v63, %v1135_v1  ;;  %3205 = vrot.lane.b32.xlu0 %v3187_v62, %s6152_s20  ;;  %v5462_v5 = vpop.f32.mrb[49].mxu0  ;;  %v1704_v7 = vadd.f32 %v6516_v63, %v1703_v3  ;;  %v5746_v8 = vpop.f32.mrb[49].mxu1 }
 0x157   :  { %v1138_v9 = vpop.f32.mrb[50].mxu0  ;;  %v1706_v10 = vpop.f32.mrb[50].mxu1  ;;  %v6017_v5 = vld [vmem:[%s8037_s0 + $0x150] sm:$0xff]  }
 0x158   :  { %v1965_v11 = vmax.f32 %v1136_v4, 0.0  ;;  %v1139_v12 = vadd.f32 %v6516_v63, %v1138_v9  ;;  %3207 = vrot.lane.b32.xlu1 %v3188_v2, %s6152_s20  ;;  %v5463_v13 = vpop.f32.mrb[51].mxu0  ;;  %v2107_v14 = vmax.f32 %v1704_v7, 0.0  ;;  %v1707_v15 = vadd.f32 %v6516_v63, %v1706_v10  ;;  %v5747_v16 = vpop.f32.mrb[51].mxu1 }
 0x159   :  { %v2469_v17 = vld [vmem:[#allocation2 + $0xb0] sm:$0xff]  ;;  %v3189_v22 = vld [vmem:[#allocation2 + $0x520] sm:$0xff] }
 0x15a   :  { %2191 = vst.msk [vmem:[#allocation2 + $0xc0] sm:$0xff] %vm2166_vm1, %v1965_v11  ;;  %v1966_v18 = vmax.f32 %v1139_v12, 0.0  ;;  %5569 = vmatmul.mubr.bf16.gmra.mrb[156].mxu0 %v6014_v6  ;;  %2491 = vrot.lane.b32.xlu0 %v2469_v17, %s6152_s20  ;;  %2333 = vst.msk [vmem:[#allocation2 + $0x530] sm:$0xff] %vm2166_vm1, %v2107_v14  ;;  %v2108_v19 = vmax.f32 %v1707_v15, 0.0 }
 0x15b   :  { %v2470_v21 = vld [vmem:[#allocation2 + $0xb8] sm:$0xff]  ;;  %5572 = vmatprep.mubr.msk.bf16.mxu0 %vm6149_vm0, %v6148_v0  ;;  %v3190_v24 = vld [vmem:[#allocation2 + $0x528] sm:$0xff] }
 0x15c   :  { %2192 = vst.msk [vmem:[#allocation2 + $0xc8] sm:$0xff] %vm2166_vm1, %v1966_v18  ;;  %2493 = vrot.lane.b32.xlu1 %v2470_v21, %s6152_s20  ;;  %2334 = vst.msk [vmem:[#allocation2 + $0x538] sm:$0xff] %vm2166_vm1, %v2108_v19 }
 0x15d   :  { %v1143_v23 = vpop.f32.mrb[52].mxu0  ;;  %v1711_v25 = vpop.f32.mrb[52].mxu1 }
 0x15e   :  { %v1144_v26 = vadd.f32 %v6516_v63, %v1143_v23  ;;  %3209 = vrot.lane.b32.xlu0 %v3189_v22, %s6152_s20  ;;  %v5466_v27 = vpop.f32.mrb[53].mxu0  ;;  %v1712_v29 = vadd.f32 %v6516_v63, %v1711_v25  ;;  %v5750_v30 = vpop.f32.mrb[53].mxu1 }
 0x15f   :  { %v1146_v31 = vpop.f32.mrb[54].mxu0  ;;  %v1714_v32 = vpop.f32.mrb[54].mxu1 }
 0x160   :  { %v1967_v33 = vmax.f32 %v1144_v26, 0.0  ;;  %v1147_v34 = vadd.f32 %v6516_v63, %v1146_v31  ;;  %3211 = vrot.lane.b32.xlu1 %v3190_v24, %s6152_s20  ;;  %v5467_v35 = vpop.f32.mrb[55].mxu0  ;;  %v2109_v36 = vmax.f32 %v1712_v29, 0.0  ;;  %v1715_v37 = vadd.f32 %v6516_v63, %v1714_v32  ;;  %v5751_v38 = vpop.f32.mrb[55].mxu1  ;;  %v6018_v24 = vld [vmem:[%s8037_s0 + $0x158] sm:$0xff]  }
 0x161   :  { %v2471_v39 = vld [vmem:[#allocation2 + $0xc0] sm:$0xff] }
 0x162   :  { %2193 = vst.msk [vmem:[#allocation2 + $0xd0] sm:$0xff] %vm2166_vm1, %v1967_v33  ;;  %v1968_v40 = vmax.f32 %v1147_v34, 0.0  ;;  %5573 = vmatmul.mubr.bf16.gmra.mrb[160].mxu0 %v6015_v28  ;;  %2495 = vrot.lane.b32.xlu0 %v2471_v39, %s6152_s20  ;;  %2335 = vst.msk [vmem:[#allocation2 + $0x540] sm:$0xff] %vm2166_vm1, %v2109_v36  ;;  %v2110_v41 = vmax.f32 %v1715_v37, 0.0 }
 0x163   :  { %v2472_v42 = vld [vmem:[#allocation2 + $0xc8] sm:$0xff]  ;;  %5576 = vmatprep.mubr.msk.bf16.mxu0 %vm6149_vm0, %v6148_v0 }
 0x164   :  { %2194 = vst.msk [vmem:[#allocation2 + $0xd8] sm:$0xff] %vm2166_vm1, %v1968_v40  ;;  %2497 = vrot.lane.b32.xlu1 %v2472_v42, %s6152_s20  ;;  %2336 = vst.msk [vmem:[#allocation2 + $0x548] sm:$0xff] %vm2166_vm1, %v2110_v41  ;;  %v6833_v41 = vld [vmem:[%s8038_s2] ss:$0 sm:$0xff] }
 0x165   :  { %v1151_v43 = vpop.f32.mrb[56].mxu0  ;;  %v1719_v44 = vpop.f32.mrb[56].mxu1 }
 0x166   :  { %v1152_v45 = vadd.f32 %v6516_v63, %v1151_v43  ;;  %v5470_v46 = vpop.f32.mrb[57].mxu0  ;;  %v1720_v47 = vadd.f32 %v6516_v63, %v1719_v44  ;;  %v5754_v49 = vpop.f32.mrb[57].mxu1  ;;  %v6019_v44 = vld [vmem:[%s8037_s0 + $0x160] sm:$0xff]  }
 0x167   :  { %v1154_v50 = vpop.f32.mrb[58].mxu0  ;;  %v1722_v51 = vpop.f32.mrb[58].mxu1 }
 0x168   :  { %v1969_v52 = vmax.f32 %v1152_v45, 0.0  ;;  %v1155_v53 = vadd.f32 %v6516_v63, %v1154_v50  ;;  %v5471_v54 = vpop.f32.mrb[59].mxu0  ;;  %v2111_v55 = vmax.f32 %v1720_v47, 0.0  ;;  %v1723_v56 = vadd.f32 %v6516_v63, %v1722_v51  ;;  %v5755_v57 = vpop.f32.mrb[59].mxu1 }
 0x169   :  { %v2473_v58 = vld [vmem:[#allocation2 + $0xd0] sm:$0xff] }
 0x16a   :  { %2195 = vst.msk [vmem:[#allocation2 + $0xe0] sm:$0xff] %vm2166_vm1, %v1969_v52  ;;  %v1970_v59 = vmax.f32 %v1155_v53, 0.0  ;;  %2337 = vst.msk [vmem:[#allocation2 + $0x550] sm:$0xff] %vm2166_vm1, %v2111_v55  ;;  %5577 = vmatmul.mubr.bf16.gmra.mrb[164].mxu0 %v6016_v48  ;;  %2499 = vrot.lane.b32.xlu1 %v2473_v58, %s6152_s20  ;;  %v2112_v60 = vmax.f32 %v1723_v56, 0.0 }
 0x16b   :  { %v2520_v61 = vld [vmem:[#allocation2 + $0xd8] sm:$0xff]  ;;  %5580 = vmatprep.mubr.msk.bf16.mxu0 %vm6149_vm0, %v6148_v0 }
 0x16c   :  { %2196 = vst.msk [vmem:[#allocation2 + $0xe8] sm:$0xff] %vm2166_vm1, %v1970_v59  ;;  %2338 = vst.msk [vmem:[#allocation2 + $0x558] sm:$0xff] %vm2166_vm1, %v2112_v60  ;;  %2538 = vrot.lane.b32.xlu0 %v2520_v61, %s6150_s11 }
 0x16d   :  { %v1159_v62 = vpop.f32.mrb[60].mxu0  ;;  %v1727_v1 = vpop.f32.mrb[60].mxu1 }
 0x16e   :  { %v1160_v2 = vadd.f32 %v6516_v63, %v1159_v62  ;;  %v5474_v3 = vpop.f32.mrb[61].mxu0  ;;  %v1728_v4 = vadd.f32 %v6516_v63, %v1727_v1  ;;  %v5758_v6 = vpop.f32.mrb[61].mxu1  ;;  %v6020_v1 = vld [vmem:[%s8037_s0 + $0x168] sm:$0xff]  }
 0x16f   :  { %v1162_v7 = vpop.f32.mrb[62].mxu0  ;;  %v1730_v8 = vpop.f32.mrb[62].mxu1 }
 0x170   :  { %v1971_v9 = vmax.f32 %v1160_v2, 0.0  ;;  %v1163_v10 = vadd.f32 %v6516_v63, %v1162_v7  ;;  %v5475_v11 = vpop.f32.mrb[63].mxu0  ;;  %v2113_v12 = vmax.f32 %v1728_v4, 0.0  ;;  %v1731_v13 = vadd.f32 %v6516_v63, %v1730_v8  ;;  %v5759_v14 = vpop.f32.mrb[63].mxu1 }
 0x171   :  { %v2521_v15 = vld [vmem:[#allocation2 + $0xe0] sm:$0xff] }
 0x172   :  { %2197 = vst.msk [vmem:[#allocation2 + $0xf0] sm:$0xff] %vm2166_vm1, %v1971_v9  ;;  %v1972_v16 = vmax.f32 %v1163_v10, 0.0  ;;  %2339 = vst.msk [vmem:[#allocation2 + $0x560] sm:$0xff] %vm2166_vm1, %v2113_v12  ;;  %5581 = vmatmul.mubr.bf16.gmra.mrb[168].mxu0 %v6017_v5  ;;  %2540 = vrot.lane.b32.xlu1 %v2521_v15, %s6150_s11  ;;  %v2114_v17 = vmax.f32 %v1731_v13, 0.0 }
 0x173   :  { %v2522_v18 = vld [vmem:[#allocation2 + $0xe8] sm:$0xff]  ;;  %5584 = vmatprep.mubr.msk.bf16.mxu0 %vm6149_vm0, %v6148_v0  ;;  %v3241_v20 = vld [vmem:[#allocation2 + $0x558] sm:$0xff] }
 0x174   :  { %2198 = vst.msk [vmem:[#allocation2 + $0xf8] sm:$0xff] %vm2166_vm1, %v1972_v16  ;;  %2542 = vrot.lane.b32.xlu0 %v2522_v18, %s6150_s11  ;;  %2340 = vst.msk [vmem:[#allocation2 + $0x568] sm:$0xff] %vm2166_vm1, %v2114_v17 }
 0x175   :  { %v1167_v19 = vpop.f32.mrb[64].mxu0  ;;  %v1735_v21 = vpop.f32.mrb[64].mxu1 }
 0x176   :  { %v1168_v22 = vadd.f32 %v6516_v63, %v1167_v19  ;;  %v5478_v23 = vpop.f32.mrb[65].mxu0  ;;  %v1736_v25 = vadd.f32 %v6516_v63, %v1735_v21  ;;  %v5762_v27 = vpop.f32.mrb[65].mxu1  ;;  %v6021_v21 = vld [vmem:[%s8037_s0 + $0x170] sm:$0xff]  }
 0x177   :  { %v1170_v26 = vpop.f32.mrb[66].mxu0  ;;  %v1738_v32 = vpop.f32.mrb[66].mxu1 }
 0x178   :  { %v1973_v28 = vmax.f32 %v1168_v22, 0.0  ;;  %v1171_v29 = vadd.f32 %v6516_v63, %v1170_v26  ;;  %3259 = vrot.lane.b32.xlu0 %v3241_v20, %s6150_s11  ;;  %v5479_v30 = vpop.f32.mrb[67].mxu0  ;;  %v2115_v31 = vmax.f32 %v1736_v25, 0.0  ;;  %v1739_v34 = vadd.f32 %v6516_v63, %v1738_v32  ;;  %v5763_v35 = vpop.f32.mrb[67].mxu1 }
 0x179   :  { %v2523_v33 = vld [vmem:[#allocation2 + $0xf0] sm:$0xff]  ;;  %v3242_v38 = vld [vmem:[#allocation2 + $0x560] sm:$0xff]  ;;  %v6864_v15 = vpop.permute.xlu1 %3093 }
 0x17a   :  { %2199 = vst.msk [vmem:[#allocation2 + $0x100] sm:$0xff] %vm2166_vm1, %v1973_v28  ;;  %v1974_v36 = vmax.f32 %v1171_v29, 0.0  ;;  %5585 = vmatmul.mubr.bf16.gmra.mrb[172].mxu0 %v6018_v24  ;;  %2544 = vrot.lane.b32.xlu1 %v2523_v33, %s6150_s11  ;;  %2341 = vst.msk [vmem:[#allocation2 + $0x570] sm:$0xff] %vm2166_vm1, %v2115_v31  ;;  %v2116_v39 = vmax.f32 %v1739_v34, 0.0 }
 0x17b   :  { %v2524_v37 = vld [vmem:[#allocation2 + $0xf8] sm:$0xff]  ;;  %5588 = vmatprep.mubr.msk.bf16.mxu0 %vm6149_vm0, %v6148_v0 }
 0x17c   :  { %2200 = vst.msk [vmem:[#allocation2 + $0x108] sm:$0xff] %vm2166_vm1, %v1974_v36  ;;  %2546 = vrot.lane.b32.xlu0 %v2524_v37, %s6150_s11  ;;  %2342 = vst.msk [vmem:[#allocation2 + $0x578] sm:$0xff] %vm2166_vm1, %v2116_v39  ;;  %v6881_v36 = vpop.permute.xlu0 %3095 }
 0x17d   :  { %v1175_v63 = vpop.f32.mrb[68].mxu0  ;;  %v1743_v40 = vpop.f32.mrb[68].mxu1 }
 0x17e   :  { %v1176_v42 = vadd.f32 %v6833_v41, %v1175_v63  ;;  %3261 = vrot.lane.b32.xlu1 %v3242_v38, %s6150_s11  ;;  %v5482_v43 = vpop.f32.mrb[69].mxu0  ;;  %v1744_v45 = vadd.f32 %v6833_v41, %v1743_v40  ;;  %v5766_v46 = vpop.f32.mrb[69].mxu1 }
 0x17f   :  { %v1178_v47 = vpop.f32.mrb[70].mxu0  ;;  %v1746_v48 = vpop.f32.mrb[70].mxu1 }
 0x180   :  { %v1975_v49 = vmax.f32 %v1176_v42, 0.0  ;;  %v1179_v50 = vadd.f32 %v6833_v41, %v1178_v47  ;;  %v5483_v51 = vpop.f32.mrb[71].mxu0  ;;  %v2117_v52 = vmax.f32 %v1744_v45, 0.0  ;;  %v1747_v53 = vadd.f32 %v6833_v41, %v1746_v48  ;;  %v5767_v54 = vpop.f32.mrb[71].mxu1  ;;  %v6022_v42 = vld [vmem:[%s8037_s0 + $0x178] sm:$0xff]  }
 0x181   :  { %v2525_v55 = vld [vmem:[#allocation2 + $0x100] sm:$0xff] }
 0x182   :  { %2201 = vst.msk [vmem:[#allocation2 + $0x110] sm:$0xff] %vm2166_vm1, %v1975_v49  ;;  %v1976_v56 = vmax.f32 %v1179_v50, 0.0  ;;  %5589 = vmatmul.mubr.bf16.gmra.mrb[176].mxu0 %v6019_v44  ;;  %2548 = vrot.lane.b32.xlu1 %v2525_v55, %s6150_s11  ;;  %2343 = vst.msk [vmem:[#allocation2 + $0x580] sm:$0xff] %vm2166_vm1, %v2117_v52  ;;  %v2118_v57 = vmax.f32 %v1747_v53, 0.0 }
 0x183   :  { %v2526_v58 = vld [vmem:[#allocation2 + $0x108] sm:$0xff]  ;;  %5592 = vmatprep.mubr.msk.bf16.mxu0 %vm6149_vm0, %v6148_v0 }
 0x184   :  { %2202 = vst.msk [vmem:[#allocation2 + $0x118] sm:$0xff] %vm2166_vm1, %v1976_v56  ;;  %2550 = vrot.lane.b32.xlu0 %v2526_v58, %s6150_s11  ;;  %2344 = vst.msk [vmem:[#allocation2 + $0x588] sm:$0xff] %vm2166_vm1, %v2118_v57 }
 0x185   :  { %v1183_v59 = vpop.f32.mrb[72].mxu0  ;;  %v1751_v60 = vpop.f32.mrb[72].mxu1 }
 0x186   :  { %v1184_v61 = vadd.f32 %v6833_v41, %v1183_v59  ;;  %v5486_v62 = vpop.f32.mrb[73].mxu0  ;;  %v1752_v2 = vadd.f32 %v6833_v41, %v1751_v60  ;;  %v5770_v3 = vpop.f32.mrb[73].mxu1 }
 0x187   :  { %v1186_v4 = vpop.f32.mrb[74].mxu0  ;;  %v1754_v5 = vpop.f32.mrb[74].mxu1 }
 0x188   :  { %v1977_v6 = vmax.f32 %v1184_v61, 0.0  ;;  %v1187_v7 = vadd.f32 %v6833_v41, %v1186_v4  ;;  %v5487_v8 = vpop.f32.mrb[75].mxu0  ;;  %v2119_v9 = vmax.f32 %v1752_v2, 0.0  ;;  %v1755_v10 = vadd.f32 %v6833_v41, %v1754_v5  ;;  %v5771_v11 = vpop.f32.mrb[75].mxu1 }
 0x189   :  { %v2527_v12 = vld [vmem:[#allocation2 + $0x110] sm:$0xff] }
 0x18a   :  { %2203 = vst.msk [vmem:[#allocation2 + $0x120] sm:$0xff] %vm2166_vm1, %v1977_v6  ;;  %v1978_v13 = vmax.f32 %v1187_v7, 0.0  ;;  %5593 = vmatmul.mubr.bf16.gmra.mrb[180].mxu0 %v6020_v1  ;;  %2552 = vrot.lane.b32.xlu1 %v2527_v12, %s6150_s11  ;;  %2345 = vst.msk [vmem:[#allocation2 + $0x590] sm:$0xff] %vm2166_vm1, %v2119_v9  ;;  %v2120_v14 = vmax.f32 %v1755_v10, 0.0  ;;  %v6023_v1 = vld [vmem:[%s8037_s0 + $0x180] sm:$0xff]  }
 0x18b   :  { %5596 = vmatprep.mubr.msk.bf16.mxu0 %vm6149_vm0, %v6148_v0  ;;  %v2528_v17 = vld [vmem:[#allocation2 + $0x118] sm:$0xff] }
 0x18c   :  { %2204 = vst.msk [vmem:[#allocation2 + $0x128] sm:$0xff] %vm2166_vm1, %v1978_v13  ;;  %2346 = vst.msk [vmem:[#allocation2 + $0x598] sm:$0xff] %vm2166_vm1, %v2120_v14 }
 0x18d   :  { %v1191_v16 = vpop.f32.mrb[76].mxu0  ;;  %v1759_v18 = vpop.f32.mrb[76].mxu1 }
 0x18e   :  { %v1192_v19 = vadd.f32 %v6833_v41, %v1191_v16  ;;  %2554 = vrot.lane.b32.xlu1 %v2528_v17, %s6150_s11  ;;  %v5490_v20 = vpop.f32.mrb[77].mxu0  ;;  %v1760_v22 = vadd.f32 %v6833_v41, %v1759_v18  ;;  %v5774_v23 = vpop.f32.mrb[77].mxu1 }
 0x18f   :  { %v1194_v24 = vpop.f32.mrb[78].mxu0  ;;  %v1762_v25 = vpop.f32.mrb[78].mxu1 }
 0x190   :  { %v1979_v26 = vmax.f32 %v1192_v19, 0.0  ;;  %v1195_v27 = vadd.f32 %v6833_v41, %v1194_v24  ;;  %v5491_v28 = vpop.f32.mrb[79].mxu0  ;;  %v2121_v29 = vmax.f32 %v1760_v22, 0.0  ;;  %v1763_v30 = vadd.f32 %v6833_v41, %v1762_v25  ;;  %v5775_v31 = vpop.f32.mrb[79].mxu1  ;;  %v6024_v24 = vld [vmem:[%s8037_s0 + $0x188] sm:$0xff]  }
 0x191   :  { %v2575_v32 = vld [vmem:[#allocation2 + $0x120] sm:$0xff] }
 0x192   :  { %2205 = vst.msk [vmem:[#allocation2 + $0x130] sm:$0xff] %vm2166_vm1, %v1979_v26  ;;  %v1980_v33 = vmax.f32 %v1195_v27, 0.0  ;;  %5597 = vmatmul.mubr.bf16.gmra.mrb[184].mxu0 %v6021_v21  ;;  %2347 = vst.msk [vmem:[#allocation2 + $0x5a0] sm:$0xff] %vm2166_vm1, %v2121_v29  ;;  %v2122_v34 = vmax.f32 %v1763_v30, 0.0 }
 0x193   :  { %2584 = vst.msk [vmem:[#allocation3 + $0x8] sm:$0xff] %vm2166_vm1, %v2575_v32  ;;  %5600 = vmatprep.mubr.msk.bf16.mxu0 %vm6149_vm0, %v6148_v0  ;;  %v2576_v35 = vld [vmem:[#allocation2 + $0x128] sm:$0xff] }
 0x194   :  { %2206 = vst.msk [vmem:[#allocation2 + $0x138] sm:$0xff] %vm2166_vm1, %v1980_v33  ;;  %2348 = vst.msk [vmem:[#allocation2 + $0x5a8] sm:$0xff] %vm2166_vm1, %v2122_v34 }
 0x195   :  { %2585 = vst.msk [vmem:[#allocation3 + $0x40] sm:$0xff] %vm2166_vm1, %v2576_v35  ;;  %v1199_v37 = vpop.f32.mrb[80].mxu0  ;;  %v1767_v38 = vpop.f32.mrb[80].mxu1 }
 0x196   :  { %v1200_v39 = vadd.f32 %v6833_v41, %v1199_v37  ;;  %v2429_v63 = vpop.permute.xlu1 %2428  ;;  %v5494_v40 = vpop.f32.mrb[81].mxu0  ;;  %v1768_v43 = vadd.f32 %v6833_v41, %v1767_v38 }
 0x197   :  { %2456 = vst.msk [vmem:[#allocation3] sm:$0xff] %vm2455_vm2, %v2429_v63  ;;  %v1202_v44 = vpop.f32.mrb[82].mxu0  ;;  %v5778_v45 = vpop.f32.mrb[81].mxu1 }
 0x198   :  { %v1981_v46 = vmax.f32 %v1200_v39, 0.0  ;;  %v1203_v47 = vadd.f32 %v6833_v41, %v1202_v44  ;;  %v5495_v48 = vpop.f32.mrb[83].mxu0  ;;  %v2123_v49 = vmax.f32 %v1768_v43, 0.0  ;;  %v1770_v50 = vpop.f32.mrb[82].mxu1  ;;  %v6025_v43 = vld [vmem:[%s8037_s0 + $0x190] sm:$0xff]  }
 0x199   :  { %v1771_v51 = vadd.f32 %v6833_v41, %v1770_v50  ;;  %v5779_v52 = vpop.f32.mrb[83].mxu1  ;;  %v2577_v53 = vld [vmem:[#allocation2 + $0x130] sm:$0xff]  ;;  %v6041_v50 = vld [vmem:[%s8039_s3 + $0x40] sm:$0xff]  }
 0x19a   :  { %2207 = vst.msk [vmem:[#allocation2 + $0x140] sm:$0xff] %vm2166_vm1, %v1981_v46  ;;  %v1982_v54 = vmax.f32 %v1203_v47, 0.0  ;;  %5601 = vmatmul.mubr.bf16.gmra.mrb[188].mxu0 %v6022_v42  ;;  %2349 = vst.msk [vmem:[#allocation2 + $0x5b0] sm:$0xff] %vm2166_vm1, %v2123_v49  ;;  %5197 = vmatprep.subr.bf16.mxu1 %v6041_v50 }
 0x19b   :  { %2586 = vst.msk [vmem:[#allocation3 + $0x78] sm:$0xff] %vm2166_vm1, %v2577_v53  ;;  %5604 = vmatprep.mubr.msk.bf16.mxu0 %vm6149_vm0, %v6148_v0  ;;  %v2124_v55 = vmax.f32 %v1771_v51, 0.0  ;;  %v2578_v56 = vld [vmem:[#allocation2 + $0x138] sm:$0xff]  ;;  %v6042_v53 = vld [vmem:[%s8039_s3] sm:$0xff]  }
 0x19c   :  { %2208 = vst.msk [vmem:[#allocation2 + $0x148] sm:$0xff] %vm2166_vm1, %v1982_v54  ;;  %v2431_v57 = vpop.permute.xlu1 %2430  ;;  %2587 = vst.msk [vmem:[#allocation3 + $0xb0] sm:$0xff] %vm2166_vm1, %v2578_v56  ;;  %5198 = vmatpush3.bf16.msra.mxu1 %v6042_v53 }
 0x19d   :  { %2457 = vst.msk [vmem:[#allocation3 + $0x38] sm:$0xff] %vm2455_vm2, %v2431_v57  ;;  %v1207_v58 = vpop.f32.mrb[84].mxu0  ;;  %v1775_v59 = vpop.f32.mrb[84].mxu1 }
 0x19e   :  { %2350 = vst.msk [vmem:[#allocation2 + $0x5b8] sm:$0xff] %vm2166_vm1, %v2124_v55  ;;  %v1208_v60 = vadd.f32 %v6833_v41, %v1207_v58  ;;  %v2433_v61 = vpop.permute.xlu0 %2432  ;;  %v5498_v62 = vpop.f32.mrb[85].mxu0  ;;  %v1776_v2 = vadd.f32 %v6833_v41, %v1775_v59 }
 0x19f   :  { %2458 = vst.msk [vmem:[#allocation3 + $0x70] sm:$0xff] %vm2455_vm2, %v2433_v61  ;;  %v1210_v3 = vpop.f32.mrb[86].mxu0  ;;  %v5782_v4 = vpop.f32.mrb[85].mxu1 }
 0x1a0   :  { %v1983_v5 = vmax.f32 %v1208_v60, 0.0  ;;  %v1211_v6 = vadd.f32 %v6833_v41, %v1210_v3  ;;  %v5499_v7 = vpop.f32.mrb[87].mxu0  ;;  %v2125_v8 = vmax.f32 %v1776_v2, 0.0  ;;  %v1778_v9 = vpop.f32.mrb[86].mxu1 }
 0x1a1   :  { %v1779_v10 = vadd.f32 %v6833_v41, %v1778_v9  ;;  %v5783_v11 = vpop.f32.mrb[87].mxu1  ;;  %v2579_v12 = vld [vmem:[#allocation2 + $0x140] sm:$0xff] }
 0x1a2   :  { %2209 = vst.msk [vmem:[#allocation2 + $0x150] sm:$0xff] %vm2166_vm1, %v1983_v5  ;;  %v1984_v13 = vmax.f32 %v1211_v6, 0.0  ;;  %5605 = vmatmul.mubr.bf16.gmra.mrb[192].mxu0 %v6023_v1  ;;  %v3152_v14 = vpop.permute.xlu0 %3151  ;;  %2351 = vst.msk [vmem:[#allocation2 + $0x5c0] sm:$0xff] %vm2166_vm1, %v2125_v8  ;;  %v6026_v5 = vld [vmem:[%s8037_s0 + $0x198] sm:$0xff]   ;;  %v3295_v6 = vld [vmem:[#allocation2 + $0x5a0] sm:$0xff] }
 0x1a3   :  { %2588 = vst.msk [vmem:[#allocation3 + $0xe8] sm:$0xff] %vm2166_vm1, %v2579_v12  ;;  %5608 = vmatprep.mubr.msk.bf16.mxu0 %vm6149_vm0, %v6148_v0  ;;  %v2126_v16 = vmax.f32 %v1779_v10, 0.0  ;;  %v2580_v17 = vld [vmem:[#allocation2 + $0x148] sm:$0xff]  ;;  %3304 = vst.msk [vmem:[#allocation3 + $0x28] sm:$0xff] %vm2166_vm1, %v3295_v6 }
 0x1a4   :  { %3178 = vst.msk [vmem:[#allocation3 + $0x20] sm:$0xff] %vm2455_vm2, %v3152_v14  ;;  %v2435_v18 = vpop.permute.xlu1 %2434 }
 0x1a5   :  { %2210 = vst.msk [vmem:[#allocation2 + $0x158] sm:$0xff] %vm2166_vm1, %v1984_v13  ;;  %2589 = vst.msk [vmem:[#allocation3 + $0x120] sm:$0xff] %vm2166_vm1, %v2580_v17  ;;  %v1215_v19 = vpop.f32.mrb[88].mxu0  ;;  %v1783_v20 = vpop.f32.mrb[88].mxu1 }
 0x1a6   :  { %2459 = vst.msk [vmem:[#allocation3 + $0xa8] sm:$0xff] %vm2455_vm2, %v2435_v18  ;;  %v1216_v21 = vadd.f32 %v6833_v41, %v1215_v19  ;;  %v2437_v22 = vpop.permute.xlu0 %2436  ;;  %v5502_v23 = vpop.f32.mrb[89].mxu0  ;;  %v1784_v25 = vadd.f32 %v6833_v41, %v1783_v20 }
 0x1a7   :  { %2352 = vst.msk [vmem:[#allocation2 + $0x5c8] sm:$0xff] %vm2166_vm1, %v2126_v16  ;;  %v1218_v26 = vpop.f32.mrb[90].mxu0  ;;  %v5786_v27 = vpop.f32.mrb[89].mxu1 }
 0x1a8   :  { %2460 = vst.msk [vmem:[#allocation3 + $0xe0] sm:$0xff] %vm2455_vm2, %v2437_v22  ;;  %v1985_v28 = vmax.f32 %v1216_v21, 0.0  ;;  %v1219_v29 = vadd.f32 %v6833_v41, %v1218_v26  ;;  %v3154_v30 = vpop.permute.xlu1 %3153  ;;  %v5503_v31 = vpop.f32.mrb[91].mxu0  ;;  %v2127_v32 = vmax.f32 %v1784_v25, 0.0  ;;  %v3296_v27 = vld [vmem:[#allocation2 + $0x5a8] sm:$0xff] }
 0x1a9   :  { %3179 = vst.msk [vmem:[#allocation3 + $0x58] sm:$0xff] %vm2455_vm2, %v3154_v30  ;;  %v1786_v33 = vpop.f32.mrb[90].mxu1  ;;  %v2581_v34 = vld [vmem:[#allocation2 + $0x150] sm:$0xff] }
 0x1aa   :  { %2211 = vst.msk [vmem:[#allocation2 + $0x160] sm:$0xff] %vm2166_vm1, %v1985_v28  ;;  %v1986_v35 = vmax.f32 %v1219_v29, 0.0  ;;  %5609 = vmatmul.mubr.bf16.gmra.mrb[196].mxu0 %v6024_v24  ;;  %v3156_v37 = vpop.permute.xlu0 %3155  ;;  %2353 = vst.msk [vmem:[#allocation2 + $0x5d0] sm:$0xff] %vm2166_vm1, %v2127_v32  ;;  %v1787_v38 = vadd.f32 %v6833_v41, %v1786_v33  ;;  %v5787_v39 = vpop.f32.mrb[91].mxu1  ;;  %v3297_v28 = vld [vmem:[#allocation2 + $0x5b0] sm:$0xff] }
 0x1ab   :  { %2590 = vst.msk [vmem:[#allocation3 + $0x158] sm:$0xff] %vm2166_vm1, %v2581_v34  ;;  %5612 = vmatprep.mubr.msk.bf16.mxu0 %vm6149_vm0, %v6148_v0  ;;  %3305 = vst.msk [vmem:[#allocation3 + $0x60] sm:$0xff] %vm2166_vm1, %v3296_v27 }
 0x1ac   :  { %3180 = vst.msk [vmem:[#allocation3 + $0x90] sm:$0xff] %vm2455_vm2, %v3156_v37  ;;  %v2582_v63 = vld [vmem:[#allocation2 + $0x158] sm:$0xff]  ;;  %v2439_v40 = vpop.permute.xlu1 %2438  ;;  %v2128_v42 = vmax.f32 %v1787_v38, 0.0  ;;  %v6027_v37 = vld [vmem:[%s8037_s0 + $0x1a0] sm:$0xff]  }
 0x1ad   :  { %2212 = vst.msk [vmem:[#allocation2 + $0x168] sm:$0xff] %vm2166_vm1, %v1986_v35  ;;  %2591 = vst.msk [vmem:[#allocation3 + $0x190] sm:$0xff] %vm2166_vm1, %v2582_v63  ;;  %v1223_v44 = vpop.f32.mrb[92].mxu0  ;;  %v1791_v45 = vpop.f32.mrb[92].mxu1 }
 0x1ae   :  { %2461 = vst.msk [vmem:[#allocation3 + $0x118] sm:$0xff] %vm2455_vm2, %v2439_v40  ;;  %v1224_v46 = vadd.f32 %v6833_v41, %v1223_v44  ;;  %v2441_v47 = vpop.permute.xlu0 %2440  ;;  %v5506_v48 = vpop.f32.mrb[93].mxu0  ;;  %v1792_v49 = vadd.f32 %v6833_v41, %v1791_v45  ;;  %v6045_v40 = vld [vmem:[%s8037_s0 + $0x348] sm:$0xff]  }
 0x1af   :  { %2354 = vst.msk [vmem:[#allocation2 + $0x5d8] sm:$0xff] %vm2166_vm1, %v2128_v42  ;;  %v1226_v51 = vpop.f32.mrb[94].mxu0  ;;  %v5790_v52 = vpop.f32.mrb[93].mxu1  ;;  %3306 = vst.msk [vmem:[#allocation3 + $0x98] sm:$0xff] %vm2166_vm1, %v3297_v28  ;;  %5833 = vmatmul.mubr.bf16.gmra.mrb[136].mxu1 %v6045_v40 }
 0x1b0   :  { %2462 = vst.msk [vmem:[#allocation3 + $0x150] sm:$0xff] %vm2455_vm2, %v2441_v47  ;;  %v1987_v54 = vmax.f32 %v1224_v46, 0.0  ;;  %v1227_v55 = vadd.f32 %v6833_v41, %v1226_v51  ;;  %v3158_v56 = vpop.permute.xlu1 %3157  ;;  %v5507_v57 = vpop.f32.mrb[95].mxu0  ;;  %v2129_v58 = vmax.f32 %v1792_v49, 0.0  ;;  %5836 = vmatprep.mubr.msk.bf16.mxu1 %vm6149_vm0, %v6148_v0 }
 0x1b1   :  { %3181 = vst.msk [vmem:[#allocation3 + $0xc8] sm:$0xff] %vm2455_vm2, %v3158_v56  ;;  %v1794_v59 = vpop.f32.mrb[94].mxu1  ;;  %v2583_v60 = vld [vmem:[#allocation2 + $0x160] sm:$0xff] }
 0x1b2   :  { %2213 = vst.msk [vmem:[#allocation2 + $0x170] sm:$0xff] %vm2166_vm1, %v1987_v54  ;;  %v1988_v61 = vmax.f32 %v1227_v55, 0.0  ;;  %5613 = vmatmul.mubr.bf16.gmra.mrb[200].mxu0 %v6025_v43  ;;  %2355 = vst.msk [vmem:[#allocation2 + $0x5e0] sm:$0xff] %vm2166_vm1, %v2129_v58  ;;  %v1795_v62 = vadd.f32 %v6833_v41, %v1794_v59  ;;  %v5791_v1 = vpop.f32.mrb[95].mxu1  ;;  %v3298_v55 = vld [vmem:[#allocation2 + $0x5b8] sm:$0xff] }
 0x1b3   :  { %2592 = vst.msk [vmem:[#allocation3 + $0x1c8] sm:$0xff] %vm2166_vm1, %v2583_v60  ;;  %5616 = vmatprep.mubr.msk.bf16.mxu0 %vm6149_vm0, %v6148_v0  ;;  %3307 = vst.msk [vmem:[#allocation3 + $0xd0] sm:$0xff] %vm2166_vm1, %v3298_v55 }
 0x1b4   :  { %v2593_v2 = vld [vmem:[#allocation2 + $0x168] sm:$0xff]  ;;  %2214 = vst.msk [vmem:[#allocation2 + $0x178] sm:$0xff] %vm2166_vm1, %v1988_v61  ;;  %v2443_v3 = vpop.permute.xlu1 %2442  ;;  %v2130_v4 = vmax.f32 %v1795_v62, 0.0 }
 0x1b5   :  { %2611 = vrot.lane.b32.xlu0 %v2593_v2, %s6151_s28  ;;  %2463 = vst.msk [vmem:[#allocation3 + $0x188] sm:$0xff] %vm2455_vm2, %v2443_v3  ;;  %v1231_v7 = vpop.f32.mrb[96].mxu0  ;;  %v1799_v8 = vpop.f32.mrb[96].mxu1  ;;  %v6028_v61 = vld [vmem:[%s8037_s0 + $0x1a8] sm:$0xff]  }
 0x1b6   :  { %v1232_v9 = vadd.f32 %v6833_v41, %v1231_v7  ;;  %2356 = vst.msk [vmem:[#allocation2 + $0x5e8] sm:$0xff] %vm2166_vm1, %v2130_v4  ;;  %v5510_v10 = vpop.f32.mrb[97].mxu0  ;;  %v1800_v11 = vadd.f32 %v6833_v41, %v1799_v8  ;;  %v5794_v12 = vpop.f32.mrb[97].mxu1  ;;  %v6047_v4 = vld [vmem:[%s8037_s0 + $0x350] sm:$0xff]  }
 0x1b7   :  { %v1234_v13 = vpop.f32.mrb[98].mxu0  ;;  %v1802_v14 = vpop.f32.mrb[98].mxu1  ;;  %5837 = vmatmul.mubr.bf16.gmra.mrb[140].mxu1 %v6047_v4  ;;  %v6052_v4 = vld [vmem:[%s8039_s3 + $0x8] sm:$0xff]  }
 0x1b8   :  { %v1989_v16 = vmax.f32 %v1232_v9, 0.0  ;;  %v1235_v17 = vadd.f32 %v6833_v41, %v1234_v13  ;;  %v2445_v18 = vpop.permute.xlu1 %2444  ;;  %v5511_v19 = vpop.f32.mrb[99].mxu0  ;;  %v2131_v20 = vmax.f32 %v1800_v11, 0.0  ;;  %v1803_v21 = vadd.f32 %v6833_v41, %v1802_v14  ;;  %5840 = vmatprep.mubr.msk.bf16.mxu1 %vm6149_vm0, %v6148_v0 }
 0x1b9   :  { %2464 = vst.msk [vmem:[#allocation3 + $0x1c0] sm:$0xff] %vm2455_vm2, %v2445_v18  ;;  %v2594_v22 = vld [vmem:[#allocation2 + $0x170] sm:$0xff]  ;;  %v5795_v23 = vpop.f32.mrb[99].mxu1 }
 0x1ba   :  { %2215 = vst.msk [vmem:[#allocation2 + $0x180] sm:$0xff] %vm2166_vm1, %v1989_v16  ;;  %v1990_v24 = vmax.f32 %v1235_v17, 0.0  ;;  %2357 = vst.msk [vmem:[#allocation2 + $0x5f0] sm:$0xff] %vm2166_vm1, %v2131_v20  ;;  %5617 = vmatmul.mubr.bf16.gmra.mrb[204].mxu0 %v6026_v5  ;;  %2613 = vrot.lane.b32.xlu0 %v2594_v22, %s6151_s28  ;;  %v2132_v25 = vmax.f32 %v1803_v21, 0.0 }
 0x1bb   :  { %5620 = vmatprep.mubr.msk.bf16.mxu0 %vm6149_vm0, %v6148_v0  ;;  %v2595_v30 = vld [vmem:[#allocation2 + $0x178] sm:$0xff] }
 0x1bc   :  { %2216 = vst.msk [vmem:[#allocation2 + $0x188] sm:$0xff] %vm2166_vm1, %v1990_v24  ;;  %v2484_v26 = vpop.permute.xlu0 %2483  ;;  %2358 = vst.msk [vmem:[#allocation2 + $0x5f8] sm:$0xff] %vm2166_vm1, %v2132_v25 }
 0x1bd   :  { %2511 = vst.msk [vmem:[#allocation3] sm:$0xff] %vm2510_vm3, %v2484_v26  ;;  %v1239_v29 = vpop.f32.mrb[100].mxu0  ;;  %v1807_v31 = vpop.f32.mrb[100].mxu1  ;;  %v3313_v39 = vld [vmem:[#allocation2 + $0x5e8] sm:$0xff]  ;;  %v6029_v26 = vld [vmem:[%s8037_s0 + $0x1b0] sm:$0xff]  }
 0x1be   :  { %v1240_v32 = vadd.f32 %v6833_v41, %v1239_v29  ;;  %v2486_v33 = vpop.permute.xlu1 %2485  ;;  %2615 = vrot.lane.b32.xlu0 %v2595_v30, %s6151_s28  ;;  %v5514_v34 = vpop.f32.mrb[101].mxu0  ;;  %v1808_v35 = vadd.f32 %v6833_v41, %v1807_v31  ;;  %v6049_v30 = vld [vmem:[%s8037_s0 + $0x358] sm:$0xff]  }
 0x1bf   :  { %2512 = vst.msk [vmem:[#allocation3 + $0x38] sm:$0xff] %vm2510_vm3, %v2486_v33  ;;  %v1242_v38 = vpop.f32.mrb[102].mxu0  ;;  %v5798_v63 = vpop.f32.mrb[101].mxu1  ;;  %5841 = vmatmul.mubr.bf16.gmra.mrb[144].mxu1 %v6049_v30 }
 0x1c0   :  { %v1991_v42 = vmax.f32 %v1240_v32, 0.0  ;;  %v1243_v43 = vadd.f32 %v6833_v41, %v1242_v38  ;;  %v5515_v44 = vpop.f32.mrb[103].mxu0  ;;  %v2133_v45 = vmax.f32 %v1808_v35, 0.0  ;;  %v1810_v46 = vpop.f32.mrb[102].mxu1  ;;  %5844 = vmatprep.mubr.msk.bf16.mxu1 %vm6149_vm0, %v6148_v0 }
 0x1c1   :  { %v2596_v47 = vld [vmem:[#allocation2 + $0x180] sm:$0xff]  ;;  %v1811_v48 = vadd.f32 %v6833_v41, %v1810_v46  ;;  %v5799_v49 = vpop.f32.mrb[103].mxu1  ;;  %v3314_v51 = vld [vmem:[#allocation2 + $0x5f0] sm:$0xff]  ;;  %v6051_v46 = vld [vmem:[%s8039_s3 + $0x48] sm:$0xff]  }
 0x1c2   :  { %2217 = vst.msk [vmem:[#allocation2 + $0x190] sm:$0xff] %vm2166_vm1, %v1991_v42  ;;  %v1992_v50 = vmax.f32 %v1243_v43, 0.0  ;;  %2359 = vst.msk [vmem:[#allocation2 + $0x600] sm:$0xff] %vm2166_vm1, %v2133_v45  ;;  %5621 = vmatmul.mubr.bf16.gmra.mrb[208].mxu0 %v6027_v37  ;;  %3331 = vrot.lane.b32.xlu0 %v3313_v39, %s6151_s28 }
 0x1c3   :  { %2617 = vrot.lane.b32.xlu1 %v2596_v47, %s6151_s28  ;;  %v2597_v52 = vld [vmem:[#allocation2 + $0x188] sm:$0xff]  ;;  %5624 = vmatprep.mubr.msk.bf16.mxu0 %vm6149_vm0, %v6148_v0  ;;  %v2134_v53 = vmax.f32 %v1811_v48, 0.0  ;;  %v3315_v2 = vld [vmem:[#allocation2 + $0x5f8] sm:$0xff] }
 0x1c4   :  { %2218 = vst.msk [vmem:[#allocation2 + $0x198] sm:$0xff] %vm2166_vm1, %v1992_v50  ;;  %v2488_v54 = vpop.permute.xlu0 %2487  ;;  %5199 = vmatprep.subr.bf16.mxu1 %v6051_v46  ;;  %v6055_v46 = vld [vmem:[%s8037_s0 + $0x370] sm:$0xff]  }
 0x1c5   :  { %2513 = vst.msk [vmem:[#allocation3 + $0x70] sm:$0xff] %vm2510_vm3, %v2488_v54  ;;  %v1247_v56 = vpop.f32.mrb[104].mxu0  ;;  %v1815_v57 = vpop.f32.mrb[104].mxu1  ;;  %5200 = vmatpush3.bf16.msra.mxu1 %v6052_v4 }
 0x1c6   :  { %2360 = vst.msk [vmem:[#allocation2 + $0x608] sm:$0xff] %vm2166_vm1, %v2134_v53  ;;  %v1248_v58 = vadd.f32 %v6833_v41, %v1247_v56  ;;  %v2490_v59 = vpop.permute.xlu1 %2489  ;;  %2619 = vrot.lane.b32.xlu0 %v2597_v52, %s6151_s28  ;;  %v5518_v60 = vpop.f32.mrb[105].mxu0  ;;  %v1816_v62 = vadd.f32 %v6833_v41, %v1815_v57  ;;  %v6030_v53 = vld [vmem:[%s8037_s0 + $0x1b8] sm:$0xff]   ;;  %v6053_v56 = vld [vmem:[%s8037_s0 + $0x360] sm:$0xff]  }
 0x1c7   :  { %2514 = vst.msk [vmem:[#allocation3 + $0xa8] sm:$0xff] %vm2510_vm3, %v2490_v59  ;;  %3333 = vrot.lane.b32.xlu1 %v3314_v51, %s6151_s28  ;;  %v1250_v1 = vpop.f32.mrb[106].mxu0  ;;  %v5802_v3 = vpop.f32.mrb[105].mxu1  ;;  %5845 = vmatmul.mubr.bf16.gmra.mrb[148].mxu1 %v6053_v56 }
 0x1c8   :  { %v1993_v5 = vmax.f32 %v1248_v58, 0.0  ;;  %v1251_v6 = vadd.f32 %v6833_v41, %v1250_v1  ;;  %v3206_v7 = vpop.permute.xlu0 %3205  ;;  %v5519_v8 = vpop.f32.mrb[107].mxu0  ;;  %v2135_v9 = vmax.f32 %v1816_v62, 0.0  ;;  %5848 = vmatprep.mubr.msk.bf16.mxu1 %vm6149_vm0, %v6148_v0 }
 0x1c9   :  { %3232 = vst.msk [vmem:[#allocation3 + $0x20] sm:$0xff] %vm2510_vm3, %v3206_v7  ;;  %v2598_v10 = vld [vmem:[#allocation2 + $0x190] sm:$0xff]  ;;  %v1818_v11 = vpop.f32.mrb[106].mxu1  ;;  %v3316_v17 = vld [vmem:[#allocation2 + $0x600] sm:$0xff] }
 0x1ca   :  { %2219 = vst.msk [vmem:[#allocation2 + $0x1a0] sm:$0xff] %vm2166_vm1, %v1993_v5  ;;  %v1994_v12 = vmax.f32 %v1251_v6, 0.0  ;;  %5625 = vmatmul.mubr.bf16.gmra.mrb[212].mxu0 %v6028_v61  ;;  %v3208_v13 = vpop.permute.xlu1 %3207  ;;  %3335 = vrot.lane.b32.xlu0 %v3315_v2, %s6151_s28  ;;  %2361 = vst.msk [vmem:[#allocation2 + $0x610] sm:$0xff] %vm2166_vm1, %v2135_v9  ;;  %v1819_v14 = vadd.f32 %v6833_v41, %v1818_v11  ;;  %v5803_v16 = vpop.f32.mrb[107].mxu1  ;;  %v3299_v5 = vld [vmem:[#allocation2 + $0x5c0] sm:$0xff]  ;;  %v3300_v9 = vld [vmem:[#allocation2 + $0x5c8] sm:$0xff] }
 0x1cb   :  { %3233 = vst.msk [vmem:[#allocation3 + $0x58] sm:$0xff] %vm2510_vm3, %v3208_v13  ;;  %2621 = vrot.lane.b32.xlu1 %v2598_v10, %s6151_s28  ;;  %5628 = vmatprep.mubr.msk.bf16.mxu0 %vm6149_vm0, %v6148_v0  ;;  %v2599_v19 = vld [vmem:[#allocation2 + $0x198] sm:$0xff] }
 0x1cc   :  { %2220 = vst.msk [vmem:[#allocation2 + $0x1a8] sm:$0xff] %vm2166_vm1, %v1994_v12  ;;  %v2492_v18 = vpop.permute.xlu0 %2491  ;;  %v2136_v20 = vmax.f32 %v1819_v14, 0.0  ;;  %3308 = vst.msk [vmem:[#allocation3 + $0x108] sm:$0xff] %vm2166_vm1, %v3299_v5  ;;  %v6059_v5 = vld [vmem:[%s8039_s3 + $0x18] sm:$0xff]  }
 0x1cd   :  { %2515 = vst.msk [vmem:[#allocation3 + $0xe0] sm:$0xff] %vm2510_vm3, %v2492_v18  ;;  %v1255_v21 = vpop.f32.mrb[108].mxu0  ;;  %v1823_v22 = vpop.f32.mrb[108].mxu1 }
 0x1ce   :  { %v1256_v23 = vadd.f32 %v6833_v41, %v1255_v21  ;;  %v2494_v24 = vpop.permute.xlu1 %2493  ;;  %2623 = vrot.lane.b32.xlu0 %v2599_v19, %s6151_s28  ;;  %v5522_v25 = vpop.f32.mrb[109].mxu0  ;;  %2362 = vst.msk [vmem:[#allocation2 + $0x618] sm:$0xff] %vm2166_vm1, %v2136_v20  ;;  %v1824_v27 = vadd.f32 %v6833_v41, %v1823_v22  ;;  %3309 = vst.msk [vmem:[#allocation3 + $0x140] sm:$0xff] %vm2166_vm1, %v3300_v9  ;;  %v6054_v20 = vld [vmem:[%s8037_s0 + $0x368] sm:$0xff]  }
 0x1cf   :  { %2516 = vst.msk [vmem:[#allocation3 + $0x118] sm:$0xff] %vm2510_vm3, %v2494_v24  ;;  %3337 = vrot.lane.b32.xlu1 %v3316_v17, %s6151_s28  ;;  %v1258_v28 = vpop.f32.mrb[110].mxu0  ;;  %v5806_v29 = vpop.f32.mrb[109].mxu1  ;;  %v6031_v17 = vld [vmem:[%s8037_s0 + $0x1c0] sm:$0xff]   ;;  %5849 = vmatmul.mubr.bf16.gmra.mrb[152].mxu1 %v6054_v20 }
 0x1d0   :  { %v1995_v31 = vmax.f32 %v1256_v23, 0.0  ;;  %v1259_v32 = vadd.f32 %v6833_v41, %v1258_v28  ;;  %v3210_v33 = vpop.permute.xlu0 %3209  ;;  %v5523_v34 = vpop.f32.mrb[111].mxu0  ;;  %v2137_v35 = vmax.f32 %v1824_v27, 0.0  ;;  %v7101_v27 = vld [vmem:[%s8038_s2] ss:$0 sm:$0xff]  ;;  %5852 = vmatprep.mubr.msk.bf16.mxu1 %vm6149_vm0, %v6148_v0 }
 0x1d1   :  { %3234 = vst.msk [vmem:[#allocation3 + $0x90] sm:$0xff] %vm2510_vm3, %v3210_v33  ;;  %v2600_v37 = vld [vmem:[#allocation2 + $0x1a0] sm:$0xff]  ;;  %v1826_v38 = vpop.f32.mrb[110].mxu1 }
 0x1d2   :  { %2221 = vst.msk [vmem:[#allocation2 + $0x1b0] sm:$0xff] %vm2166_vm1, %v1995_v31  ;;  %v1996_v39 = vmax.f32 %v1259_v32, 0.0  ;;  %5629 = vmatmul.mubr.bf16.gmra.mrb[216].mxu0 %v6029_v26  ;;  %v3212_v63 = vpop.permute.xlu1 %3211  ;;  %2363 = vst.msk [vmem:[#allocation2 + $0x620] sm:$0xff] %vm2166_vm1, %v2137_v35  ;;  %v1827_v40 = vadd.f32 %v6833_v41, %v1826_v38  ;;  %v5807_v42 = vpop.f32.mrb[111].mxu1 }
 0x1d3   :  { %3235 = vst.msk [vmem:[#allocation3 + $0xc8] sm:$0xff] %vm2510_vm3, %v3212_v63  ;;  %2625 = vrot.lane.b32.xlu1 %v2600_v37, %s6151_s28  ;;  %v2601_v43 = vld [vmem:[#allocation2 + $0x1a8] sm:$0xff]  ;;  %5632 = vmatprep.mubr.msk.bf16.mxu0 %vm6149_vm0, %v6148_v0 }
 0x1d4   :  { %2222 = vst.msk [vmem:[#allocation2 + $0x1b8] sm:$0xff] %vm2166_vm1, %v1996_v39  ;;  %v2496_v44 = vpop.permute.xlu0 %2495  ;;  %2627 = vrot.lane.b32.xlu0 %v2601_v43, %s6151_s28  ;;  %v2138_v45 = vmax.f32 %v1827_v40, 0.0  ;;  %v6032_v42 = vld [vmem:[%s8037_s0 + $0x1c8] sm:$0xff]  }
 0x1d5   :  { %2517 = vst.msk [vmem:[#allocation3 + $0x150] sm:$0xff] %vm2510_vm3, %v2496_v44  ;;  %v1263_v47 = vpop.f32.mrb[112].mxu0  ;;  %v1831_v48 = vpop.f32.mrb[112].mxu1 }
 0x1d6   :  { %v1264_v49 = vadd.f32 %v6833_v41, %v1263_v47  ;;  %v2498_v50 = vpop.permute.xlu1 %2497  ;;  %v5526_v51 = vpop.f32.mrb[113].mxu0  ;;  %2364 = vst.msk [vmem:[#allocation2 + $0x628] sm:$0xff] %vm2166_vm1, %v2138_v45  ;;  %v1832_v52 = vadd.f32 %v6833_v41, %v1831_v48  ;;  %v6056_v47 = vld [vmem:[%s8039_s3 + $0x50] sm:$0xff]   ;;  %v3302_v48 = vld [vmem:[#allocation2 + $0x5d8] sm:$0xff] }
 0x1d7   :  { %2518 = vst.msk [vmem:[#allocation3 + $0x188] sm:$0xff] %vm2510_vm3, %v2498_v50  ;;  %v1266_v54 = vpop.f32.mrb[114].mxu0  ;;  %v5810_v55 = vpop.f32.mrb[113].mxu1  ;;  %5853 = vmatmul.mubr.bf16.gmra.mrb[156].mxu1 %v6055_v46  ;;  %5201 = vmatprep.subr.bf16.mxu1 %v6056_v47 }
 0x1d8   :  { %v1997_v57 = vmax.f32 %v1264_v49, 0.0  ;;  %v1267_v58 = vadd.f32 %v6833_v41, %v1266_v54  ;;  %v5527_v59 = vpop.f32.mrb[115].mxu0  ;;  %v2139_v60 = vmax.f32 %v1832_v52, 0.0  ;;  %v1834_v61 = vpop.f32.mrb[114].mxu1  ;;  %v6057_v54 = vld [vmem:[%s8039_s3 + $0x10] sm:$0xff]   ;;  %3311 = vst.msk [vmem:[#allocation3 + $0x1b0] sm:$0xff] %vm2166_vm1, %v3302_v48  ;;  %5856 = vmatprep.mubr.msk.bf16.mxu1 %vm6149_vm0, %v6148_v0 }
 0x1d9   :  { %v2647_v62 = vld [vmem:[#allocation2 + $0x1b0] sm:$0xff]  ;;  %v1835_v1 = vadd.f32 %v6833_v41, %v1834_v61  ;;  %v5811_v2 = vpop.f32.mrb[115].mxu1  ;;  %v3303_v61 = vld [vmem:[#allocation2 + $0x5e0] sm:$0xff]  ;;  %5202 = vmatpush3.bf16.msra.mxu1 %v6057_v54 }
 0x1da   :  { %2223 = vst.msk [vmem:[#allocation2 + $0x1c0] sm:$0xff] %vm2166_vm1, %v1997_v57  ;;  %v1998_v3 = vmax.f32 %v1267_v58, 0.0  ;;  %2365 = vst.msk [vmem:[#allocation2 + $0x630] sm:$0xff] %vm2166_vm1, %v2139_v60  ;;  %5633 = vmatmul.mubr.bf16.gmra.mrb[220].mxu0 %v6030_v53  ;;  %2665 = vrot.lane.b32.xlu0 %v2647_v62, %s6152_s20  ;;  %v6058_v2 = vld [vmem:[%s8039_s3 + $0x58] sm:$0xff]  }
 0x1db   :  { %v2140_v6 = vmax.f32 %v1835_v1, 0.0  ;;  %v2648_v7 = vld [vmem:[#allocation2 + $0x1b8] sm:$0xff]  ;;  %5636 = vmatprep.mubr.msk.bf16.mxu0 %vm6149_vm0, %v6148_v0  ;;  %3312 = vst.msk [vmem:[#allocation3 + $0x1e8] sm:$0xff] %vm2166_vm1, %v3303_v61  ;;  %5203 = vmatprep.subr.bf16.mxu1 %v6058_v2 }
 0x1dc   :  { %2224 = vst.msk [vmem:[#allocation2 + $0x1c8] sm:$0xff] %vm2166_vm1, %v1998_v3  ;;  %v2500_v8 = vpop.permute.xlu1 %2499  ;;  %2667 = vrot.lane.b32.xlu1 %v2648_v7, %s6152_s20 }
 0x1dd   :  { %2366 = vst.msk [vmem:[#allocation2 + $0x638] sm:$0xff] %vm2166_vm1, %v2140_v6  ;;  %v1271_v10 = vpop.f32.mrb[116].mxu0  ;;  %v1839_v11 = vpop.f32.mrb[116].mxu1  ;;  %5204 = vmatpush3.bf16.msra.mxu1 %v6059_v5 }
 0x1de   :  { %2519 = vst.msk [vmem:[#allocation3 + $0x1c0] sm:$0xff] %vm2510_vm3, %v2500_v8  ;;  %v1272_v12 = vadd.f32 %v6833_v41, %v1271_v10  ;;  %v2539_v13 = vpop.permute.xlu0 %2538  ;;  %v5530_v14 = vpop.f32.mrb[117].mxu0  ;;  %v1840_v16 = vadd.f32 %v6833_v41, %v1839_v11  ;;  %v6033_v11 = vld [vmem:[%s8037_s0 + $0x1d0] sm:$0xff]  }
 0x1df   :  { %2566 = vst.msk [vmem:[#allocation3] sm:$0xff] %vm2565_vm4, %v2539_v13  ;;  %v1274_v18 = vpop.f32.mrb[118].mxu0  ;;  %v5814_v19 = vpop.f32.mrb[117].mxu1 }
 0x1e0   :  { %v1999_v21 = vmax.f32 %v1272_v12, 0.0  ;;  %v1275_v22 = vadd.f32 %v6833_v41, %v1274_v18  ;;  %v5531_v23 = vpop.f32.mrb[119].mxu0  ;;  %v2141_v24 = vmax.f32 %v1840_v16, 0.0  ;;  %v1842_v25 = vpop.f32.mrb[118].mxu1  ;;  %v3301_v41 = vld [vmem:[#allocation2 + $0x5d0] sm:$0xff]  ;;  %v6060_v16 = vld [vmem:[%s8037_s0 + $0x378] sm:$0xff]  }
 0x1e1   :  { %v2649_v26 = vld [vmem:[#allocation2 + $0x1c0] sm:$0xff]  ;;  %v1843_v28 = vadd.f32 %v7101_v27, %v1842_v25  ;;  %v3367_v29 = vld [vmem:[#allocation2 + $0x630] sm:$0xff]  ;;  %v5815_v30 = vpop.f32.mrb[119].mxu1  ;;  %3310 = vst.msk [vmem:[#allocation3 + $0x178] sm:$0xff] %vm2166_vm1, %v3301_v41  ;;  %5857 = vmatmul.mubr.bf16.gmra.mrb[160].mxu1 %v6060_v16 }
 0x1e2   :  { %2225 = vst.msk [vmem:[#allocation2 + $0x1d0] sm:$0xff] %vm2166_vm1, %v1999_v21  ;;  %v2000_v31 = vmax.f32 %v1275_v22, 0.0  ;;  %2367 = vst.msk [vmem:[#allocation2 + $0x640] sm:$0xff] %vm2166_vm1, %v2141_v24  ;;  %5637 = vmatmul.mubr.bf16.gmra.mrb[224].mxu0 %v6031_v17  ;;  %2669 = vrot.lane.b32.xlu0 %v2649_v26, %s6152_s20  ;;  %v6061_v17 = vld [vmem:[%s8039_s3 + $0x60] sm:$0xff]  }
 0x1e3   :  { %v2142_v32 = vmax.f32 %v1843_v28, 0.0  ;;  %v2650_v33 = vld [vmem:[#allocation2 + $0x1c8] sm:$0xff]  ;;  %5640 = vmatprep.mubr.msk.bf16.mxu0 %vm6149_vm0, %v6148_v0  ;;  %v6062_v23 = vld [vmem:[%s8039_s3 + $0x20] sm:$0xff]   ;;  %5205 = vmatprep.subr.bf16.mxu1 %v6061_v17 }
 0x1e4   :  { %2226 = vst.msk [vmem:[#allocation2 + $0x1d8] sm:$0xff] %vm2166_vm1, %v2000_v31  ;;  %v2541_v34 = vpop.permute.xlu1 %2540  ;;  %2671 = vrot.lane.b32.xlu1 %v2650_v33, %s6152_s20  ;;  %v3368_v35 = vld [vmem:[#allocation2 + $0x638] sm:$0xff]  ;;  %5206 = vmatpush3.bf16.msra.mxu1 %v6062_v23  ;;  %v6063_v31 = vld [vmem:[%s8039_s3 + $0x68] sm:$0xff]  }
 0x1e5   :  { %2368 = vst.msk [vmem:[#allocation2 + $0x648] sm:$0xff] %vm2166_vm1, %v2142_v32  ;;  %v1279_v37 = vpop.f32.mrb[120].mxu0  ;;  %v1847_v38 = vpop.f32.mrb[120].mxu1  ;;  %v6064_v33 = vld [vmem:[%s8039_s3 + $0x28] sm:$0xff]   ;;  %5860 = vmatprep.mubr.msk.bf16.mxu1 %vm6149_vm0, %v6148_v0  ;;  %5207 = vmatprep.subr.bf16.mxu1 %v6063_v31 }
 0x1e6   :  { %2567 = vst.msk [vmem:[#allocation3 + $0x38] sm:$0xff] %vm2565_vm4, %v2541_v34  ;;  %v1280_v39 = vadd.f32 %v7101_v27, %v1279_v37  ;;  %v2543_v63 = vpop.permute.xlu0 %2542  ;;  %3385 = vrot.lane.b32.xlu0 %v3367_v29, %s6152_s20  ;;  %v5534_v40 = vpop.f32.mrb[121].mxu0  ;;  %v1848_v43 = vadd.f32 %v7101_v27, %v1847_v38 }
 0x1e7   :  { %2568 = vst.msk [vmem:[#allocation3 + $0x70] sm:$0xff] %vm2565_vm4, %v2543_v63  ;;  %v1282_v44 = vpop.f32.mrb[122].mxu0  ;;  %v5818_v45 = vpop.f32.mrb[121].mxu1  ;;  %v6034_v40 = vld [vmem:[%s8037_s0 + $0x1d8] sm:$0xff]  }
 0x1e8   :  { %v2001_v49 = vmax.f32 %v1280_v39, 0.0  ;;  %v1283_v50 = vadd.f32 %v7101_v27, %v1282_v44  ;;  %3387 = vrot.lane.b32.xlu1 %v3368_v35, %s6152_s20  ;;  %v5535_v51 = vpop.f32.mrb[123].mxu0  ;;  %v2143_v52 = vmax.f32 %v1848_v43, 0.0  ;;  %v1850_v53 = vpop.f32.mrb[122].mxu1  ;;  %5208 = vmatpush3.bf16.msra.mxu1 %v6064_v33  ;;  %v6065_v44 = vld [vmem:[%s8037_s0 + $0x380] ss:$0 sps:$4 sm:$0xff]  }
 0x1e9   :  { %v2651_v55 = vld [vmem:[#allocation2 + $0x1d0] sm:$0xff]  ;;  %v3369_v56 = vld [vmem:[#allocation2 + $0x640] sm:$0xff]  ;;  %v1851_v57 = vadd.f32 %v7101_v27, %v1850_v53  ;;  %v5819_v58 = vpop.f32.mrb[123].mxu1  ;;  %5861 = vmatmul.mubr.bf16.gmra.mrb[164].mxu1 %v6065_v44 }
 0x1ea   :  { %2227 = vst.msk [vmem:[#allocation2 + $0x1e0] sm:$0xff] %vm2166_vm1, %v2001_v49  ;;  %v2002_v59 = vmax.f32 %v1283_v50, 0.0  ;;  %5641 = vmatmul.mubr.bf16.gmra.mrb[228].mxu0 %v6032_v42  ;;  %v3260_v60 = vpop.permute.xlu0 %3259  ;;  %2673 = vrot.lane.b32.xlu0 %v2651_v55, %s6152_s20  ;;  %2369 = vst.msk [vmem:[#allocation2 + $0x650] sm:$0xff] %vm2166_vm1, %v2143_v52  ;;  %v6066_v45 = vld [vmem:[%s8039_s3 + $0x70] sm:$0xff]  }
 0x1eb   :  { %3286 = vst.msk [vmem:[#allocation3 + $0x20] sm:$0xff] %vm2565_vm4, %v3260_v60  ;;  %v2652_v62 = vld [vmem:[#allocation2 + $0x1d8] sm:$0xff]  ;;  %5644 = vmatprep.mubr.msk.bf16.mxu0 %vm6149_vm0, %v6148_v0  ;;  %v2144_v1 = vmax.f32 %v1851_v57, 0.0  ;;  %v6067_v51 = vld [vmem:[%s8039_s3 + $0x30] sm:$0xff]   ;;  %5209 = vmatprep.subr.bf16.mxu1 %v6066_v45 }
 0x1ec   :  { %2228 = vst.msk [vmem:[#allocation2 + $0x1e8] sm:$0xff] %vm2166_vm1, %v2002_v59  ;;  %v2545_v3 = vpop.permute.xlu1 %2544  ;;  %2675 = vrot.lane.b32.xlu1 %v2652_v62, %s6152_s20  ;;  %v3370_v4 = vld [vmem:[#allocation2 + $0x648] sm:$0xff]  ;;  %5210 = vmatpush3.bf16.msra.mxu1 %v6067_v51  ;;  %v6068_v57 = vld [vmem:[%s8039_s3 + $0x78] sm:$0xff]  }
 0x1ed   :  { %2569 = vst.msk [vmem:[#allocation3 + $0xa8] sm:$0xff] %vm2565_vm4, %v2545_v3  ;;  %v1287_v6 = vpop.f32.mrb[124].mxu0  ;;  %v1855_v7 = vpop.f32.mrb[124].mxu1  ;;  %v6069_v59 = vld [vmem:[%s8039_s3 + $0x38] sm:$0xff]   ;;  %5211 = vmatprep.subr.bf16.mxu1 %v6068_v57  ;;  %v6035_v3 = vld [vmem:[%s8037_s0 + $0x1e0] sm:$0xff]  }
 0x1ee   :  { %2370 = vst.msk [vmem:[#allocation2 + $0x658] sm:$0xff] %vm2166_vm1, %v2144_v1  ;;  %v1288_v8 = vadd.f32 %v7101_v27, %v1287_v6  ;;  %v2547_v9 = vpop.permute.xlu0 %2546  ;;  %3389 = vrot.lane.b32.xlu0 %v3369_v56, %s6152_s20  ;;  %v5538_v10 = vpop.f32.mrb[125].mxu0  ;;  %v1856_v12 = vadd.f32 %v7101_v27, %v1855_v7 }
 0x1ef   :  { %2570 = vst.msk [vmem:[#allocation3 + $0xe0] sm:$0xff] %vm2565_vm4, %v2547_v9  ;;  %v1290_v13 = vpop.f32.mrb[126].mxu0  ;;  %v5822_v14 = vpop.f32.mrb[125].mxu1 }
 0x1f0   :  { %v2003_v18 = vmax.f32 %v1288_v8, 0.0  ;;  %v1291_v19 = vadd.f32 %v7101_v27, %v1290_v13  ;;  %v3262_v20 = vpop.permute.xlu1 %3261  ;;  %3391 = vrot.lane.b32.xlu1 %v3370_v4, %s6152_s20  ;;  %v5539_v21 = vpop.f32.mrb[127].mxu0  ;;  %v2145_v22 = vmax.f32 %v1856_v12, 0.0  ;;  %5212 = vmatpush3.bf16.msra.mxu1 %v6069_v59 }
 0x1f1   :  { %3287 = vst.msk [vmem:[#allocation3 + $0x58] sm:$0xff] %vm2565_vm4, %v3262_v20  ;;  %v2653_v24 = vld [vmem:[#allocation2 + $0x1e0] sm:$0xff]  ;;  %v1858_v25 = vpop.f32.mrb[126].mxu1 }
 0x1f2   :  { %2229 = vst.msk [vmem:[#allocation2 + $0x1f0] sm:$0xff] %vm2166_vm1, %v2003_v18  ;;  %v2004_v26 = vmax.f32 %v1291_v19, 0.0  ;;  %5645 = vmatmul.mubr.bf16.gmra.mrb[232].mxu0 %v6033_v11  ;;  %2677 = vrot.lane.b32.xlu0 %v2653_v24, %s6152_s20  ;;  %2371 = vst.msk [vmem:[#allocation2 + $0x660] sm:$0xff] %vm2166_vm1, %v2145_v22  ;;  %v1859_v28 = vadd.f32 %v7101_v27, %v1858_v25  ;;  %v5823_v29 = vpop.f32.mrb[127].mxu1  ;;  %v6036_v24 = vld [vmem:[%s8037_s0 + $0x1e8] sm:$0xff]  }
 0x1f3   :  { %v2654_v30 = vld [vmem:[#allocation2 + $0x1e8] sm:$0xff]  ;;  %5648 = vmatprep.mubr.msk.bf16.mxu0 %vm6149_vm0, %v6148_v0 }
 0x1f4   :  { %2230 = vst.msk [vmem:[#allocation2 + $0x1f8] sm:$0xff] %vm2166_vm1, %v2004_v26  ;;  %v2549_v41 = vpop.permute.xlu1 %2548  ;;  %2679 = vrot.lane.b32.xlu1 %v2654_v30, %s6152_s20  ;;  %v2146_v32 = vmax.f32 %v1859_v28, 0.0 }
 0x1f5   :  { %2571 = vst.msk [vmem:[#allocation3 + $0x118] sm:$0xff] %vm2565_vm4, %v2549_v41  ;;  %v1295_v34 = vpop.f32.mrb[128].mxu0  ;;  %v1863_v35 = vpop.f32.mrb[128].mxu1 }
 0x1f6   :  { %v1296_v37 = vadd.f32 %v7101_v27, %v1295_v34  ;;  %v2551_v38 = vpop.permute.xlu0 %2550  ;;  %v5542_v39 = vpop.f32.mrb[129].mxu0  ;;  %2372 = vst.msk [vmem:[#allocation2 + $0x668] sm:$0xff] %vm2166_vm1, %v2146_v32  ;;  %v1864_v63 = vadd.f32 %v7101_v27, %v1863_v35 }
 0x1f7   :  { %2572 = vst.msk [vmem:[#allocation3 + $0x150] sm:$0xff] %vm2565_vm4, %v2551_v38  ;;  %v1298_v42 = vpop.f32.mrb[130].mxu0  ;;  %v5826_v43 = vpop.f32.mrb[129].mxu1  ;;  %v6037_v38 = vld [vmem:[%s8037_s0 + $0x1f0] sm:$0xff]  }
 0x1f8   :  { %v2005_v46 = vmax.f32 %v1296_v37, 0.0  ;;  %v1299_v47 = vadd.f32 %v7101_v27, %v1298_v42  ;;  %v5543_v48 = vpop.f32.mrb[131].mxu0  ;;  %v2147_v49 = vmax.f32 %v1864_v63, 0.0  ;;  %v1866_v50 = vpop.f32.mrb[130].mxu1 }
 0x1f9   :  { %v2655_v52 = vld [vmem:[#allocation2 + $0x1f0] sm:$0xff]  ;;  %v1867_v53 = vadd.f32 %v7101_v27, %v1866_v50  ;;  %v5827_v54 = vpop.f32.mrb[131].mxu1 }
 0x1fa   :  { %2231 = vst.msk [vmem:[#allocation2 + $0x200] sm:$0xff] %vm2166_vm1, %v2005_v46  ;;  %v2006_v55 = vmax.f32 %v1299_v47, 0.0  ;;  %2373 = vst.msk [vmem:[#allocation2 + $0x670] sm:$0xff] %vm2166_vm1, %v2147_v49  ;;  %5649 = vmatmul.mubr.bf16.gmra.mrb[236].mxu0 %v6034_v40  ;;  %2681 = vrot.lane.b32.xlu0 %v2655_v52, %s6152_s20  ;;  %v6038_v49 = vld [vmem:[%s8037_s0 + $0x1f8] sm:$0xff]  }
 0x1fb   :  { %v2148_v56 = vmax.f32 %v1867_v53, 0.0  ;;  %5652 = vmatprep.mubr.msk.bf16.mxu0 %vm6149_vm0, %v6148_v0  ;;  %v2701_v61 = vld [vmem:[#allocation2 + $0x1f8] sm:$0xff] }
 0x1fc   :  { %2232 = vst.msk [vmem:[#allocation2 + $0x208] sm:$0xff] %vm2166_vm1, %v2006_v55  ;;  %v2553_v58 = vpop.permute.xlu1 %2552 }
 0x1fd   :  { %2374 = vst.msk [vmem:[#allocation2 + $0x678] sm:$0xff] %vm2166_vm1, %v2148_v56  ;;  %v1303_v60 = vpop.f32.mrb[132].mxu0 }
 0x1fe   :  { %2573 = vst.msk [vmem:[#allocation3 + $0x188] sm:$0xff] %vm2565_vm4, %v2553_v58  ;;  %v1304_v62 = vadd.f32 %v7101_v27, %v1303_v60  ;;  %2719 = vrot.lane.b32.xlu0 %v2701_v61, %s6150_s11  ;;  %v5546_v1 = vpop.f32.mrb[133].mxu0  ;;  %v1871_v2 = vpop.f32.mrb[132].mxu1  ;;  %v6039_v60 = vld [vmem:[%s8037_s0 + $0x200] sm:$0xff]  }
 0x1ff   :  { %v1306_v4 = vpop.f32.mrb[134].mxu0  ;;  %v1872_v5 = vadd.f32 %v7101_v27, %v1871_v2  ;;  %v5830_v6 = vpop.f32.mrb[133].mxu1 }
 0x200   :  { %v2007_v7 = vmax.f32 %v1304_v62, 0.0  ;;  %v1307_v8 = vadd.f32 %v7101_v27, %v1306_v4  ;;  %v2555_v9 = vpop.permute.xlu1 %2554  ;;  %v5547_v10 = vpop.f32.mrb[135].mxu0 }
 0x201   :  { %2574 = vst.msk [vmem:[#allocation3 + $0x1c0] sm:$0xff] %vm2565_vm4, %v2555_v9  ;;  %v2149_v11 = vmax.f32 %v1872_v5, 0.0  ;;  %v2702_v12 = vld [vmem:[#allocation2 + $0x200] sm:$0xff]  ;;  %v1874_v13 = vpop.f32.mrb[134].mxu1  ;;  %v6040_v10 = vld [vmem:[%s8037_s0 + $0x208] sm:$0xff]  }
 0x202   :  { %2233 = vst.msk [vmem:[#allocation2 + $0x210] sm:$0xff] %vm2166_vm1, %v2007_v7  ;;  %v2008_v14 = vmax.f32 %v1307_v8, 0.0  ;;  %5653 = vmatmul.mubr.bf16.gmra.mrb[240].mxu0 %v6035_v3  ;;  %2721 = vrot.lane.b32.xlu1 %v2702_v12, %s6150_s11  ;;  %v1875_v16 = vadd.f32 %v7101_v27, %v1874_v13  ;;  %v5831_v17 = vpop.f32.mrb[135].mxu1 }
 0x203   :  { %2375 = vst.msk [vmem:[#allocation2 + $0x680] sm:$0xff] %vm2166_vm1, %v2149_v11  ;;  %v2703_v18 = vld [vmem:[#allocation2 + $0x208] sm:$0xff]  ;;  %5656 = vmatprep.mubr.msk.bf16.mxu0 %vm6149_vm0, %v6148_v0 }
 0x204   :  { %2234 = vst.msk [vmem:[#allocation2 + $0x218] sm:$0xff] %vm2166_vm1, %v2008_v14  ;;  %v2150_v19 = vmax.f32 %v1875_v16, 0.0  ;;  %2723 = vrot.lane.b32.xlu0 %v2703_v18, %s6150_s11  ;;  %v3421_v21 = vld [vmem:[#allocation2 + $0x678] sm:$0xff] }
 0x205   :  { %v1311_v20 = vpop.f32.mrb[136].mxu0 }
 0x206   :  { %2376 = vst.msk [vmem:[#allocation2 + $0x688] sm:$0xff] %vm2166_vm1, %v2150_v19  ;;  %v1312_v22 = vadd.f32 %v7101_v27, %v1311_v20  ;;  %v5550_v23 = vpop.f32.mrb[137].mxu0 }
 0x207   :  { %v1314_v25 = vpop.f32.mrb[138].mxu0  ;;  %v6043_v23 = vld [vmem:[%s8037_s0 + $0x210] sm:$0xff]  }
 0x208   :  { %v2009_v26 = vmax.f32 %v1312_v22, 0.0  ;;  %v1315_v28 = vadd.f32 %v7101_v27, %v1314_v25  ;;  %3439 = vrot.lane.b32.xlu0 %v3421_v21, %s6150_s11  ;;  %v5551_v29 = vpop.f32.mrb[139].mxu0 }
 0x209   :  { %v2704_v30 = vld [vmem:[#allocation2 + $0x210] sm:$0xff] }
 0x20a   :  { %2235 = vst.msk [vmem:[#allocation2 + $0x220] sm:$0xff] %vm2166_vm1, %v2009_v26  ;;  %v2010_v31 = vmax.f32 %v1315_v28, 0.0  ;;  %5657 = vmatmul.mubr.bf16.gmra.mrb[244].mxu0 %v6036_v24  ;;  %2725 = vrot.lane.b32.xlu1 %v2704_v30, %s6150_s11  ;;  %v3422_v32 = vld [vmem:[#allocation2 + $0x680] sm:$0xff] }
 0x20b   :  { %v2705_v41 = vld [vmem:[#allocation2 + $0x218] sm:$0xff]  ;;  %5660 = vmatprep.mubr.msk.bf16.mxu0 %vm6149_vm0, %v6148_v0 }
 0x20c   :  { %2236 = vst.msk [vmem:[#allocation2 + $0x228] sm:$0xff] %vm2166_vm1, %v2010_v31  ;;  %2727 = vrot.lane.b32.xlu0 %v2705_v41, %s6150_s11 }
 0x20d   :  { %v1319_v33 = vpop.f32.mrb[140].mxu0  ;;  %v3423_v34 = vld [vmem:[#allocation2 + $0x688] sm:$0xff] }
 0x20e   :  { %v1320_v35 = vadd.f32 %v7101_v27, %v1319_v33  ;;  %3441 = vrot.lane.b32.xlu1 %v3422_v32, %s6150_s11  ;;  %v5554_v37 = vpop.f32.mrb[141].mxu0 }
 0x20f   :  { %v1322_v39 = vpop.f32.mrb[142].mxu0 }
 0x210   :  { %v2011_v63 = vmax.f32 %v1320_v35, 0.0  ;;  %v1323_v40 = vadd.f32 %v7101_v27, %v1322_v39  ;;  %3443 = vrot.lane.b32.xlu0 %v3423_v34, %s6150_s11  ;;  %v5555_v42 = vpop.f32.mrb[143].mxu0 }
 0x211   :  { %v2706_v43 = vld [vmem:[#allocation2 + $0x220] sm:$0xff] }
 0x212   :  { %2237 = vst.msk [vmem:[#allocation2 + $0x230] sm:$0xff] %vm2166_vm1, %v2011_v63  ;;  %v2012_v44 = vmax.f32 %v1323_v40, 0.0  ;;  %5661 = vmatmul.mubr.bf16.gmra.mrb[248].mxu0 %v6037_v38  ;;  %2729 = vrot.lane.b32.xlu1 %v2706_v43, %s6150_s11  ;;  %v6044_v38 = vld [vmem:[%s8037_s0 + $0x218] sm:$0xff]  }
 0x213   :  { %v2707_v45 = vld [vmem:[#allocation2 + $0x228] sm:$0xff]  ;;  %5664 = vmatprep.mubr.msk.bf16.mxu0 %vm6149_vm0, %v6148_v0 }
 0x214   :  { %2238 = vst.msk [vmem:[#allocation2 + $0x238] sm:$0xff] %vm2166_vm1, %v2012_v44  ;;  %2731 = vrot.lane.b32.xlu0 %v2707_v45, %s6150_s11 }
 0x215   :  { %v1327_v46 = vpop.f32.mrb[144].mxu0 }
 0x216   :  { %v1328_v47 = vadd.f32 %v7101_v27, %v1327_v46  ;;  %v5558_v48 = vpop.f32.mrb[145].mxu0 }
 0x217   :  { %v1330_v50 = vpop.f32.mrb[146].mxu0 }
 0x218   :  { %v2013_v51 = vmax.f32 %v1328_v47, 0.0  ;;  %v1331_v52 = vadd.f32 %v7101_v27, %v1330_v50  ;;  %v5559_v53 = vpop.f32.mrb[147].mxu0 }
 0x219   :  { %v2708_v54 = vld [vmem:[#allocation2 + $0x230] sm:$0xff]  ;;  %v6046_v53 = vld [vmem:[%s8037_s0 + $0x220] sm:$0xff]  }
 0x21a   :  { %2239 = vst.msk [vmem:[#allocation2 + $0x240] sm:$0xff] %vm2166_vm1, %v2013_v51  ;;  %v2014_v55 = vmax.f32 %v1331_v52, 0.0  ;;  %5665 = vmatmul.mubr.bf16.gmra.mrb[252].mxu0 %v6038_v49  ;;  %2733 = vrot.lane.b32.xlu1 %v2708_v54, %s6150_s11 }
 0x21b   :  { %v2709_v56 = vld [vmem:[#allocation2 + $0x238] sm:$0xff]  ;;  %5668 = vmatprep.mubr.msk.bf16.mxu0 %vm6149_vm0, %v6148_v0 }
 0x21c   :  { %2240 = vst.msk [vmem:[#allocation2 + $0x248] sm:$0xff] %vm2166_vm1, %v2014_v55  ;;  %2735 = vrot.lane.b32.xlu0 %v2709_v56, %s6150_s11 }
 0x21d   :  { %v1335_v57 = vpop.f32.mrb[148].mxu0 }
 0x21e   :  { %v1336_v58 = vadd.f32 %v7101_v27, %v1335_v57  ;;  %v5562_v59 = vpop.f32.mrb[149].mxu0 }
 0x21f   :  { %v1338_v61 = vpop.f32.mrb[150].mxu0 }
 0x220   :  { %v2015_v62 = vmax.f32 %v1336_v58, 0.0  ;;  %v1339_v1 = vadd.f32 %v7101_v27, %v1338_v61  ;;  %v5563_v2 = vpop.f32.mrb[151].mxu0 }
 0x221   :  { %v2755_v3 = vld [vmem:[#allocation2 + $0x240] sm:$0xff] }
 0x222   :  { %2241 = vst.msk [vmem:[#allocation2 + $0x250] sm:$0xff] %vm2166_vm1, %v2015_v62  ;;  %v2016_v4 = vmax.f32 %v1339_v1, 0.0  ;;  %5669 = vmatmul.mubr.bf16.gmra.mrb[0].mxu0 %v6039_v60  ;;  %2764 = vst.msk [vmem:[#allocation3 + $0x10] sm:$0xff] %vm2166_vm1, %v2755_v3 }
 0x223   :  { %5672 = vmatprep.mubr.msk.bf16.mxu0 %vm6149_vm0, %v6148_v0  ;;  %v2756_v5 = vld [vmem:[#allocation2 + $0x248] sm:$0xff] }
 0x224   :  { %2242 = vst.msk [vmem:[#allocation2 + $0x258] sm:$0xff] %vm2166_vm1, %v2016_v4  ;;  %2765 = vst.msk [vmem:[#allocation3 + $0x48] sm:$0xff] %vm2166_vm1, %v2756_v5 }
 0x225   :  { %v1343_v6 = vpop.f32.mrb[152].mxu0 }
 0x226   :  { %v1344_v7 = vadd.f32 %v7101_v27, %v1343_v6  ;;  %v5566_v9 = vpop.f32.mrb[153].mxu0  ;;  %v6048_v6 = vld [vmem:[%s8037_s0 + $0x228] sm:$0xff]  }
 0x227   :  { %v2612_v8 = vpop.permute.xlu0 %2611  ;;  %v1346_v11 = vpop.f32.mrb[154].mxu0 }
 0x228   :  { %2638 = vst.msk [vmem:[#allocation3 + $0x8] sm:$0xff] %vm2455_vm2, %v2612_v8  ;;  %v2017_v12 = vmax.f32 %v1344_v7, 0.0  ;;  %v1347_v13 = vadd.f32 %v7101_v27, %v1346_v11  ;;  %v5567_v14 = vpop.f32.mrb[155].mxu0 }
 0x229   :  { %v2757_v16 = vld [vmem:[#allocation2 + $0x250] sm:$0xff] }
 0x22a   :  { %2243 = vst.msk [vmem:[#allocation2 + $0x260] sm:$0xff] %vm2166_vm1, %v2017_v12  ;;  %v2018_v17 = vmax.f32 %v1347_v13, 0.0  ;;  %5673 = vmatmul.mubr.bf16.gmra.mrb[4].mxu0 %v6040_v10  ;;  %2766 = vst.msk [vmem:[#allocation3 + $0x80] sm:$0xff] %vm2166_vm1, %v2757_v16 }
 0x22b   :  { %5676 = vmatprep.mubr.msk.bf16.mxu0 %vm6149_vm0, %v6148_v0  ;;  %v2758_v18 = vld [vmem:[#allocation2 + $0x258] sm:$0xff] }
 0x22c   :  { %2244 = vst.msk [vmem:[#allocation2 + $0x268] sm:$0xff] %vm2166_vm1, %v2018_v17  ;;  %v2614_v19 = vpop.permute.xlu0 %2613  ;;  %2767 = vst.msk [vmem:[#allocation3 + $0xb8] sm:$0xff] %vm2166_vm1, %v2758_v18 }
 0x22d   :  { %2639 = vst.msk [vmem:[#allocation3 + $0x40] sm:$0xff] %vm2455_vm2, %v2614_v19  ;;  %v1351_v20 = vpop.f32.mrb[156].mxu0 }
 0x22e   :  { %v1352_v21 = vadd.f32 %v7101_v27, %v1351_v20  ;;  %v5570_v22 = vpop.f32.mrb[157].mxu0  ;;  %v6050_v20 = vld [vmem:[%s8037_s0 + $0x230] sm:$0xff]  }
 0x22f   :  { %v1354_v24 = vpop.f32.mrb[158].mxu0 }
 0x230   :  { %v2019_v25 = vmax.f32 %v1352_v21, 0.0  ;;  %v1355_v26 = vadd.f32 %v7101_v27, %v1354_v24  ;;  %v2616_v28 = vpop.permute.xlu0 %2615  ;;  %v5571_v29 = vpop.f32.mrb[159].mxu0 }
 0x231   :  { %2640 = vst.msk [vmem:[#allocation3 + $0x78] sm:$0xff] %vm2455_vm2, %v2616_v28  ;;  %v2759_v30 = vld [vmem:[#allocation2 + $0x260] sm:$0xff] }
 0x232   :  { %2245 = vst.msk [vmem:[#allocation2 + $0x270] sm:$0xff] %vm2166_vm1, %v2019_v25  ;;  %v2020_v31 = vmax.f32 %v1355_v26, 0.0  ;;  %5677 = vmatmul.mubr.bf16.gmra.mrb[8].mxu0 %v6043_v23  ;;  %2768 = vst.msk [vmem:[#allocation3 + $0xf0] sm:$0xff] %vm2166_vm1, %v2759_v30 }
 0x233   :  { %5680 = vmatprep.mubr.msk.bf16.mxu0 %vm6149_vm0, %v6148_v0  ;;  %v2760_v41 = vld [vmem:[#allocation2 + $0x268] sm:$0xff] }
 0x234   :  { %2246 = vst.msk [vmem:[#allocation2 + $0x278] sm:$0xff] %vm2166_vm1, %v2020_v31  ;;  %v3332_v32 = vpop.permute.xlu0 %3331  ;;  %2769 = vst.msk [vmem:[#allocation3 + $0x128] sm:$0xff] %vm2166_vm1, %v2760_v41 }
 0x235   :  { %3358 = vst.msk [vmem:[#allocation3 + $0x28] sm:$0xff] %vm2455_vm2, %v3332_v32  ;;  %v2618_v33 = vpop.permute.xlu1 %2617  ;;  %v1359_v34 = vpop.f32.mrb[160].mxu0 }
 0x236   :  { %2641 = vst.msk [vmem:[#allocation3 + $0xb0] sm:$0xff] %vm2455_vm2, %v2618_v33  ;;  %v1360_v35 = vadd.f32 %v7101_v27, %v1359_v34  ;;  %v5574_v37 = vpop.f32.mrb[161].mxu0 }
 0x237   :  { %v1362_v39 = vpop.f32.mrb[162].mxu0 }
 0x238   :  { %v2021_v63 = vmax.f32 %v1360_v35, 0.0  ;;  %v1363_v40 = vadd.f32 %v7101_v27, %v1362_v39  ;;  %v2620_v42 = vpop.permute.xlu0 %2619  ;;  %v5575_v43 = vpop.f32.mrb[163].mxu0 }
 0x239   :  { %v3334_v44 = vpop.permute.xlu1 %3333  ;;  %2642 = vst.msk [vmem:[#allocation3 + $0xe8] sm:$0xff] %vm2455_vm2, %v2620_v42  ;;  %v2761_v45 = vld [vmem:[#allocation2 + $0x270] sm:$0xff] }
 0x23a   :  { %2247 = vst.msk [vmem:[#allocation2 + $0x280] sm:$0xff] %vm2166_vm1, %v2021_v63  ;;  %v2022_v46 = vmax.f32 %v1363_v40, 0.0  ;;  %5681 = vmatmul.mubr.bf16.gmra.mrb[12].mxu0 %v6044_v38  ;;  %2770 = vst.msk [vmem:[#allocation3 + $0x160] sm:$0xff] %vm2166_vm1, %v2761_v45 }
 0x23b   :  { %3359 = vst.msk [vmem:[#allocation3 + $0x60] sm:$0xff] %vm2455_vm2, %v3334_v44  ;;  %5684 = vmatprep.mubr.msk.bf16.mxu0 %vm6149_vm0, %v6148_v0  ;;  %v2762_v47 = vld [vmem:[#allocation2 + $0x278] sm:$0xff] }
 0x23c   :  { %2248 = vst.msk [vmem:[#allocation2 + $0x288] sm:$0xff] %vm2166_vm1, %v2022_v46  ;;  %v3336_v48 = vpop.permute.xlu0 %3335  ;;  %2771 = vst.msk [vmem:[#allocation3 + $0x198] sm:$0xff] %vm2166_vm1, %v2762_v47 }
 0x23d   :  { %3360 = vst.msk [vmem:[#allocation3 + $0x98] sm:$0xff] %vm2455_vm2, %v3336_v48  ;;  %v2622_v49 = vpop.permute.xlu1 %2621  ;;  %v1367_v50 = vpop.f32.mrb[164].mxu0 }
 0x23e   :  { %2643 = vst.msk [vmem:[#allocation3 + $0x120] sm:$0xff] %vm2455_vm2, %v2622_v49  ;;  %v1368_v51 = vadd.f32 %v7101_v27, %v1367_v50  ;;  %v5578_v52 = vpop.f32.mrb[165].mxu0 }
 0x23f   :  { %v1370_v54 = vpop.f32.mrb[166].mxu0 }
 0x240   :  { %v2023_v55 = vmax.f32 %v1368_v51, 0.0  ;;  %v1371_v56 = vadd.f32 %v7101_v27, %v1370_v54  ;;  %v2624_v57 = vpop.permute.xlu0 %2623  ;;  %v5579_v58 = vpop.f32.mrb[167].mxu0 }
 0x241   :  { %v3338_v59 = vpop.permute.xlu1 %3337  ;;  %2644 = vst.msk [vmem:[#allocation3 + $0x158] sm:$0xff] %vm2455_vm2, %v2624_v57  ;;  %v2763_v60 = vld [vmem:[#allocation2 + $0x280] sm:$0xff] }
 0x242   :  { %2249 = vst.msk [vmem:[#allocation2 + $0x290] sm:$0xff] %vm2166_vm1, %v2023_v55  ;;  %v2024_v61 = vmax.f32 %v1371_v56, 0.0  ;;  %5685 = vmatmul.mubr.bf16.gmra.mrb[16].mxu0 %v6046_v53  ;;  %2772 = vst.msk [vmem:[#allocation3 + $0x1d0] sm:$0xff] %vm2166_vm1, %v2763_v60 }
 0x243   :  { %3361 = vst.msk [vmem:[#allocation3 + $0xd0] sm:$0xff] %vm2455_vm2, %v3338_v59  ;;  %v2773_v62 = vld [vmem:[#allocation2 + $0x288] sm:$0xff]  ;;  %5688 = vmatprep.mubr.msk.bf16.mxu0 %vm6149_vm0, %v6148_v0 }
 0x244   :  { %2250 = vst.msk [vmem:[#allocation2 + $0x298] sm:$0xff] %vm2166_vm1, %v2024_v61  ;;  %2791 = vrot.lane.b32.xlu0 %v2773_v62, %s6151_s28 }
 0x245   :  { %v2626_v1 = vpop.permute.xlu1 %2625  ;;  %v1375_v2 = vpop.f32.mrb[168].mxu0 }
 0x246   :  { %2645 = vst.msk [vmem:[#allocation3 + $0x190] sm:$0xff] %vm2455_vm2, %v2626_v1  ;;  %v1376_v3 = vadd.f32 %v7101_v27, %v1375_v2  ;;  %v2628_v4 = vpop.permute.xlu0 %2627  ;;  %v5582_v5 = vpop.f32.mrb[169].mxu0 }
 0x247   :  { %2646 = vst.msk [vmem:[#allocation3 + $0x1c8] sm:$0xff] %vm2455_vm2, %v2628_v4  ;;  %v1378_v7 = vpop.f32.mrb[170].mxu0 }
 0x248   :  { %v2025_v8 = vmax.f32 %v1376_v3, 0.0  ;;  %v1379_v9 = vadd.f32 %v7101_v27, %v1378_v7  ;;  %v5583_v10 = vpop.f32.mrb[171].mxu0 }
 0x249   :  { %v2774_v11 = vld [vmem:[#allocation2 + $0x290] sm:$0xff] }
 0x24a   :  { %2251 = vst.msk [vmem:[#allocation2 + $0x2a0] sm:$0xff] %vm2166_vm1, %v2025_v8  ;;  %v2026_v12 = vmax.f32 %v1379_v9, 0.0  ;;  %5689 = vmatmul.mubr.bf16.gmra.mrb[20].mxu0 %v6048_v6  ;;  %2793 = vrot.lane.b32.xlu1 %v2774_v11, %s6151_s28 }
 0x24b   :  { %v2775_v13 = vld [vmem:[#allocation2 + $0x298] sm:$0xff]  ;;  %5692 = vmatprep.mubr.msk.bf16.mxu0 %vm6149_vm0, %v6148_v0 }
 0x24c   :  { %2252 = vst.msk [vmem:[#allocation2 + $0x2a8] sm:$0xff] %vm2166_vm1, %v2026_v12  ;;  %v2666_v14 = vpop.permute.xlu0 %2665  ;;  %2795 = vrot.lane.b32.xlu0 %v2775_v13, %s6151_s28 }
 0x24d   :  { %2692 = vst.msk [vmem:[#allocation3 + $0x8] sm:$0xff] %vm2510_vm3, %v2666_v14  ;;  %v1383_v16 = vpop.f32.mrb[172].mxu0 }
 0x24e   :  { %v1384_v17 = vadd.f32 %v7101_v27, %v1383_v16  ;;  %v2668_v18 = vpop.permute.xlu1 %2667  ;;  %v5586_v19 = vpop.f32.mrb[173].mxu0 }
 0x24f   :  { %2693 = vst.msk [vmem:[#allocation3 + $0x40] sm:$0xff] %vm2510_vm3, %v2668_v18  ;;  %v1386_v21 = vpop.f32.mrb[174].mxu0 }
 0x250   :  { %v2027_v22 = vmax.f32 %v1384_v17, 0.0  ;;  %v1387_v23 = vadd.f32 %v7101_v27, %v1386_v21  ;;  %v5587_v24 = vpop.f32.mrb[175].mxu0 }
 0x251   :  { %v2776_v25 = vld [vmem:[#allocation2 + $0x2a0] sm:$0xff] }
 0x252   :  { %2253 = vst.msk [vmem:[#allocation2 + $0x2b0] sm:$0xff] %vm2166_vm1, %v2027_v22  ;;  %v2028_v26 = vmax.f32 %v1387_v23, 0.0  ;;  %5693 = vmatmul.mubr.bf16.gmra.mrb[24].mxu0 %v6050_v20  ;;  %2797 = vrot.lane.b32.xlu1 %v2776_v25, %s6151_s28 }
 0x253   :  { %v2777_v28 = vld [vmem:[#allocation2 + $0x2a8] sm:$0xff] }
 0x254   :  { %2254 = vst.msk [vmem:[#allocation2 + $0x2b8] sm:$0xff] %vm2166_vm1, %v2028_v26  ;;  %v2670_v29 = vpop.permute.xlu0 %2669  ;;  %2799 = vrot.lane.b32.xlu0 %v2777_v28, %s6151_s28 }
 0x255   :  { %2694 = vst.msk [vmem:[#allocation3 + $0x78] sm:$0xff] %vm2510_vm3, %v2670_v29  ;;  %v1391_v30 = vpop.f32.mrb[176].mxu0 }
 0x256   :  { %v1392_v31 = vadd.f32 %v7101_v27, %v1391_v30  ;;  %v2672_v41 = vpop.permute.xlu1 %2671  ;;  %v5590_v32 = vpop.f32.mrb[177].mxu0 }
 0x257   :  { %2695 = vst.msk [vmem:[#allocation3 + $0xb0] sm:$0xff] %vm2510_vm3, %v2672_v41  ;;  %v1394_v33 = vpop.f32.mrb[178].mxu0 }
 0x258   :  { %v2029_v34 = vmax.f32 %v1392_v31, 0.0  ;;  %v1395_v35 = vadd.f32 %v7101_v27, %v1394_v33  ;;  %v3386_v37 = vpop.permute.xlu0 %3385  ;;  %v5591_v38 = vpop.f32.mrb[179].mxu0  ;;  %v3500_v33 = vld [vmem:[#allocation3 + $0x38] sm:$0xff] }
 0x259   :  { %3412 = vst.msk [vmem:[#allocation3 + $0x28] sm:$0xff] %vm2510_vm3, %v3386_v37  ;;  %v2778_v39 = vld [vmem:[#allocation2 + $0x2b0] sm:$0xff] }
 0x25a   :  { %2255 = vst.msk [vmem:[#allocation2 + $0x2c0] sm:$0xff] %vm2166_vm1, %v2029_v34  ;;  %v2030_v63 = vmax.f32 %v1395_v35, 0.0  ;;  %v3388_v40 = vpop.permute.xlu1 %3387  ;;  %2801 = vrot.lane.b32.xlu1 %v2778_v39, %s6151_s28  ;;  %v3493_v39 = vld [vmem:[#allocation3] sm:$0xff] }
 0x25b   :  { %3413 = vst.msk [vmem:[#allocation3 + $0x60] sm:$0xff] %vm2510_vm3, %v3388_v40  ;;  %v2779_v42 = vld [vmem:[#allocation2 + $0x2b8] sm:$0xff] }
 0x25c   :  { %2256 = vst.msk [vmem:[#allocation2 + $0x2c8] sm:$0xff] %vm2166_vm1, %v2030_v63  ;;  %v2674_v43 = vpop.permute.xlu0 %2673  ;;  %2803 = vrot.lane.b32.xlu0 %v2779_v42, %s6151_s28  ;;  %v7415_v63 = vld [vmem:[%s8038_s2] ss:$0 sm:$0xff] }
 0x25d   :  { %2696 = vst.msk [vmem:[#allocation3 + $0xe8] sm:$0xff] %vm2510_vm3, %v2674_v43  ;;  %v1399_v44 = vpop.f32.mrb[180].mxu0 }
 0x25e   :  { %v1400_v45 = vadd.f32 %v7101_v27, %v1399_v44  ;;  %v2676_v46 = vpop.permute.xlu1 %2675  ;;  %v5594_v47 = vpop.f32.mrb[181].mxu0  ;;  %v3556_v44 = vpack.c.bf16 %v3500_v33, %v3493_v39 }
 0x25f   :  { %2697 = vst.msk [vmem:[#allocation3 + $0x120] sm:$0xff] %vm2510_vm3, %v2676_v46  ;;  %v1402_v48 = vpop.f32.mrb[182].mxu0 }
 0x260   :  { %v2031_v49 = vmax.f32 %v1400_v45, 0.0  ;;  %v1403_v50 = vadd.f32 %v7101_v27, %v1402_v48  ;;  %v3390_v51 = vpop.permute.xlu0 %3389  ;;  %v5595_v52 = vpop.f32.mrb[183].mxu0 }
 0x261   :  { %3414 = vst.msk [vmem:[#allocation3 + $0x98] sm:$0xff] %vm2510_vm3, %v3390_v51  ;;  %v2780_v53 = vld [vmem:[#allocation2 + $0x2c0] sm:$0xff] }
 0x262   :  { %2257 = vst.msk [vmem:[#allocation2 + $0x2d0] sm:$0xff] %vm2166_vm1, %v2031_v49  ;;  %v2032_v54 = vmax.f32 %v1403_v50, 0.0  ;;  %v3392_v55 = vpop.permute.xlu1 %3391  ;;  %2805 = vrot.lane.b32.xlu1 %v2780_v53, %s6151_s28 }
 0x263   :  { %3415 = vst.msk [vmem:[#allocation3 + $0xd0] sm:$0xff] %vm2510_vm3, %v3392_v55  ;;  %v2781_v58 = vld [vmem:[#allocation2 + $0x2c8] sm:$0xff] }
 0x264   :  { %2258 = vst.msk [vmem:[#allocation2 + $0x2d8] sm:$0xff] %vm2166_vm1, %v2032_v54  ;;  %v2678_v56 = vpop.permute.xlu0 %2677  ;;  %v3514_v54 = vld [vmem:[#allocation3 + $0xa8] sm:$0xff] }
 0x265   :  { %2698 = vst.msk [vmem:[#allocation3 + $0x158] sm:$0xff] %vm2510_vm3, %v2678_v56  ;;  %v1407_v57 = vpop.f32.mrb[184].mxu0 }
 0x266   :  { %v1408_v59 = vadd.f32 %v7101_v27, %v1407_v57  ;;  %v2680_v60 = vpop.permute.xlu1 %2679  ;;  %2807 = vrot.lane.b32.xlu1 %v2781_v58, %s6151_s28  ;;  %v5598_v61 = vpop.f32.mrb[185].mxu0 }
 0x267   :  { %2699 = vst.msk [vmem:[#allocation3 + $0x190] sm:$0xff] %vm2510_vm3, %v2680_v60  ;;  %v1410_v62 = vpop.f32.mrb[186].mxu0  ;;  %v3507_v60 = vld [vmem:[#allocation3 + $0x70] sm:$0xff] }
 0x268   :  { %v2033_v1 = vmax.f32 %v1408_v59, 0.0  ;;  %v1411_v2 = vadd.f32 %v7101_v27, %v1410_v62  ;;  %v5599_v3 = vpop.f32.mrb[187].mxu0 }
 0x269   :  { %v2827_v4 = vld [vmem:[#allocation2 + $0x2d0] sm:$0xff] }
 0x26a   :  { %2259 = vst.msk [vmem:[#allocation2 + $0x2e0] sm:$0xff] %vm2166_vm1, %v2033_v1  ;;  %v2034_v5 = vmax.f32 %v1411_v2, 0.0  ;;  %2845 = vrot.lane.b32.xlu0 %v2827_v4, %s6152_s20  ;;  %v3563_v2 = vpack.c.bf16 %v3514_v54, %v3507_v60 }
 0x26b   :  { %v2828_v6 = vld [vmem:[#allocation2 + $0x2d8] sm:$0xff] }
 0x26c   :  { %2260 = vst.msk [vmem:[#allocation2 + $0x2e8] sm:$0xff] %vm2166_vm1, %v2034_v5  ;;  %v2682_v7 = vpop.permute.xlu0 %2681  ;;  %2847 = vrot.lane.b32.xlu1 %v2828_v6, %s6152_s20 }
 0x26d   :  { %2700 = vst.msk [vmem:[#allocation3 + $0x1c8] sm:$0xff] %vm2510_vm3, %v2682_v7  ;;  %v1415_v8 = vpop.f32.mrb[188].mxu0 }
 0x26e   :  { %v1416_v9 = vadd.f32 %v7101_v27, %v1415_v8  ;;  %v5602_v10 = vpop.f32.mrb[189].mxu0 }
 0x26f   :  { %v1418_v11 = vpop.f32.mrb[190].mxu0  ;;  %v3528_v10 = vld [vmem:[#allocation3 + $0x118] sm:$0xff] }
 0x270   :  { %v2035_v12 = vmax.f32 %v1416_v9, 0.0  ;;  %v1419_v13 = vadd.f32 %v7101_v27, %v1418_v11  ;;  %v2720_v14 = vpop.permute.xlu0 %2719  ;;  %v5603_v16 = vpop.f32.mrb[191].mxu0 }
 0x271   :  { %2746 = vst.msk [vmem:[#allocation3 + $0x8] sm:$0xff] %vm2565_vm4, %v2720_v14  ;;  %v2829_v17 = vld [vmem:[#allocation2 + $0x2e0] sm:$0xff] }
 0x272   :  { %2261 = vst.msk [vmem:[#allocation2 + $0x2f0] sm:$0xff] %vm2166_vm1, %v2035_v12  ;;  %v2036_v18 = vmax.f32 %v1419_v13, 0.0  ;;  %2849 = vrot.lane.b32.xlu0 %v2829_v17, %s6152_s20  ;;  %v3521_v17 = vld [vmem:[#allocation3 + $0xe0] sm:$0xff] }
 0x273   :  { %v2830_v19 = vld [vmem:[#allocation2 + $0x2e8] sm:$0xff] }
 0x274   :  { %2262 = vst.msk [vmem:[#allocation2 + $0x2f8] sm:$0xff] %vm2166_vm1, %v2036_v18  ;;  %v2722_v20 = vpop.permute.xlu1 %2721  ;;  %2851 = vrot.lane.b32.xlu1 %v2830_v19, %s6152_s20 }
 0x275   :  { %2747 = vst.msk [vmem:[#allocation3 + $0x40] sm:$0xff] %vm2565_vm4, %v2722_v20  ;;  %v1423_v21 = vpop.f32.mrb[192].mxu0 }
 0x276   :  { %v1424_v22 = vadd.f32 %v7101_v27, %v1423_v21  ;;  %v2724_v23 = vpop.permute.xlu0 %2723  ;;  %v5606_v24 = vpop.f32.mrb[193].mxu0  ;;  %v3570_v21 = vpack.c.bf16 %v3528_v10, %v3521_v17 }
 0x277   :  { %2748 = vst.msk [vmem:[#allocation3 + $0x78] sm:$0xff] %vm2565_vm4, %v2724_v23  ;;  %v1426_v25 = vpop.f32.mrb[194].mxu0 }
 0x278   :  { %v2037_v26 = vmax.f32 %v1424_v22, 0.0  ;;  %v1427_v28 = vadd.f32 %v7101_v27, %v1426_v25  ;;  %v5607_v29 = vpop.f32.mrb[195].mxu0  ;;  %v3494_v35 = vld [vmem:[#allocation3 + $0x8] sm:$0xff] }
 0x279   :  { %v2831_v30 = vld [vmem:[#allocation2 + $0x2f0] sm:$0xff] }
 0x27a   :  { %2263 = vst.msk [vmem:[#allocation2 + $0x300] sm:$0xff] %vm2166_vm1, %v2037_v26  ;;  %v2038_v31 = vmax.f32 %v1427_v28, 0.0  ;;  %v3440_v41 = vpop.permute.xlu0 %3439  ;;  %2853 = vrot.lane.b32.xlu0 %v2831_v30, %s6152_s20  ;;  %v3542_v30 = vld [vmem:[#allocation3 + $0x188] sm:$0xff] }
 0x27b   :  { %3466 = vst.msk [vmem:[#allocation3 + $0x28] sm:$0xff] %vm2565_vm4, %v3440_v41  ;;  %v2832_v32 = vld [vmem:[#allocation2 + $0x2f8] sm:$0xff] }
 0x27c   :  { %2264 = vst.msk [vmem:[#allocation2 + $0x308] sm:$0xff] %vm2166_vm1, %v2038_v31  ;;  %v2726_v34 = vpop.permute.xlu1 %2725  ;;  %2855 = vrot.lane.b32.xlu1 %v2832_v32, %s6152_s20  ;;  %v3501_v37 = vld [vmem:[#allocation3 + $0x40] sm:$0xff] }
 0x27d   :  { %2749 = vst.msk [vmem:[#allocation3 + $0xb0] sm:$0xff] %vm2565_vm4, %v2726_v34  ;;  %v1431_v27 = vpop.f32.mrb[196].mxu0  ;;  %v3557_v38 = vpack.c.bf16 %v3501_v37, %v3494_v35  ;;  %v3535_v34 = vld [vmem:[#allocation3 + $0x150] sm:$0xff] }
 0x27e   :  { %v1432_v40 = vadd.f32 %v7415_v63, %v1431_v27  ;;  %v2728_v42 = vpop.permute.xlu0 %2727  ;;  %v5610_v43 = vpop.f32.mrb[197].mxu0  ;;  %v3508_v56 = vld [vmem:[#allocation3 + $0x78] sm:$0xff]  ;;  %v3577_v27 = vpack.c.bf16 %v3542_v30, %v3535_v34 }
 0x27f   :  { %2750 = vst.msk [vmem:[#allocation3 + $0xe8] sm:$0xff] %vm2565_vm4, %v2728_v42  ;;  %v1434_v45 = vpop.f32.mrb[198].mxu0  ;;  %4045 = vmatprep.mubr.bf16.mxu1 %v3557_v38 }
 0x280   :  { %v2039_v46 = vmax.f32 %v1432_v40, 0.0  ;;  %v1435_v47 = vadd.f32 %v7415_v63, %v1434_v45  ;;  %4046 = vmatmul.mubr.bf16.vlgmr.msra.gmra.mrb[168].mxu1 %v3556_v44  ;;  %v3442_v48 = vpop.permute.xlu1 %3441  ;;  %v5611_v49 = vpop.f32.mrb[199].mxu0 }
 0x281   :  { %3467 = vst.msk [vmem:[#allocation3 + $0x60] sm:$0xff] %vm2565_vm4, %v3442_v48  ;;  %v2833_v50 = vld [vmem:[#allocation2 + $0x300] sm:$0xff] }
 0x282   :  { %2265 = vst.msk [vmem:[#allocation2 + $0x310] sm:$0xff] %vm2166_vm1, %v2039_v46  ;;  %v2040_v51 = vmax.f32 %v1435_v47, 0.0  ;;  %v3444_v52 = vpop.permute.xlu0 %3443  ;;  %2857 = vrot.lane.b32.xlu0 %v2833_v50, %s6152_s20  ;;  %v1879_v42 = vpop.f32.mrb[136].mxu1 }
 0x283   :  { %3468 = vst.msk [vmem:[#allocation3 + $0x98] sm:$0xff] %vm2565_vm4, %v3444_v52  ;;  %v2834_v53 = vld [vmem:[#allocation2 + $0x308] sm:$0xff]  ;;  %v5834_v46 = vpop.f32.mrb[137].mxu1  ;;  %v1880_v50 = vadd.f32 %v7415_v63, %v1879_v42 }
 0x284   :  { %2266 = vst.msk [vmem:[#allocation2 + $0x318] sm:$0xff] %vm2166_vm1, %v2040_v51  ;;  %v2730_v55 = vpop.permute.xlu1 %2729  ;;  %2859 = vrot.lane.b32.xlu1 %v2834_v53, %s6152_s20  ;;  %v3515_v57 = vld [vmem:[#allocation3 + $0xb0] sm:$0xff]  ;;  %v1882_v48 = vpop.f32.mrb[138].mxu1  ;;  %v3549_v53 = vld [vmem:[#allocation3 + $0x1c0] sm:$0xff] }
 0x285   :  { %2751 = vst.msk [vmem:[#allocation3 + $0x120] sm:$0xff] %vm2565_vm4, %v2730_v55  ;;  %v1439_v58 = vpop.f32.mrb[200].mxu0  ;;  %v3564_v59 = vpack.c.bf16 %v3515_v57, %v3508_v56  ;;  %v5835_v51 = vpop.f32.mrb[139].mxu1  ;;  %v1883_v54 = vadd.f32 %v7415_v63, %v1882_v48  ;;  %v2151_v55 = vmax.f32 %v1880_v50, 0.0  ;;  %v3584_v60 = vpack.c.bf16 %v3549_v53, %v3549_v53 }
 0x286   :  { %v1440_v61 = vadd.f32 %v7415_v63, %v1439_v58  ;;  %v2732_v62 = vpop.permute.xlu0 %2731  ;;  %v5614_v1 = vpop.f32.mrb[201].mxu0  ;;  %v3522_v12 = vld [vmem:[#allocation3 + $0xe8] sm:$0xff] }
 0x287   :  { %2752 = vst.msk [vmem:[#allocation3 + $0x158] sm:$0xff] %vm2565_vm4, %v2732_v62  ;;  %v1442_v3 = vpop.f32.mrb[202].mxu0  ;;  %4053 = vmatprep.mubr.bf16.mxu1 %v3564_v59  ;;  %v2152_v57 = vmax.f32 %v1883_v54, 0.0 }
 0x288   :  { %v2041_v4 = vmax.f32 %v1440_v61, 0.0  ;;  %v1443_v5 = vadd.f32 %v7415_v63, %v1442_v3  ;;  %v5615_v6 = vpop.f32.mrb[203].mxu0  ;;  %4054 = vmatmul.mubr.bf16.gmra.mrb[172].mxu1 %v3563_v2  ;;  %2377 = vst.msk [vmem:[#allocation2 + $0x690] sm:$0xff] %vm2166_vm1, %v2151_v55 }
 0x289   :  { %v2835_v7 = vld [vmem:[#allocation2 + $0x310] sm:$0xff]  ;;  %2378 = vst.msk [vmem:[#allocation2 + $0x698] sm:$0xff] %vm2166_vm1, %v2152_v57 }
 0x28a   :  { %2267 = vst.msk [vmem:[#allocation2 + $0x320] sm:$0xff] %vm2166_vm1, %v2041_v4  ;;  %v2042_v8 = vmax.f32 %v1443_v5, 0.0  ;;  %2861 = vrot.lane.b32.xlu1 %v2835_v7, %s6152_s20 }
 0x28b   :  { %v2881_v9 = vld [vmem:[#allocation2 + $0x318] sm:$0xff] }
 0x28c   :  { %2268 = vst.msk [vmem:[#allocation2 + $0x328] sm:$0xff] %vm2166_vm1, %v2042_v8  ;;  %v2734_v11 = vpop.permute.xlu1 %2733  ;;  %2899 = vrot.lane.b32.xlu0 %v2881_v9, %s6150_s11  ;;  %v3529_v13 = vld [vmem:[#allocation3 + $0x120] sm:$0xff] }
 0x28d   :  { %2753 = vst.msk [vmem:[#allocation3 + $0x190] sm:$0xff] %vm2565_vm4, %v2734_v11  ;;  %v1447_v14 = vpop.f32.mrb[204].mxu0  ;;  %v3571_v16 = vpack.c.bf16 %v3529_v13, %v3522_v12 }
 0x28e   :  { %v1448_v18 = vadd.f32 %v7415_v63, %v1447_v14  ;;  %v2736_v19 = vpop.permute.xlu0 %2735  ;;  %v5618_v20 = vpop.f32.mrb[205].mxu0  ;;  %v3536_v31 = vld [vmem:[#allocation3 + $0x158] sm:$0xff] }
 0x28f   :  { %2754 = vst.msk [vmem:[#allocation3 + $0x1c8] sm:$0xff] %vm2565_vm4, %v2736_v19  ;;  %v1450_v22 = vpop.f32.mrb[206].mxu0  ;;  %4061 = vmatprep.mubr.bf16.mxu1 %v3571_v16 }
 0x290   :  { %v2043_v23 = vmax.f32 %v1448_v18, 0.0  ;;  %v1451_v24 = vadd.f32 %v7415_v63, %v1450_v22  ;;  %v5619_v25 = vpop.f32.mrb[207].mxu0  ;;  %4062 = vmatmul.mubr.bf16.gmra.mrb[176].mxu1 %v3570_v21 }
 0x291   :  { %v2882_v26 = vld [vmem:[#allocation2 + $0x320] sm:$0xff] }
 0x292   :  { %2269 = vst.msk [vmem:[#allocation2 + $0x330] sm:$0xff] %vm2166_vm1, %v2043_v23  ;;  %v2044_v28 = vmax.f32 %v1451_v24, 0.0  ;;  %2901 = vrot.lane.b32.xlu1 %v2882_v26, %s6150_s11  ;;  %v1887_v26 = vpop.f32.mrb[140].mxu1 }
 0x293   :  { %v2883_v29 = vld [vmem:[#allocation2 + $0x328] sm:$0xff] }
 0x294   :  { %2270 = vst.msk [vmem:[#allocation2 + $0x338] sm:$0xff] %vm2166_vm1, %v2044_v28  ;;  %2903 = vrot.lane.b32.xlu0 %v2883_v29, %s6150_s11  ;;  %v3543_v41 = vld [vmem:[#allocation3 + $0x190] sm:$0xff]  ;;  %v1888_v28 = vadd.f32 %v7415_v63, %v1887_v26  ;;  %v5838_v29 = vpop.f32.mrb[141].mxu1 }
 0x295   :  { %v1455_v32 = vpop.f32.mrb[208].mxu0  ;;  %v3578_v33 = vpack.c.bf16 %v3543_v41, %v3536_v31 }
 0x296   :  { %v1456_v35 = vadd.f32 %v7415_v63, %v1455_v32  ;;  %v5622_v37 = vpop.f32.mrb[209].mxu0  ;;  %v3550_v38 = vld [vmem:[#allocation3 + $0x1c8] sm:$0xff]  ;;  %v2153_v41 = vmax.f32 %v1888_v28, 0.0 }
 0x297   :  { %v1458_v39 = vpop.f32.mrb[210].mxu0  ;;  %4069 = vmatprep.mubr.bf16.mxu1 %v3578_v33  ;;  %v3585_v40 = vpack.c.bf16 %v3550_v38, %v3550_v38  ;;  %v1890_v37 = vpop.f32.mrb[142].mxu1 }
 0x298   :  { %v2045_v43 = vmax.f32 %v1456_v35, 0.0  ;;  %v1459_v44 = vadd.f32 %v7415_v63, %v1458_v39  ;;  %v5623_v45 = vpop.f32.mrb[211].mxu0  ;;  %4070 = vmatmul.mubr.bf16.gmra.mrb[180].mxu1 %v3577_v27  ;;  %2379 = vst.msk [vmem:[#allocation2 + $0x6a0] sm:$0xff] %vm2166_vm1, %v2153_v41  ;;  %v5839_v42 = vpop.f32.mrb[143].mxu1 }
 0x299   :  { %4077 = vmatprep.mubr.bf16.mxu1 %v3585_v40  ;;  %v2884_v47 = vld [vmem:[#allocation2 + $0x330] sm:$0xff]  ;;  %v1891_v40 = vadd.f32 %v7415_v63, %v1890_v37  ;;  %v1895_v46 = vpop.f32.mrb[144].mxu1 }
 0x29a   :  { %2271 = vst.msk [vmem:[#allocation2 + $0x340] sm:$0xff] %vm2166_vm1, %v2045_v43  ;;  %v2046_v49 = vmax.f32 %v1459_v44, 0.0  ;;  %2905 = vrot.lane.b32.xlu1 %v2884_v47, %s6150_s11  ;;  %v1896_v47 = vadd.f32 %v7415_v63, %v1895_v46  ;;  %v5842_v48 = vpop.f32.mrb[145].mxu1 }
 0x29b   :  { %v2885_v52 = vld [vmem:[#allocation2 + $0x338] sm:$0xff]  ;;  %v2154_v45 = vmax.f32 %v1891_v40, 0.0  ;;  %v1898_v51 = vpop.f32.mrb[146].mxu1 }
 0x29c   :  { %2272 = vst.msk [vmem:[#allocation2 + $0x348] sm:$0xff] %vm2166_vm1, %v2046_v49  ;;  %2907 = vrot.lane.b32.xlu0 %v2885_v52, %s6150_s11  ;;  %v2155_v53 = vmax.f32 %v1896_v47, 0.0  ;;  %v1899_v54 = vadd.f32 %v7415_v63, %v1898_v51  ;;  %v5843_v55 = vpop.f32.mrb[147].mxu1 }
 0x29d   :  { %v1463_v56 = vpop.f32.mrb[212].mxu0  ;;  %2380 = vst.msk [vmem:[#allocation2 + $0x6a8] sm:$0xff] %vm2166_vm1, %v2154_v45 }
 0x29e   :  { %v1464_v58 = vadd.f32 %v7415_v63, %v1463_v56  ;;  %v5626_v59 = vpop.f32.mrb[213].mxu0  ;;  %2381 = vst.msk [vmem:[#allocation2 + $0x6b0] sm:$0xff] %vm2166_vm1, %v2155_v53 }
 0x29f   :  { %v1466_v61 = vpop.f32.mrb[214].mxu0 }
 0x2a0   :  { %v2047_v62 = vmax.f32 %v1464_v58, 0.0  ;;  %v1467_v1 = vadd.f32 %v7415_v63, %v1466_v61  ;;  %v5627_v2 = vpop.f32.mrb[215].mxu0  ;;  %4078 = vmatmul.mubr.bf16.gmra.mrb[184].mxu1 %v3584_v60  ;;  %v2156_v60 = vmax.f32 %v1899_v54, 0.0  ;;  %v1903_v61 = vpop.f32.mrb[148].mxu1 }
 0x2a1   :  { %v2886_v3 = vld [vmem:[#allocation2 + $0x340] sm:$0xff] }
 0x2a2   :  { %2273 = vst.msk [vmem:[#allocation2 + $0x350] sm:$0xff] %vm2166_vm1, %v2047_v62  ;;  %v2048_v4 = vmax.f32 %v1467_v1, 0.0  ;;  %2909 = vrot.lane.b32.xlu1 %v2886_v3, %s6150_s11  ;;  %v1904_v3 = vadd.f32 %v7415_v63, %v1903_v61  ;;  %2382 = vst.msk [vmem:[#allocation2 + $0x6b8] sm:$0xff] %vm2166_vm1, %v2156_v60 }
 0x2a3   :  { %v2887_v5 = vld [vmem:[#allocation2 + $0x348] sm:$0xff] }
 0x2a4   :  { %2274 = vst.msk [vmem:[#allocation2 + $0x358] sm:$0xff] %vm2166_vm1, %v2048_v4  ;;  %2911 = vrot.lane.b32.xlu0 %v2887_v5, %s6150_s11  ;;  %v5846_v4 = vpop.f32.mrb[149].mxu1 }
 0x2a5   :  { %v1471_v6 = vpop.f32.mrb[216].mxu0  ;;  %v1906_v5 = vpop.f32.mrb[150].mxu1 }
 0x2a6   :  { %v1472_v7 = vadd.f32 %v7415_v63, %v1471_v6  ;;  %v5630_v8 = vpop.f32.mrb[217].mxu0 }
 0x2a7   :  { %v1474_v9 = vpop.f32.mrb[218].mxu0  ;;  %v2157_v8 = vmax.f32 %v1904_v3, 0.0 }
 0x2a8   :  { %v2049_v10 = vmax.f32 %v1472_v7, 0.0  ;;  %v1475_v11 = vadd.f32 %v7415_v63, %v1474_v9  ;;  %v5631_v12 = vpop.f32.mrb[219].mxu0  ;;  %v1907_v9 = vadd.f32 %v7415_v63, %v1906_v5 }
 0x2a9   :  { %v2888_v13 = vld [vmem:[#allocation2 + $0x350] sm:$0xff]  ;;  %2383 = vst.msk [vmem:[#allocation2 + $0x6c0] sm:$0xff] %vm2166_vm1, %v2157_v8 }
 0x2aa   :  { %2275 = vst.msk [vmem:[#allocation2 + $0x360] sm:$0xff] %vm2166_vm1, %v2049_v10  ;;  %v2050_v14 = vmax.f32 %v1475_v11, 0.0  ;;  %2913 = vrot.lane.b32.xlu1 %v2888_v13, %s6150_s11  ;;  %v5847_v10 = vpop.f32.mrb[151].mxu1 }
 0x2ab   :  { %v2889_v17 = vld [vmem:[#allocation2 + $0x358] sm:$0xff]  ;;  %v1911_v11 = vpop.f32.mrb[152].mxu1 }
 0x2ac   :  { %2276 = vst.msk [vmem:[#allocation2 + $0x368] sm:$0xff] %vm2166_vm1, %v2050_v14  ;;  %v2158_v14 = vmax.f32 %v1907_v9, 0.0 }
 0x2ad   :  { %v1479_v16 = vpop.f32.mrb[220].mxu0 }
 0x2ae   :  { %v1480_v18 = vadd.f32 %v7415_v63, %v1479_v16  ;;  %2915 = vrot.lane.b32.xlu1 %v2889_v17, %s6150_s11  ;;  %v5634_v19 = vpop.f32.mrb[221].mxu0  ;;  %v1912_v16 = vadd.f32 %v7415_v63, %v1911_v11  ;;  %v5850_v17 = vpop.f32.mrb[153].mxu1  ;;  %2384 = vst.msk [vmem:[#allocation2 + $0x6c8] sm:$0xff] %vm2166_vm1, %v2158_v14 }
 0x2af   :  { %v1482_v20 = vpop.f32.mrb[222].mxu0  ;;  %v1914_v19 = vpop.f32.mrb[154].mxu1 }
 0x2b0   :  { %v2051_v21 = vmax.f32 %v1480_v18, 0.0  ;;  %v1483_v22 = vadd.f32 %v7415_v63, %v1482_v20  ;;  %v5635_v23 = vpop.f32.mrb[223].mxu0  ;;  %v5851_v26 = vpop.f32.mrb[155].mxu1 }
 0x2b1   :  { %v2935_v24 = vld [vmem:[#allocation2 + $0x360] sm:$0xff]  ;;  %v2159_v23 = vmax.f32 %v1912_v16, 0.0  ;;  %v1919_v41 = vpop.f32.mrb[156].mxu1 }
 0x2b2   :  { %2277 = vst.msk [vmem:[#allocation2 + $0x370] sm:$0xff] %vm2166_vm1, %v2051_v21  ;;  %v2052_v25 = vmax.f32 %v1483_v22, 0.0  ;;  %2944 = vst.msk [vmem:[#allocation3 + $0x18] sm:$0xff] %vm2166_vm1, %v2935_v24  ;;  %v1915_v24 = vadd.f32 %v7415_v63, %v1914_v19 }
 0x2b3   :  { %v2936_v30 = vld [vmem:[#allocation2 + $0x368] sm:$0xff]  ;;  %2385 = vst.msk [vmem:[#allocation2 + $0x6d0] sm:$0xff] %vm2166_vm1, %v2159_v23 }
 0x2b4   :  { %2278 = vst.msk [vmem:[#allocation2 + $0x378] sm:$0xff] %vm2166_vm1, %v2052_v25  ;;  %2945 = vst.msk [vmem:[#allocation3 + $0x50] sm:$0xff] %vm2166_vm1, %v2936_v30 }
 0x2b5   :  { %v1487_v31 = vpop.f32.mrb[224].mxu0  ;;  %v3476_v46 = vld [vmem:[#allocation2 + $0x6c8] sm:$0xff] }
 0x2b6   :  { %v1488_v32 = vadd.f32 %v7415_v63, %v1487_v31  ;;  %v2792_v33 = vpop.permute.xlu0 %2791  ;;  %v5638_v34 = vpop.f32.mrb[225].mxu0  ;;  %v2160_v31 = vmax.f32 %v1915_v24, 0.0  ;;  %3485 = vst.msk [vmem:[#allocation3 + $0x68] sm:$0xff] %vm2166_vm1, %v3476_v46 }
 0x2b7   :  { %2818 = vst.msk [vmem:[#allocation3 + $0x10] sm:$0xff] %vm2455_vm2, %v2792_v33  ;;  %v1490_v35 = vpop.f32.mrb[226].mxu0  ;;  %v5854_v33 = vpop.f32.mrb[157].mxu1 }
 0x2b8   :  { %v2053_v27 = vmax.f32 %v1488_v32, 0.0  ;;  %v1491_v38 = vadd.f32 %v7415_v63, %v1490_v35  ;;  %v5639_v39 = vpop.f32.mrb[227].mxu0  ;;  %v1920_v32 = vadd.f32 %v7415_v63, %v1919_v41  ;;  %2386 = vst.msk [vmem:[#allocation2 + $0x6d8] sm:$0xff] %vm2166_vm1, %v2160_v31  ;;  %v1922_v37 = vpop.f32.mrb[158].mxu1 }
 0x2b9   :  { %v2937_v43 = vld [vmem:[#allocation2 + $0x370] sm:$0xff]  ;;  %v1923_v39 = vadd.f32 %v7415_v63, %v1922_v37  ;;  %v5855_v40 = vpop.f32.mrb[159].mxu1 }
 0x2ba   :  { %2279 = vst.msk [vmem:[#allocation2 + $0x380] sm:$0xff] %vm2166_vm1, %v2053_v27  ;;  %v2054_v44 = vmax.f32 %v1491_v38, 0.0  ;;  %2946 = vst.msk [vmem:[#allocation3 + $0x88] sm:$0xff] %vm2166_vm1, %v2937_v43  ;;  %v3475_v27 = vld [vmem:[#allocation2 + $0x6c0] sm:$0xff]  ;;  %v2161_v38 = vmax.f32 %v1920_v32, 0.0  ;;  %v3477_v54 = vld [vmem:[#allocation2 + $0x6d0] sm:$0xff] }
 0x2bb   :  { %v2938_v49 = vld [vmem:[#allocation2 + $0x378] sm:$0xff]  ;;  %3484 = vst.msk [vmem:[#allocation3 + $0x30] sm:$0xff] %vm2166_vm1, %v3475_v27  ;;  %v2162_v47 = vmax.f32 %v1923_v39, 0.0  ;;  %3486 = vst.msk [vmem:[#allocation3 + $0xa0] sm:$0xff] %vm2166_vm1, %v3477_v54 }
 0x2bc   :  { %2280 = vst.msk [vmem:[#allocation2 + $0x388] sm:$0xff] %vm2166_vm1, %v2054_v44  ;;  %v2794_v50 = vpop.permute.xlu1 %2793  ;;  %2947 = vst.msk [vmem:[#allocation3 + $0xc0] sm:$0xff] %vm2166_vm1, %v2938_v49  ;;  %v1927_v44 = vpop.f32.mrb[160].mxu1 }
 0x2bd   :  { %2819 = vst.msk [vmem:[#allocation3 + $0x48] sm:$0xff] %vm2455_vm2, %v2794_v50  ;;  %v1495_v52 = vpop.f32.mrb[228].mxu0  ;;  %v1928_v48 = vadd.f32 %v7415_v63, %v1927_v44  ;;  %v5858_v49 = vpop.f32.mrb[161].mxu1 }
 0x2be   :  { %v1496_v56 = vadd.f32 %v7415_v63, %v1495_v52  ;;  %v2796_v57 = vpop.permute.xlu0 %2795  ;;  %v5642_v58 = vpop.f32.mrb[229].mxu0  ;;  %2387 = vst.msk [vmem:[#allocation2 + $0x6e0] sm:$0xff] %vm2166_vm1, %v2161_v38  ;;  %2388 = vst.msk [vmem:[#allocation2 + $0x6e8] sm:$0xff] %vm2166_vm1, %v2162_v47 }
 0x2bf   :  { %2820 = vst.msk [vmem:[#allocation3 + $0x80] sm:$0xff] %vm2455_vm2, %v2796_v57  ;;  %v1498_v59 = vpop.f32.mrb[230].mxu0  ;;  %v2163_v55 = vmax.f32 %v1928_v48, 0.0 }
 0x2c0   :  { %v2055_v62 = vmax.f32 %v1496_v56, 0.0  ;;  %v1499_v1 = vadd.f32 %v7415_v63, %v1498_v59  ;;  %v5643_v2 = vpop.f32.mrb[231].mxu0  ;;  %v1930_v56 = vpop.f32.mrb[162].mxu1 }
 0x2c1   :  { %v2939_v6 = vld [vmem:[#allocation2 + $0x380] sm:$0xff]  ;;  %v1931_v60 = vadd.f32 %v7415_v63, %v1930_v56  ;;  %v5859_v61 = vpop.f32.mrb[163].mxu1  ;;  %2389 = vst.msk [vmem:[#allocation2 + $0x6f0] sm:$0xff] %vm2166_vm1, %v2163_v55 }
 0x2c2   :  { %2281 = vst.msk [vmem:[#allocation2 + $0x390] sm:$0xff] %vm2166_vm1, %v2055_v62  ;;  %v2056_v7 = vmax.f32 %v1499_v1, 0.0  ;;  %2948 = vst.msk [vmem:[#allocation3 + $0xf8] sm:$0xff] %vm2166_vm1, %v2939_v6  ;;  %v3478_v62 = vld [vmem:[#allocation2 + $0x6d8] sm:$0xff]  ;;  %v1935_v1 = vpop.f32.mrb[164].mxu1 }
 0x2c3   :  { %v2940_v12 = vld [vmem:[#allocation2 + $0x388] sm:$0xff]  ;;  %3487 = vst.msk [vmem:[#allocation3 + $0xd8] sm:$0xff] %vm2166_vm1, %v3478_v62  ;;  %v2164_v4 = vmax.f32 %v1931_v60, 0.0  ;;  %v1936_v5 = vadd.f32 %v7415_v63, %v1935_v1  ;;  %v5862_v6 = vpop.f32.mrb[165].mxu1 }
 0x2c4   :  { %2282 = vst.msk [vmem:[#allocation2 + $0x398] sm:$0xff] %vm2166_vm1, %v2056_v7  ;;  %v2798_v13 = vpop.permute.xlu1 %2797  ;;  %2949 = vst.msk [vmem:[#allocation3 + $0x130] sm:$0xff] %vm2166_vm1, %v2940_v12  ;;  %v1938_v8 = vpop.f32.mrb[166].mxu1 }
 0x2c5   :  { %2821 = vst.msk [vmem:[#allocation3 + $0xb8] sm:$0xff] %vm2455_vm2, %v2798_v13  ;;  %v1503_v18 = vpop.f32.mrb[232].mxu0  ;;  %v3479_v10 = vld [vmem:[#allocation2 + $0x6e0] sm:$0xff]  ;;  %v2165_v11 = vmax.f32 %v1936_v5, 0.0  ;;  %v5863_v12 = vpop.f32.mrb[167].mxu1  ;;  %v3480_v17 = vld [vmem:[#allocation2 + $0x6e8] sm:$0xff] }
 0x2c6   :  { %v1504_v20 = vadd.f32 %v7415_v63, %v1503_v18  ;;  %v2800_v21 = vpop.permute.xlu0 %2799  ;;  %v5646_v22 = vpop.f32.mrb[233].mxu0  ;;  %2390 = vst.msk [vmem:[#allocation2 + $0x6f8] sm:$0xff] %vm2166_vm1, %v2164_v4  ;;  %3488 = vst.msk [vmem:[#allocation3 + $0x110] sm:$0xff] %vm2166_vm1, %v3479_v10  ;;  %v6070_v10 = vld [vmem:[%s8039_s3 + $0xc0] sm:$0xff]  }
 0x2c7   :  { %2822 = vst.msk [vmem:[#allocation3 + $0xf0] sm:$0xff] %vm2455_vm2, %v2800_v21  ;;  %v1506_v25 = vpop.f32.mrb[234].mxu0  ;;  %5243 = vmatprep.subr.bf16.mxu1 %v6070_v10 }
 0x2c8   :  { %v2057_v28 = vmax.f32 %v1504_v20, 0.0  ;;  %v1507_v29 = vadd.f32 %v7415_v63, %v1506_v25  ;;  %v5647_v30 = vpop.f32.mrb[235].mxu0  ;;  %2391 = vst.msk [vmem:[#allocation2 + $0x700] sm:$0xff] %vm2166_vm1, %v2165_v11  ;;  %3489 = vst.msk [vmem:[#allocation3 + $0x148] sm:$0xff] %vm2166_vm1, %v3480_v17  ;;  %v3481_v23 = vld [vmem:[#allocation2 + $0x6f0] sm:$0xff]  ;;  %v6071_v11 = vld [vmem:[%s8039_s3 + $0x80] sm:$0xff]  }
 0x2c9   :  { %v2941_v34 = vld [vmem:[#allocation2 + $0x390] sm:$0xff]  ;;  %3490 = vst.msk [vmem:[#allocation3 + $0x180] sm:$0xff] %vm2166_vm1, %v3481_v23  ;;  %5244 = vmatpush3.bf16.msra.mxu1 %v6071_v11 }
 0x2ca   :  { %2283 = vst.msk [vmem:[#allocation2 + $0x3a0] sm:$0xff] %vm2166_vm1, %v2057_v28  ;;  %v2058_v35 = vmax.f32 %v1507_v29, 0.0  ;;  %2950 = vst.msk [vmem:[#allocation3 + $0x168] sm:$0xff] %vm2166_vm1, %v2941_v34 }
 0x2cb   :  { %v2942_v42 = vld [vmem:[#allocation2 + $0x398] sm:$0xff] }
 0x2cc   :  { %2284 = vst.msk [vmem:[#allocation2 + $0x3a8] sm:$0xff] %vm2166_vm1, %v2058_v35  ;;  %v2802_v43 = vpop.permute.xlu1 %2801  ;;  %2951 = vst.msk [vmem:[#allocation3 + $0x1a0] sm:$0xff] %vm2166_vm1, %v2942_v42 }
 0x2cd   :  { %2823 = vst.msk [vmem:[#allocation3 + $0x128] sm:$0xff] %vm2455_vm2, %v2802_v43  ;;  %v1511_v45 = vpop.f32.mrb[236].mxu0  ;;  %v3482_v28 = vld [vmem:[#allocation2 + $0x6f8] sm:$0xff] }
 0x2ce   :  { %v1512_v50 = vadd.f32 %v7415_v63, %v1511_v45  ;;  %v2804_v51 = vpop.permute.xlu0 %2803  ;;  %v5650_v52 = vpop.f32.mrb[237].mxu0  ;;  %3491 = vst.msk [vmem:[#allocation3 + $0x1b8] sm:$0xff] %vm2166_vm1, %v3482_v28  ;;  %v6074_v28 = vld [vmem:[%s8039_s3 + $0xd0] sm:$0xff]  }
 0x2cf   :  { %2824 = vst.msk [vmem:[#allocation3 + $0x160] sm:$0xff] %vm2455_vm2, %v2804_v51  ;;  %v1514_v53 = vpop.f32.mrb[238].mxu0  ;;  %v3483_v31 = vld [vmem:[#allocation2 + $0x700] sm:$0xff] }
 0x2d0   :  { %v2059_v57 = vmax.f32 %v1512_v50, 0.0  ;;  %v1515_v58 = vadd.f32 %v7415_v63, %v1514_v53  ;;  %v5651_v59 = vpop.f32.mrb[239].mxu0  ;;  %3492 = vst.msk [vmem:[#allocation3 + $0x1f0] sm:$0xff] %vm2166_vm1, %v3483_v31 }
 0x2d1   :  { %v2943_v2 = vld [vmem:[#allocation2 + $0x3a0] sm:$0xff] }
 0x2d2   :  { %2285 = vst.msk [vmem:[#allocation2 + $0x3b0] sm:$0xff] %vm2166_vm1, %v2059_v57  ;;  %v2060_v3 = vmax.f32 %v1515_v58, 0.0  ;;  %2952 = vst.msk [vmem:[#allocation3 + $0x1d8] sm:$0xff] %vm2166_vm1, %v2943_v2 }
 0x2d3   :  { %v2953_v7 = vld [vmem:[#allocation2 + $0x3a8] sm:$0xff] }
 0x2d4   :  { %2286 = vst.msk [vmem:[#allocation2 + $0x3b8] sm:$0xff] %vm2166_vm1, %v2060_v3  ;;  %v2806_v9 = vpop.permute.xlu1 %2805  ;;  %2971 = vrot.lane.b32.xlu0 %v2953_v7, %s6151_s28 }
 0x2d5   :  { %2825 = vst.msk [vmem:[#allocation3 + $0x198] sm:$0xff] %vm2455_vm2, %v2806_v9  ;;  %v1519_v13 = vpop.f32.mrb[240].mxu0 }
 0x2d6   :  { %v1520_v14 = vadd.f32 %v7415_v63, %v1519_v13  ;;  %v5654_v16 = vpop.f32.mrb[241].mxu0 }
 0x2d7   :  { %v1522_v18 = vpop.f32.mrb[242].mxu0 }
 0x2d8   :  { %v2061_v19 = vmax.f32 %v1520_v14, 0.0  ;;  %v1523_v20 = vadd.f32 %v7415_v63, %v1522_v18  ;;  %v2808_v21 = vpop.permute.xlu1 %2807  ;;  %v5655_v22 = vpop.f32.mrb[243].mxu0 }
 0x2d9   :  { %2826 = vst.msk [vmem:[#allocation3 + $0x1d0] sm:$0xff] %vm2455_vm2, %v2808_v21  ;;  %v2954_v24 = vld [vmem:[#allocation2 + $0x3b0] sm:$0xff] }
 0x2da   :  { %2287 = vst.msk [vmem:[#allocation2 + $0x3c0] sm:$0xff] %vm2166_vm1, %v2061_v19  ;;  %v2062_v25 = vmax.f32 %v1523_v20, 0.0  ;;  %2973 = vrot.lane.b32.xlu1 %v2954_v24, %s6151_s28 }
 0x2db   :  { %v2955_v26 = vld [vmem:[#allocation2 + $0x3b8] sm:$0xff] }
 0x2dc   :  { %2288 = vst.msk [vmem:[#allocation2 + $0x3c8] sm:$0xff] %vm2166_vm1, %v2062_v25  ;;  %v2846_v29 = vpop.permute.xlu0 %2845  ;;  %2975 = vrot.lane.b32.xlu0 %v2955_v26, %s6151_s28  ;;  %v6072_v25 = vld [vmem:[%s8039_s3 + $0xc8] sm:$0xff]  }
 0x2dd   :  { %2872 = vst.msk [vmem:[#allocation3 + $0x10] sm:$0xff] %vm2510_vm3, %v2846_v29  ;;  %v1527_v30 = vpop.f32.mrb[244].mxu0  ;;  %v6073_v26 = vld [vmem:[%s8039_s3 + $0x88] sm:$0xff]   ;;  %5245 = vmatprep.subr.bf16.mxu1 %v6072_v25 }
 0x2de   :  { %v1528_v41 = vadd.f32 %v7415_v63, %v1527_v30  ;;  %v2848_v32 = vpop.permute.xlu1 %2847  ;;  %v5658_v33 = vpop.f32.mrb[245].mxu0  ;;  %5246 = vmatpush3.bf16.msra.mxu1 %v6073_v26 }
 0x2df   :  { %2873 = vst.msk [vmem:[#allocation3 + $0x48] sm:$0xff] %vm2510_vm3, %v2848_v32  ;;  %v1530_v34 = vpop.f32.mrb[246].mxu0  ;;  %5247 = vmatprep.subr.bf16.mxu1 %v6074_v28 }
 0x2e0   :  { %v2063_v35 = vmax.f32 %v1528_v41, 0.0  ;;  %v1531_v37 = vadd.f32 %v7415_v63, %v1530_v34  ;;  %v5659_v27 = vpop.f32.mrb[247].mxu0 }
 0x2e1   :  { %v2956_v38 = vld [vmem:[#allocation2 + $0x3c0] sm:$0xff] }
 0x2e2   :  { %2289 = vst.msk [vmem:[#allocation2 + $0x3d0] sm:$0xff] %vm2166_vm1, %v2063_v35  ;;  %v2064_v39 = vmax.f32 %v1531_v37, 0.0  ;;  %2977 = vrot.lane.b32.xlu1 %v2956_v38, %s6151_s28  ;;  %v6075_v37 = vld [vmem:[%s8039_s3 + $0x90] sm:$0xff]  }
 0x2e3   :  { %v2957_v40 = vld [vmem:[#allocation2 + $0x3c8] sm:$0xff]  ;;  %5248 = vmatpush3.bf16.msra.mxu1 %v6075_v37  ;;  %v6147_v37 = vld [vmem:[%s8038_s2] ss:$0 sm:$0xff] }
 0x2e4   :  { %2290 = vst.msk [vmem:[#allocation2 + $0x3d8] sm:$0xff] %vm2166_vm1, %v2064_v39  ;;  %v2850_v42 = vpop.permute.xlu0 %2849  ;;  %2979 = vrot.lane.b32.xlu0 %v2957_v40, %s6151_s28 }
 0x2e5   :  { %2874 = vst.msk [vmem:[#allocation3 + $0x80] sm:$0xff] %vm2510_vm3, %v2850_v42  ;;  %v1535_v43 = vpop.f32.mrb[248].mxu0 }
 0x2e6   :  { %v1536_v44 = vadd.f32 %v7415_v63, %v1535_v43  ;;  %v2852_v45 = vpop.permute.xlu1 %2851  ;;  %v5662_v46 = vpop.f32.mrb[249].mxu0 }
 0x2e7   :  { %2875 = vst.msk [vmem:[#allocation3 + $0xb8] sm:$0xff] %vm2510_vm3, %v2852_v45  ;;  %v1538_v47 = vpop.f32.mrb[250].mxu0  ;;  %v6076_v45 = vld [vmem:[%s8039_s3 + $0xd8] sm:$0xff]  }
 0x2e8   :  { %v2065_v48 = vmax.f32 %v1536_v44, 0.0  ;;  %v1539_v49 = vadd.f32 %v7415_v63, %v1538_v47  ;;  %v5663_v50 = vpop.f32.mrb[251].mxu0  ;;  %v6077_v46 = vld [vmem:[%s8039_s3 + $0x98] sm:$0xff]   ;;  %5249 = vmatprep.subr.bf16.mxu1 %v6076_v45 }
 0x2e9   :  { %v2958_v51 = vld [vmem:[#allocation2 + $0x3d0] sm:$0xff]  ;;  %5250 = vmatpush3.bf16.msra.mxu1 %v6077_v46 }
 0x2ea   :  { %2291 = vst.msk [vmem:[#allocation2 + $0x3e0] sm:$0xff] %vm2166_vm1, %v2065_v48  ;;  %v2066_v52 = vmax.f32 %v1539_v49, 0.0  ;;  %2981 = vrot.lane.b32.xlu1 %v2958_v51, %s6151_s28 }
 0x2eb   :  { %v2959_v53 = vld [vmem:[#allocation2 + $0x3d8] sm:$0xff] }
 0x2ec   :  { %2292 = vst.msk [vmem:[#allocation2 + $0x3e8] sm:$0xff] %vm2166_vm1, %v2066_v52  ;;  %v2854_v54 = vpop.permute.xlu0 %2853  ;;  %2983 = vrot.lane.b32.xlu0 %v2959_v53, %s6151_s28 }
 0x2ed   :  { %2876 = vst.msk [vmem:[#allocation3 + $0xf0] sm:$0xff] %vm2510_vm3, %v2854_v54  ;;  %v1543_v55 = vpop.f32.mrb[252].mxu0 }
 0x2ee   :  { %v1544_v56 = vadd.f32 %v7415_v63, %v1543_v55  ;;  %v2856_v57 = vpop.permute.xlu1 %2855  ;;  %v5666_v58 = vpop.f32.mrb[253].mxu0  ;;  %v6078_v55 = vld [vmem:[%s8039_s3 + $0xe0] sm:$0xff]  }
 0x2ef   :  { %2877 = vst.msk [vmem:[#allocation3 + $0x128] sm:$0xff] %vm2510_vm3, %v2856_v57  ;;  %v1546_v59 = vpop.f32.mrb[254].mxu0  ;;  %5251 = vmatprep.subr.bf16.mxu1 %v6078_v55  ;;  %v3372_v55 = vld [vmem:[#allocation2 + $0x658] sm:$0xff] }
 0x2f0   :  { %v2067_v60 = vmax.f32 %v1544_v56, 0.0  ;;  %v1547_v61 = vadd.f32 %v7415_v63, %v1546_v59  ;;  %v5667_v62 = vpop.f32.mrb[255].mxu0  ;;  %v6079_v56 = vld [vmem:[%s8039_s3 + $0xa0] sm:$0xff]  }
 0x2f1   :  { %v2960_v1 = vld [vmem:[#allocation2 + $0x3e0] sm:$0xff]  ;;  %5252 = vmatpush3.bf16.msra.mxu1 %v6079_v56  ;;  %v6080_v62 = vld [vmem:[%s8039_s3 + $0xe8] sm:$0xff]   ;;  %v3191_v56 = vld [vmem:[#allocation2 + $0x530] sm:$0xff] }
 0x2f2   :  { %2293 = vst.msk [vmem:[#allocation2 + $0x3f0] sm:$0xff] %vm2166_vm1, %v2067_v60  ;;  %v2068_v2 = vmax.f32 %v1547_v61, 0.0  ;;  %2985 = vrot.lane.b32.xlu1 %v2960_v1, %s6151_s28  ;;  %v6081_v1 = vld [vmem:[%s8039_s3 + $0xa8] sm:$0xff]   ;;  %5253 = vmatprep.subr.bf16.mxu1 %v6080_v62  ;;  %v3246_v62 = vld [vmem:[#allocation2 + $0x580] sm:$0xff] }
 0x2f3   :  { %v2961_v3 = vld [vmem:[#allocation2 + $0x3e8] sm:$0xff] }
 0x2f4   :  { %2294 = vst.msk [vmem:[#allocation2 + $0x3f8] sm:$0xff] %vm2166_vm1, %v2068_v2  ;;  %v2858_v4 = vpop.permute.xlu0 %2857  ;;  %2987 = vrot.lane.b32.xlu0 %v2961_v3, %s6151_s28 }
 0x2f5   :  { %2878 = vst.msk [vmem:[#allocation3 + $0x160] sm:$0xff] %vm2510_vm3, %v2858_v4  ;;  %v1551_v5 = vpop.f32.mrb[0].mxu0  ;;  %5254 = vmatpush3.bf16.msra.mxu1 %v6081_v1  ;;  %v3319_v1 = vld [vmem:[#allocation2 + $0x618] sm:$0xff] }
 0x2f6   :  { %v1552_v6 = vadd.f32 %v7415_v63, %v1551_v5  ;;  %v2860_v7 = vpop.permute.xlu1 %2859  ;;  %v5670_v8 = vpop.f32.mrb[1].mxu0 }
 0x2f7   :  { %2879 = vst.msk [vmem:[#allocation3 + $0x198] sm:$0xff] %vm2510_vm3, %v2860_v7  ;;  %v1554_v9 = vpop.f32.mrb[2].mxu0 }
 0x2f8   :  { %v2069_v12 = vmax.f32 %v1552_v6, 0.0  ;;  %v1555_v13 = vadd.f32 %v7415_v63, %v1554_v9  ;;  %v5671_v14 = vpop.f32.mrb[3].mxu0  ;;  %v6082_v6 = vld [vmem:[%s8039_s3 + $0xf0] sm:$0xff]  }
 0x2f9   :  { %v3007_v16 = vld [vmem:[#allocation2 + $0x3f0] sm:$0xff]  ;;  %5255 = vmatprep.subr.bf16.mxu1 %v6082_v6  ;;  %v3140_v6 = vld [vmem:[#allocation2 + $0x500] sm:$0xff] }
 0x2fa   :  { %2295 = vst.msk [vmem:[#allocation2 + $0x400] sm:$0xff] %vm2166_vm1, %v2069_v12  ;;  %v2070_v17 = vmax.f32 %v1555_v13, 0.0  ;;  %3025 = vrot.lane.b32.xlu0 %v3007_v16, %s6152_s20  ;;  %v6083_v14 = vld [vmem:[%s8039_s3 + $0xb0] sm:$0xff]  }
 0x2fb   :  { %v3008_v18 = vld [vmem:[#allocation2 + $0x3f8] sm:$0xff]  ;;  %5256 = vmatpush3.bf16.msra.mxu1 %v6083_v14  ;;  %v3193_v14 = vld [vmem:[#allocation2 + $0x540] sm:$0xff] }
 0x2fc   :  { %2296 = vst.msk [vmem:[#allocation2 + $0x408] sm:$0xff] %vm2166_vm1, %v2070_v17  ;;  %v2862_v19 = vpop.permute.xlu1 %2861  ;;  %3027 = vrot.lane.b32.xlu1 %v3008_v18, %s6152_s20  ;;  %v6084_v17 = vld [vmem:[%s8039_s3 + $0xf8] sm:$0xff]  }
 0x2fd   :  { %2880 = vst.msk [vmem:[#allocation3 + $0x1d0] sm:$0xff] %vm2510_vm3, %v2862_v19  ;;  %v1559_v20 = vpop.f32.mrb[4].mxu0  ;;  %5257 = vmatprep.subr.bf16.mxu1 %v6084_v17 }
 0x2fe   :  { %v1560_v21 = vadd.f32 %v7415_v63, %v1559_v20  ;;  %v2900_v22 = vpop.permute.xlu0 %2899  ;;  %v5674_v23 = vpop.f32.mrb[5].mxu0  ;;  %v6085_v20 = vld [vmem:[%s8039_s3 + $0xb8] sm:$0xff]  }
 0x2ff   :  { %2926 = vst.msk [vmem:[#allocation3 + $0x10] sm:$0xff] %vm2565_vm4, %v2900_v22  ;;  %v1562_v24 = vpop.f32.mrb[6].mxu0  ;;  %5258 = vmatpush3.bf16.msra.mxu1 %v6085_v20  ;;  %v3427_v20 = vld [vmem:[#allocation2 + $0x6a8] sm:$0xff] }
 0x300   :  { %v2071_v29 = vmax.f32 %v1560_v21, 0.0  ;;  %v1563_v30 = vadd.f32 %v7415_v63, %v1562_v24  ;;  %v5675_v31 = vpop.f32.mrb[7].mxu0 }
 0x301   :  { %v3009_v41 = vld [vmem:[#allocation2 + $0x400] sm:$0xff]  ;;  %v3243_v31 = vld [vmem:[#allocation2 + $0x568] sm:$0xff] }
 0x302   :  { %2297 = vst.msk [vmem:[#allocation2 + $0x410] sm:$0xff] %vm2166_vm1, %v2071_v29  ;;  %v2072_v32 = vmax.f32 %v1563_v30, 0.0  ;;  %3029 = vrot.lane.b32.xlu0 %v3009_v41, %s6152_s20 }
 0x303   :  { %v3010_v33 = vld [vmem:[#allocation2 + $0x408] sm:$0xff] }
 0x304   :  { %2298 = vst.msk [vmem:[#allocation2 + $0x418] sm:$0xff] %vm2166_vm1, %v2072_v32  ;;  %v2902_v34 = vpop.permute.xlu1 %2901  ;;  %3031 = vrot.lane.b32.xlu1 %v3010_v33, %s6152_s20  ;;  %v6086_v32 = vld [vmem:[%s8039_s3 + $0x140] sm:$0xff]  }
 0x305   :  { %2927 = vst.msk [vmem:[#allocation3 + $0x48] sm:$0xff] %vm2565_vm4, %v2902_v34  ;;  %v1567_v35 = vpop.f32.mrb[8].mxu0  ;;  %v3424_v34 = vld [vmem:[#allocation2 + $0x690] sm:$0xff]  ;;  %5289 = vmatprep.subr.bf16.mxu1 %v6086_v32  ;;  %v3321_v32 = vld [vmem:[#allocation2 + $0x628] sm:$0xff] }
 0x306   :  { %v1568_v27 = vadd.f32 %v7415_v63, %v1567_v35  ;;  %v2904_v38 = vpop.permute.xlu0 %2903  ;;  %v5678_v39 = vpop.f32.mrb[9].mxu0 }
 0x307   :  { %2928 = vst.msk [vmem:[#allocation3 + $0x80] sm:$0xff] %vm2565_vm4, %v2904_v38  ;;  %v1570_v40 = vpop.f32.mrb[10].mxu0 }
 0x308   :  { %v2073_v42 = vmax.f32 %v1568_v27, 0.0  ;;  %v1571_v43 = vadd.f32 %v7415_v63, %v1570_v40  ;;  %v5679_v44 = vpop.f32.mrb[11].mxu0 }
 0x309   :  { %v3011_v47 = vld [vmem:[#allocation2 + $0x410] sm:$0xff]  ;;  %v3317_v44 = vld [vmem:[#allocation2 + $0x608] sm:$0xff] }
 0x30a   :  { %2299 = vst.msk [vmem:[#allocation2 + $0x420] sm:$0xff] %vm2166_vm1, %v2073_v42  ;;  %v2074_v48 = vmax.f32 %v1571_v43, 0.0  ;;  %3033 = vrot.lane.b32.xlu0 %v3011_v47, %s6152_s20  ;;  %v3244_v47 = vld [vmem:[#allocation2 + $0x570] sm:$0xff] }
 0x30b   :  { %v3012_v49 = vld [vmem:[#allocation2 + $0x418] sm:$0xff] }
 0x30c   :  { %2300 = vst.msk [vmem:[#allocation2 + $0x428] sm:$0xff] %vm2166_vm1, %v2074_v48  ;;  %v2906_v50 = vpop.permute.xlu1 %2905  ;;  %3035 = vrot.lane.b32.xlu1 %v3012_v49, %s6152_s20  ;;  %v3137_v49 = vld [vmem:[#allocation2 + $0x4e8] sm:$0xff] }
 0x30d   :  { %2929 = vst.msk [vmem:[#allocation3 + $0xb8] sm:$0xff] %vm2565_vm4, %v2906_v50  ;;  %v1575_v51 = vpop.f32.mrb[12].mxu0 }
 0x30e   :  { %v1576_v52 = vadd.f32 %v7415_v63, %v1575_v51  ;;  %v2908_v53 = vpop.permute.xlu0 %2907  ;;  %v5682_v54 = vpop.f32.mrb[13].mxu0  ;;  %v3371_v51 = vld [vmem:[#allocation2 + $0x650] sm:$0xff] }
 0x30f   :  { %2930 = vst.msk [vmem:[#allocation3 + $0xf0] sm:$0xff] %vm2565_vm4, %v2908_v53  ;;  %v1578_v57 = vpop.f32.mrb[14].mxu0  ;;  %v3138_v53 = vld [vmem:[#allocation2 + $0x4f0] sm:$0xff] }
 0x310   :  { %v2075_v58 = vmax.f32 %v1576_v52, 0.0  ;;  %v1579_v59 = vadd.f32 %v7415_v63, %v1578_v57  ;;  %v5683_v60 = vpop.f32.mrb[15].mxu0  ;;  %v3318_v52 = vld [vmem:[#allocation2 + $0x610] sm:$0xff]  ;;  %v3192_v57 = vld [vmem:[#allocation2 + $0x538] sm:$0xff] }
 0x311   :  { %v3013_v61 = vld [vmem:[#allocation2 + $0x420] sm:$0xff]  ;;  %v3245_v60 = vld [vmem:[#allocation2 + $0x578] sm:$0xff] }
 0x312   :  { %2301 = vst.msk [vmem:[#allocation2 + $0x430] sm:$0xff] %vm2166_vm1, %v2075_v58  ;;  %v2076_v2 = vmax.f32 %v1579_v59, 0.0  ;;  %3037 = vrot.lane.b32.xlu0 %v3013_v61, %s6152_s20  ;;  %v3425_v58 = vld [vmem:[#allocation2 + $0x698] sm:$0xff]  ;;  %v3426_v59 = vld [vmem:[#allocation2 + $0x6a0] sm:$0xff] }
 0x313   :  { %v3014_v3 = vld [vmem:[#allocation2 + $0x428] sm:$0xff] }
 0x314   :  { %2302 = vst.msk [vmem:[#allocation2 + $0x438] sm:$0xff] %vm2166_vm1, %v2076_v2  ;;  %v2910_v4 = vpop.permute.xlu1 %2909  ;;  %3039 = vrot.lane.b32.xlu1 %v3014_v3, %s6152_s20  ;;  %v3320_v3 = vld [vmem:[#allocation2 + $0x620] sm:$0xff] }
 0x315   :  { %2931 = vst.msk [vmem:[#allocation3 + $0x128] sm:$0xff] %vm2565_vm4, %v2910_v4  ;;  %v1583_v5 = vpop.f32.mrb[16].mxu0  ;;  %v3139_v4 = vld [vmem:[#allocation2 + $0x4f8] sm:$0xff] }
 0x316   :  { %v1584_v7 = vadd.f32 %v7415_v63, %v1583_v5  ;;  %v2912_v8 = vpop.permute.xlu0 %2911  ;;  %v5686_v9 = vpop.f32.mrb[17].mxu0 }
 0x317   :  { %2932 = vst.msk [vmem:[#allocation3 + $0x160] sm:$0xff] %vm2565_vm4, %v2912_v8  ;;  %v1586_v10 = vpop.f32.mrb[18].mxu0 }
 0x318   :  { %v2077_v11 = vmax.f32 %v1584_v7, 0.0  ;;  %v1587_v12 = vadd.f32 %v7415_v63, %v1586_v10  ;;  %v5687_v13 = vpop.f32.mrb[19].mxu0  ;;  %v3373_v7 = vld [vmem:[#allocation2 + $0x660] sm:$0xff] }
 0x319   :  { %v3015_v16 = vld [vmem:[#allocation2 + $0x430] sm:$0xff]  ;;  %v3374_v13 = vld [vmem:[#allocation2 + $0x668] sm:$0xff] }
 0x31a   :  { %2303 = vst.msk [vmem:[#allocation2 + $0x440] sm:$0xff] %vm2166_vm1, %v2077_v11  ;;  %v2078_v18 = vmax.f32 %v1587_v12, 0.0  ;;  %3041 = vrot.lane.b32.xlu0 %v3015_v16, %s6152_s20 }
 0x31b   :  { %v3061_v22 = vld [vmem:[#allocation2 + $0x438] sm:$0xff] }
 0x31c   :  { %2304 = vst.msk [vmem:[#allocation2 + $0x448] sm:$0xff] %vm2166_vm1, %v2078_v18  ;;  %v2914_v19 = vpop.permute.xlu1 %2913 }
 0x31d   :  { %2933 = vst.msk [vmem:[#allocation3 + $0x198] sm:$0xff] %vm2565_vm4, %v2914_v19  ;;  %v1591_v21 = vpop.f32.mrb[20].mxu0  ;;  %v3194_v19 = vld [vmem:[#allocation2 + $0x548] sm:$0xff] }
 0x31e   :  { %v1592_v23 = vadd.f32 %v7415_v63, %v1591_v21  ;;  %3079 = vrot.lane.b32.xlu0 %v3061_v22, %s6150_s11  ;;  %v5690_v24 = vpop.f32.mrb[21].mxu0  ;;  %v3428_v22 = vld [vmem:[#allocation2 + $0x6b0] sm:$0xff] }
 0x31f   :  { %v1594_v25 = vpop.f32.mrb[22].mxu0 }
 0x320   :  { %v2079_v26 = vmax.f32 %v1592_v23, 0.0  ;;  %v1595_v28 = vadd.f32 %v7415_v63, %v1594_v25  ;;  %v2916_v29 = vpop.permute.xlu1 %2915  ;;  %v5691_v30 = vpop.f32.mrb[23].mxu0 }
 0x321   :  { %2934 = vst.msk [vmem:[#allocation3 + $0x1d0] sm:$0xff] %vm2565_vm4, %v2916_v29  ;;  %v3062_v41 = vld [vmem:[#allocation2 + $0x440] sm:$0xff] }
 0x322   :  { %2305 = vst.msk [vmem:[#allocation2 + $0x450] sm:$0xff] %vm2166_vm1, %v2079_v26  ;;  %v2080_v33 = vmax.f32 %v1595_v28, 0.0  ;;  %3263 = vrot.lane.b32.xlu0 %v3243_v31, %s6150_s11  ;;  %3081 = vrot.lane.b32.xlu1 %v3062_v41, %s6150_s11  ;;  %v3247_v28 = vld [vmem:[#allocation2 + $0x588] sm:$0xff]  ;;  %v3248_v41 = vld [vmem:[#allocation2 + $0x590] sm:$0xff] }
 0x323   :  { %v3063_v35 = vld [vmem:[#allocation2 + $0x448] sm:$0xff] }
 0x324   :  { %2306 = vst.msk [vmem:[#allocation2 + $0x458] sm:$0xff] %vm2166_vm1, %v2080_v33 }
 0x325   :  { %v1599_v63 = vpop.f32.mrb[24].mxu0 }
 0x326   :  { %v1600_v27 = vadd.f32 %v6147_v37, %v1599_v63  ;;  %3445 = vrot.lane.b32.xlu1 %v3424_v34, %s6150_s11  ;;  %3083 = vrot.lane.b32.xlu0 %v3063_v35, %s6150_s11  ;;  %v5694_v38 = vpop.f32.mrb[25].mxu0 }
 0x327   :  { %v1602_v39 = vpop.f32.mrb[26].mxu0  ;;  %v3375_v38 = vld [vmem:[#allocation2 + $0x670] sm:$0xff] }
 0x328   :  { %v2081_v40 = vmax.f32 %v1600_v27, 0.0  ;;  %v1603_v42 = vadd.f32 %v6147_v37, %v1602_v39  ;;  %v5695_v43 = vpop.f32.mrb[27].mxu0  ;;  %v3141_v27 = vld [vmem:[#allocation2 + $0x508] sm:$0xff] }
 0x329   :  { %v3064_v45 = vld [vmem:[#allocation2 + $0x450] sm:$0xff] }
 0x32a   :  { %2307 = vst.msk [vmem:[#allocation2 + $0x460] sm:$0xff] %vm2166_vm1, %v2081_v40  ;;  %v2082_v46 = vmax.f32 %v1603_v42, 0.0  ;;  %3339 = vrot.lane.b32.xlu0 %v3317_v44, %s6151_s28  ;;  %3085 = vrot.lane.b32.xlu1 %v3064_v45, %s6150_s11  ;;  %v3195_v43 = vld [vmem:[#allocation2 + $0x550] sm:$0xff]  ;;  %v3429_v44 = vld [vmem:[#allocation2 + $0x6b8] sm:$0xff] }
 0x32b   :  { %v3065_v48 = vld [vmem:[#allocation2 + $0x458] sm:$0xff] }
 0x32c   :  { %2308 = vst.msk [vmem:[#allocation2 + $0x468] sm:$0xff] %vm2166_vm1, %v2082_v46 }
 0x32e   :  { %3265 = vrot.lane.b32.xlu1 %v3244_v47, %s6150_s11  ;;  %3087 = vrot.lane.b32.xlu0 %v3065_v48, %s6150_s11 }
 0x331   :  { %v3066_v50 = vld [vmem:[#allocation2 + $0x460] sm:$0xff] }
 0x332   :  { %3159 = vrot.lane.b32.xlu0 %v3137_v49, %s6151_s28  ;;  %3089 = vrot.lane.b32.xlu1 %v3066_v50, %s6150_s11  ;;  %v3249_v50 = vld [vmem:[#allocation2 + $0x598] sm:$0xff] }
 0x333   :  { %v3067_v54 = vld [vmem:[#allocation2 + $0x468] sm:$0xff] }
 0x336   :  { %3393 = vrot.lane.b32.xlu0 %v3371_v51, %s6152_s20  ;;  %3341 = vrot.lane.b32.xlu1 %v3318_v52, %s6151_s28 }
 0x33a   :  { %3161 = vrot.lane.b32.xlu1 %v3138_v53, %s6151_s28  ;;  %3091 = vrot.lane.b32.xlu0 %v3067_v54, %s6150_s11 }
 0x33e   :  { %3395 = vrot.lane.b32.xlu1 %v3372_v55, %s6152_s20  ;;  %3213 = vrot.lane.b32.xlu0 %v3191_v56, %s6152_s20 }
 0x342   :  { %3215 = vrot.lane.b32.xlu1 %v3192_v57, %s6152_s20  ;;  %3447 = vrot.lane.b32.xlu0 %v3425_v58, %s6150_s11 }
 0x346   :  { %v2972_v61 = vpop.permute.xlu0 %2971  ;;  %3449 = vrot.lane.b32.xlu1 %v3426_v59, %s6150_s11  ;;  %3267 = vrot.lane.b32.xlu0 %v3245_v60, %s6150_s11 }
 0x347   :  { %2998 = vst.msk [vmem:[#allocation3 + $0x18] sm:$0xff] %vm2455_vm2, %v2972_v61 }
 0x34a   :  { %3269 = vrot.lane.b32.xlu1 %v3246_v62, %s6150_s11  ;;  %3343 = vrot.lane.b32.xlu0 %v3319_v1, %s6151_s28 }
 0x34c   :  { %v2974_v2 = vpop.permute.xlu1 %2973 }
 0x34d   :  { %2999 = vst.msk [vmem:[#allocation3 + $0x50] sm:$0xff] %vm2455_vm2, %v2974_v2 }
 0x34e   :  { %v2976_v5 = vpop.permute.xlu0 %2975  ;;  %3345 = vrot.lane.b32.xlu1 %v3320_v3, %s6151_s28  ;;  %3163 = vrot.lane.b32.xlu0 %v3139_v4, %s6151_s28 }
 0x34f   :  { %3000 = vst.msk [vmem:[#allocation3 + $0x88] sm:$0xff] %vm2455_vm2, %v2976_v5 }
 0x352   :  { %3165 = vrot.lane.b32.xlu1 %v3140_v6, %s6151_s28  ;;  %3397 = vrot.lane.b32.xlu0 %v3373_v7, %s6152_s20 }
 0x353   :  { %v5213_v8 = vpop.f32.mrb[168].mxu1 }
 0x354   :  { %v5214_v9 = vpop.f32.mrb[169].mxu1  ;;  %v2978_v10 = vpop.permute.xlu1 %2977 }
 0x355   :  { %v7699_v11 = vadd.f32 %v5214_v9, %v5213_v8  ;;  %3001 = vst.msk [vmem:[#allocation3 + $0xc0] sm:$0xff] %vm2455_vm2, %v2978_v10  ;;  %v5216_v12 = vpop.f32.mrb[170].mxu1 }
 0x356   :  { %v5217_v16 = vpop.f32.mrb[171].mxu1  ;;  %v2980_v17 = vpop.permute.xlu0 %2979  ;;  %3399 = vrot.lane.b32.xlu1 %v3374_v13, %s6152_s20  ;;  %3217 = vrot.lane.b32.xlu0 %v3193_v14, %s6152_s20  ;;  %v3495_v14 = vld [vmem:[#allocation3 + $0x10] sm:$0xff] }
 0x357   :  { %v7704_v18 = vadd.f32 %v5217_v16, %v5216_v12  ;;  %3002 = vst.msk [vmem:[#allocation3 + $0xf8] sm:$0xff] %vm2455_vm2, %v2980_v17  ;;  %v6087_v16 = vld [vmem:[%s8039_s3 + $0x100] sm:$0xff]  }
 0x35a   :  { %3219 = vrot.lane.b32.xlu1 %v3194_v19, %s6152_s20  ;;  %3451 = vrot.lane.b32.xlu0 %v3427_v20, %s6150_s11  ;;  %v6088_v19 = vld [vmem:[%s8039_s3 + $0x148] sm:$0xff]  }
 0x35b   :  { %v5219_v21 = vpop.f32.mrb[172].mxu1 }
 0x35c   :  { %v5220_v23 = vpop.f32.mrb[173].mxu1  ;;  %v2982_v24 = vpop.permute.xlu1 %2981 }
 0x35d   :  { %v7709_v25 = vadd.f32 %v5220_v23, %v5219_v21  ;;  %3003 = vst.msk [vmem:[#allocation3 + $0x130] sm:$0xff] %vm2455_vm2, %v2982_v24  ;;  %v5222_v26 = vpop.f32.mrb[174].mxu1  ;;  %v6090_v23 = vld [vmem:[%s8039_s3 + $0x150] sm:$0xff]   ;;  %v3516_v24 = vld [vmem:[#allocation3 + $0xb8] sm:$0xff] }
 0x35e   :  { %v5223_v29 = vpop.f32.mrb[175].mxu1  ;;  %v2984_v30 = vpop.permute.xlu0 %2983  ;;  %3453 = vrot.lane.b32.xlu1 %v3428_v22, %s6150_s11  ;;  %3271 = vrot.lane.b32.xlu0 %v3247_v28, %s6150_s11  ;;  %v6089_v22 = vld [vmem:[%s8039_s3 + $0x108] sm:$0xff]  }
 0x35f   :  { %v7714_v31 = vadd.f32 %v5223_v29, %v5222_v26  ;;  %3004 = vst.msk [vmem:[#allocation3 + $0x168] sm:$0xff] %vm2455_vm2, %v2984_v30 }
 0x362   :  { %3273 = vrot.lane.b32.xlu1 %v3248_v41, %s6150_s11  ;;  %3347 = vrot.lane.b32.xlu0 %v3321_v32, %s6151_s28  ;;  %v3509_v32 = vld [vmem:[#allocation3 + $0x80] sm:$0xff] }
 0x363   :  { %v5225_v33 = vpop.f32.mrb[176].mxu1 }
 0x364   :  { %v5226_v34 = vpop.f32.mrb[177].mxu1  ;;  %v2986_v63 = vpop.permute.xlu1 %2985 }
 0x365   :  { %v7719_v35 = vadd.f32 %v5226_v34, %v5225_v33  ;;  %3005 = vst.msk [vmem:[#allocation3 + $0x1a0] sm:$0xff] %vm2455_vm2, %v2986_v63  ;;  %v5228_v37 = vpop.f32.mrb[178].mxu1  ;;  %v6091_v33 = vld [vmem:[%s8039_s3 + $0x110] sm:$0xff]   ;;  %v3565_v34 = vpack.c.bf16 %v3516_v24, %v3509_v32  ;;  %v6092_v63 = vld [vmem:[%s8039_s3 + $0x158] sm:$0xff]  }
 0x366   :  { %v5229_v39 = vpop.f32.mrb[179].mxu1  ;;  %v2988_v40 = vpop.permute.xlu0 %2987  ;;  %3167 = vrot.lane.b32.xlu1 %v3141_v27, %s6151_s28  ;;  %3401 = vrot.lane.b32.xlu0 %v3375_v38, %s6152_s20  ;;  %v6093_v38 = vld [vmem:[%s8039_s3 + $0x118] sm:$0xff]  }
 0x367   :  { %v7724_v42 = vadd.f32 %v5229_v39, %v5228_v37  ;;  %3006 = vst.msk [vmem:[#allocation3 + $0x1d8] sm:$0xff] %vm2455_vm2, %v2988_v40  ;;  %v6094_v39 = vld [vmem:[%s8039_s3 + $0x160] sm:$0xff]   ;;  %v3530_v40 = vld [vmem:[#allocation3 + $0x128] sm:$0xff] }
 0x36a   :  { %3221 = vrot.lane.b32.xlu1 %v3195_v43, %s6152_s20  ;;  %3455 = vrot.lane.b32.xlu0 %v3429_v44, %s6150_s11 }
 0x36b   :  { %v5231_v45 = vpop.f32.mrb[180].mxu1 }
 0x36c   :  { %v5232_v46 = vpop.f32.mrb[181].mxu1  ;;  %v3026_v47 = vpop.permute.xlu0 %3025 }
 0x36d   :  { %v7729_v48 = vadd.f32 %v5232_v46, %v5231_v45  ;;  %3052 = vst.msk [vmem:[#allocation3 + $0x18] sm:$0xff] %vm2510_vm3, %v3026_v47  ;;  %v5234_v49 = vpop.f32.mrb[182].mxu1 }
 0x36e   :  { %v5235_v51 = vpop.f32.mrb[183].mxu1  ;;  %v3028_v52 = vpop.permute.xlu1 %3027  ;;  %3275 = vrot.lane.b32.xlu1 %v3249_v50, %s6150_s11  ;;  %v6095_v50 = vld [vmem:[%s8039_s3 + $0x120] sm:$0xff]  }
 0x36f   :  { %v7733_v53 = vadd.f32 %v5235_v51, %v5234_v49  ;;  %3053 = vst.msk [vmem:[#allocation3 + $0x50] sm:$0xff] %vm2510_vm3, %v3028_v52  ;;  %v3523_v49 = vld [vmem:[#allocation3 + $0xf0] sm:$0xff]  ;;  %v6096_v52 = vld [vmem:[%s8039_s3 + $0x168] sm:$0xff]  }
 0x370   :  { %v3572_v51 = vpack.c.bf16 %v3530_v40, %v3523_v49 }
 0x373   :  { %v5237_v54 = vpop.f32.mrb[184].mxu1 }
 0x374   :  { %v5238_v55 = vpop.f32.mrb[185].mxu1  ;;  %v3030_v56 = vpop.permute.xlu0 %3029 }
 0x375   :  { %v7736_v57 = vadd.f32 %v5238_v55, %v5237_v54  ;;  %3054 = vst.msk [vmem:[#allocation3 + $0x88] sm:$0xff] %vm2510_vm3, %v3030_v56  ;;  %v5240_v58 = vpop.f32.mrb[186].mxu1  ;;  %v6097_v56 = vld [vmem:[%s8039_s3 + $0x128] sm:$0xff]  }
 0x376   :  { %v5241_v59 = vpop.f32.mrb[187].mxu1  ;;  %v3032_v60 = vpop.permute.xlu1 %3031  ;;  %v6098_v58 = vld [vmem:[%s8039_s3 + $0x170] sm:$0xff]  }
 0x377   :  { %3055 = vst.msk [vmem:[#allocation3 + $0xc0] sm:$0xff] %vm2510_vm3, %v3032_v60  ;;  %v3544_v59 = vld [vmem:[#allocation3 + $0x198] sm:$0xff] }
 0x37c   :  { %v3034_v61 = vpop.permute.xlu0 %3033 }
 0x37d   :  { %3056 = vst.msk [vmem:[#allocation3 + $0xf8] sm:$0xff] %vm2510_vm3, %v3034_v61 }
 0x37e   :  { %v3036_v62 = vpop.permute.xlu1 %3035 }
 0x37f   :  { %3057 = vst.msk [vmem:[#allocation3 + $0x130] sm:$0xff] %vm2510_vm3, %v3036_v62 }
 0x384   :  { %v3038_v1 = vpop.permute.xlu0 %3037 }
 0x385   :  { %3058 = vst.msk [vmem:[#allocation3 + $0x168] sm:$0xff] %vm2510_vm3, %v3038_v1 }
 0x386   :  { %v3040_v2 = vpop.permute.xlu1 %3039 }
 0x387   :  { %3059 = vst.msk [vmem:[#allocation3 + $0x1a0] sm:$0xff] %vm2510_vm3, %v3040_v2 }
 0x388   :  { %3113 = vst.msk [vmem:[#allocation3 + $0x1a0] sm:$0xff] %vm2565_vm4, %v6864_v15  ;;  %v3502_v15 = vld [vmem:[#allocation3 + $0x48] sm:$0xff] }
 0x389   :  { %v3558_v17 = vpack.c.bf16 %v3502_v15, %v3495_v14  ;;  %v3498_v14 = vld [vmem:[#allocation3 + $0x28] sm:$0xff] }
 0x38c   :  { %v3042_v3 = vpop.permute.xlu0 %3041 }
 0x38d   :  { %3060 = vst.msk [vmem:[#allocation3 + $0x1d8] sm:$0xff] %vm2510_vm3, %v3042_v3 }
 0x38e   :  { %3114 = vst.msk [vmem:[#allocation3 + $0x1d8] sm:$0xff] %vm2565_vm4, %v6881_v36 }
 0x38f   :  { %v3545_v1 = vld [vmem:[#allocation3 + $0x1a0] sm:$0xff] }
 0x390   :  { %v3080_v4 = vpop.permute.xlu0 %3079 }
 0x391   :  { %3106 = vst.msk [vmem:[#allocation3 + $0x18] sm:$0xff] %vm2565_vm4, %v3080_v4  ;;  %v3537_v4 = vld [vmem:[#allocation3 + $0x160] sm:$0xff] }
 0x394   :  { %v3264_v5 = vpop.permute.xlu0 %3263  ;;  %v3082_v6 = vpop.permute.xlu1 %3081 }
 0x395   :  { %3288 = vst.msk [vmem:[#allocation3 + $0x90] sm:$0xff] %vm2565_vm4, %v3264_v5  ;;  %3107 = vst.msk [vmem:[#allocation3 + $0x50] sm:$0xff] %vm2565_vm4, %v3082_v6  ;;  %v3552_v2 = vld [vmem:[#allocation3 + $0x1d8] sm:$0xff]  ;;  %v6099_v5 = vld [vmem:[%s8039_s3 + $0x130] sm:$0xff]   ;;  %v3579_v6 = vpack.c.bf16 %v3544_v59, %v3537_v4 }
 0x398   :  { %v3446_v7 = vpop.permute.xlu1 %3445  ;;  %v3084_v8 = vpop.permute.xlu0 %3083  ;;  %v3496_v12 = vld [vmem:[#allocation3 + $0x18] sm:$0xff] }
 0x399   :  { %3469 = vst.msk [vmem:[#allocation3 + $0xd0] sm:$0xff] %vm2565_vm4, %v3446_v7  ;;  %3108 = vst.msk [vmem:[#allocation3 + $0x88] sm:$0xff] %vm2565_vm4, %v3084_v8  ;;  %v6100_v7 = vld [vmem:[%s8039_s3 + $0x178] sm:$0xff]   ;;  %v3587_v8 = vpack.c.bf16 %v3552_v2, %v3552_v2 }
 0x39c   :  { %v3340_v9 = vpop.permute.xlu0 %3339  ;;  %v3086_v10 = vpop.permute.xlu1 %3085  ;;  %v3503_v36 = vld [vmem:[#allocation3 + $0x50] sm:$0xff] }
 0x39d   :  { %3362 = vst.msk [vmem:[#allocation3 + $0x108] sm:$0xff] %vm2455_vm2, %v3340_v9  ;;  %v3559_v13 = vpack.c.bf16 %v3503_v36, %v3496_v12  ;;  %v3551_v12 = vld [vmem:[#allocation3 + $0x1d0] sm:$0xff] }
 0x39e   :  { %3109 = vst.msk [vmem:[#allocation3 + $0xc0] sm:$0xff] %vm2565_vm4, %v3086_v10  ;;  %v6101_v10 = vld [vmem:[%s8039_s3 + $0x138] sm:$0xff]  }
 0x39f   :  { %4117 = vmatprep.mubr.bf16.mxu1 %v3559_v13  ;;  %v3511_v40 = vld [vmem:[#allocation3 + $0x90] sm:$0xff] }
 0x3a0   :  { %4118 = vmatmul.mubr.bf16.vlgmr.msra.gmra.mrb[188].mxu1 %v3558_v17  ;;  %v3266_v20 = vpop.permute.xlu1 %3265  ;;  %v3088_v21 = vpop.permute.xlu0 %3087  ;;  %v3510_v29 = vld [vmem:[#allocation3 + $0x88] sm:$0xff]  ;;  %v3586_v17 = vpack.c.bf16 %v3551_v12, %v3551_v12  ;;  %v3513_v12 = vld [vmem:[#allocation3 + $0xa0] sm:$0xff] }
 0x3a1   :  { %3289 = vst.msk [vmem:[#allocation3 + $0xc8] sm:$0xff] %vm2565_vm4, %v3266_v20  ;;  %3110 = vst.msk [vmem:[#allocation3 + $0xf8] sm:$0xff] %vm2565_vm4, %v3088_v21  ;;  %5290 = vmatpush3.bf16.msra.mxu1 %v6087_v16  ;;  %v3505_v16 = vld [vmem:[#allocation3 + $0x60] sm:$0xff] }
 0x3a2   :  { %5291 = vmatprep.subr.bf16.mxu1 %v6088_v19  ;;  %v3561_v19 = vpack.c.bf16 %v3505_v16, %v3498_v14  ;;  %v3527_v14 = vld [vmem:[#allocation3 + $0x110] sm:$0xff]  ;;  %v3534_v16 = vld [vmem:[#allocation3 + $0x148] sm:$0xff] }
 0x3a4   :  { %v3160_v26 = vpop.permute.xlu0 %3159  ;;  %v3090_v28 = vpop.permute.xlu1 %3089 }
 0x3a5   :  { %v3517_v30 = vld [vmem:[#allocation3 + $0xc0] sm:$0xff]  ;;  %3182 = vst.msk [vmem:[#allocation3 + $0x100] sm:$0xff] %vm2455_vm2, %v3160_v26  ;;  %5292 = vmatpush3.bf16.msra.mxu1 %v6089_v22 }
 0x3a6   :  { %3111 = vst.msk [vmem:[#allocation3 + $0x130] sm:$0xff] %vm2565_vm4, %v3090_v28  ;;  %v3566_v41 = vpack.c.bf16 %v3517_v30, %v3510_v29  ;;  %5293 = vmatprep.subr.bf16.mxu1 %v6090_v23  ;;  %v3497_v22 = vld [vmem:[#allocation3 + $0x20] sm:$0xff]  ;;  %v3504_v23 = vld [vmem:[#allocation3 + $0x58] sm:$0xff]  ;;  %v3519_v28 = vld [vmem:[#allocation3 + $0xd0] sm:$0xff] }
 0x3a7   :  { %v6102_v29 = vld [vmem:[%s8039_s3 + $0x180] sm:$0xff]   ;;  %v3560_v30 = vpack.c.bf16 %v3504_v23, %v3497_v22  ;;  %v3555_v22 = vld [vmem:[#allocation3 + $0x1f0] sm:$0xff] }
 0x3a8   :  { %4125 = vmatprep.mubr.bf16.mxu1 %v3566_v41  ;;  %v3394_v37 = vpop.permute.xlu0 %3393  ;;  %v3342_v27 = vpop.permute.xlu1 %3341  ;;  %v3524_v45 = vld [vmem:[#allocation3 + $0xf8] sm:$0xff]  ;;  %v3590_v23 = vpack.c.bf16 %v3555_v22, %v3555_v22 }
 0x3a9   :  { %4126 = vmatmul.mubr.bf16.gmra.mrb[192].mxu1 %v3565_v34  ;;  %3416 = vst.msk [vmem:[#allocation3 + $0x108] sm:$0xff] %vm2510_vm3, %v3394_v37  ;;  %v3512_v41 = vld [vmem:[#allocation3 + $0x98] sm:$0xff]  ;;  %v3518_v37 = vld [vmem:[#allocation3 + $0xc8] sm:$0xff] }
 0x3aa   :  { %3363 = vst.msk [vmem:[#allocation3 + $0x140] sm:$0xff] %vm2455_vm2, %v3342_v27  ;;  %5294 = vmatpush3.bf16.msra.mxu1 %v6091_v33  ;;  %v3568_v32 = vpack.c.bf16 %v3519_v28, %v3512_v41 }
 0x3ab   :  { %5295 = vmatprep.subr.bf16.mxu1 %v6092_v63  ;;  %v6103_v63 = vld [vmem:[%s8039_s3 + $0x188] sm:$0xff]  }
 0x3ac   :  { %v3162_v43 = vpop.permute.xlu1 %3161  ;;  %v3092_v44 = vpop.permute.xlu0 %3091 }
 0x3ad   :  { %v3531_v46 = vld [vmem:[#allocation3 + $0x130] sm:$0xff]  ;;  %3183 = vst.msk [vmem:[#allocation3 + $0x138] sm:$0xff] %vm2455_vm2, %v3162_v43  ;;  %v3567_v43 = vpack.c.bf16 %v3518_v37, %v3511_v40 }
 0x3ae   :  { %3112 = vst.msk [vmem:[#allocation3 + $0x168] sm:$0xff] %vm2565_vm4, %v3092_v44  ;;  %v3573_v47 = vpack.c.bf16 %v3531_v46, %v3524_v45  ;;  %5296 = vmatpush3.bf16.msra.mxu1 %v6093_v38 }
 0x3af   :  { %5297 = vmatprep.subr.bf16.mxu1 %v6094_v39 }
 0x3b0   :  { %4133 = vmatprep.mubr.bf16.mxu1 %v3573_v47  ;;  %v3396_v54 = vpop.permute.xlu1 %3395  ;;  %v3214_v55 = vpop.permute.xlu0 %3213 }
 0x3b1   :  { %4134 = vmatmul.mubr.bf16.gmra.mrb[196].mxu1 %v3572_v51  ;;  %3417 = vst.msk [vmem:[#allocation3 + $0x140] sm:$0xff] %vm2510_vm3, %v3396_v54  ;;  %3236 = vst.msk [vmem:[#allocation3 + $0x100] sm:$0xff] %vm2510_vm3, %v3214_v55 }
 0x3b2   :  { %5298 = vmatpush3.bf16.msra.mxu1 %v6095_v50 }
 0x3b3   :  { %5299 = vmatprep.subr.bf16.mxu1 %v6096_v52 }
 0x3b4   :  { %v3216_v60 = vpop.permute.xlu1 %3215  ;;  %v3448_v61 = vpop.permute.xlu0 %3447 }
 0x3b5   :  { %v3538_v62 = vld [vmem:[#allocation3 + $0x168] sm:$0xff]  ;;  %3237 = vst.msk [vmem:[#allocation3 + $0x138] sm:$0xff] %vm2510_vm3, %v3216_v60 }
 0x3b6   :  { %3470 = vst.msk [vmem:[#allocation3 + $0x108] sm:$0xff] %vm2565_vm4, %v3448_v61  ;;  %v3580_v3 = vpack.c.bf16 %v3545_v1, %v3538_v62  ;;  %5300 = vmatpush3.bf16.msra.mxu1 %v6097_v56 }
 0x3b7   :  { %5301 = vmatprep.subr.bf16.mxu1 %v6098_v58 }
 0x3b8   :  { %4141 = vmatprep.mubr.bf16.mxu1 %v3580_v3  ;;  %v3450_v15 = vpop.permute.xlu1 %3449  ;;  %v3268_v9 = vpop.permute.xlu0 %3267 }
 0x3b9   :  { %4142 = vmatmul.mubr.bf16.gmra.mrb[200].mxu1 %v3579_v6  ;;  %3471 = vst.msk [vmem:[#allocation3 + $0x140] sm:$0xff] %vm2565_vm4, %v3450_v15  ;;  %3290 = vst.msk [vmem:[#allocation3 + $0x100] sm:$0xff] %vm2565_vm4, %v3268_v9  ;;  %v3499_v15 = vld [vmem:[#allocation3 + $0x30] sm:$0xff]  ;;  %v3506_v9 = vld [vmem:[#allocation3 + $0x68] sm:$0xff] }
 0x3ba   :  { %4149 = vmatprep.mubr.bf16.mxu1 %v3587_v8  ;;  %5302 = vmatpush3.bf16.msra.mxu1 %v6099_v5 }
 0x3bb   :  { %5303 = vmatprep.subr.bf16.mxu1 %v6100_v7 }
 0x3bc   :  { %v3270_v36 = vpop.permute.xlu1 %3269  ;;  %v3344_v13 = vpop.permute.xlu0 %3343 }
 0x3bd   :  { %3291 = vst.msk [vmem:[#allocation3 + $0x138] sm:$0xff] %vm2565_vm4, %v3270_v36  ;;  %v3526_v44 = vld [vmem:[#allocation3 + $0x108] sm:$0xff]  ;;  %v3520_v36 = vld [vmem:[#allocation3 + $0xd8] sm:$0xff] }
 0x3be   :  { %3364 = vst.msk [vmem:[#allocation3 + $0x178] sm:$0xff] %vm2455_vm2, %v3344_v13  ;;  %5304 = vmatpush3.bf16.msra.mxu1 %v6101_v10  ;;  %v3562_v10 = vpack.c.bf16 %v3506_v9, %v3499_v15  ;;  %v3569_v13 = vpack.c.bf16 %v3520_v36, %v3513_v12 }
 0x3bf   :  { %5864 = vmatprep.subr.bf16.mxu1 %v6148_v0 }
 0x3c0   :  { %v3346_v20 = vpop.permute.xlu1 %3345  ;;  %v3164_v21 = vpop.permute.xlu0 %3163  ;;  %v3533_v39 = vld [vmem:[#allocation3 + $0x140] sm:$0xff] }
 0x3c1   :  { %4150 = vmatmul.mubr.bf16.gmra.mrb[204].mxu1 %v3586_v17  ;;  %3365 = vst.msk [vmem:[#allocation3 + $0x1b0] sm:$0xff] %vm2455_vm2, %v3346_v20  ;;  %3184 = vst.msk [vmem:[#allocation3 + $0x170] sm:$0xff] %vm2455_vm2, %v3164_v21  ;;  %v3575_v45 = vpack.c.bf16 %v3533_v39, %v3526_v44  ;;  %v3525_v52 = vld [vmem:[#allocation3 + $0x100] sm:$0xff]  ;;  %v3576_v17 = vpack.c.bf16 %v3534_v16, %v3527_v14  ;;  %v3548_v20 = vld [vmem:[#allocation3 + $0x1b8] sm:$0xff] }
 0x3c2   :  { %4189 = vmatprep.mubr.bf16.mxu1 %v3561_v19  ;;  %v3541_v19 = vld [vmem:[#allocation3 + $0x180] sm:$0xff]  ;;  %v6108_v39 = vld [vmem:[%s8041_s5 + $0x50] sm:$0xff]  }
 0x3c3   :  { %v3583_v21 = vpack.c.bf16 %v3548_v20, %v3541_v19  ;;  %v6109_v44 = vld [vmem:[%s8041_s5 + $0x10] sm:$0xff]  }
 0x3c4   :  { %v3166_v24 = vpop.permute.xlu1 %3165  ;;  %v3398_v26 = vpop.permute.xlu0 %3397  ;;  %v3532_v49 = vld [vmem:[#allocation3 + $0x138] sm:$0xff] }
 0x3c5   :  { %3185 = vst.msk [vmem:[#allocation3 + $0x1a8] sm:$0xff] %vm2455_vm2, %v3166_v24  ;;  %v3574_v54 = vpack.c.bf16 %v3532_v49, %v3525_v52  ;;  %v7860_v24 = vld [vmem:[%s8040_s4] ss:$0 sm:$0xff] }
 0x3c6   :  { %3418 = vst.msk [vmem:[#allocation3 + $0x178] sm:$0xff] %vm2510_vm3, %v3398_v26  ;;  %v4051_v37 = vadd.f32 %v7704_v18, %v7860_v24  ;;  %v6112_v52 = vld [vmem:[%s8041_s5 + $0x60] sm:$0xff]   ;;  %v4080_v16 = vadd.f32 %v7736_v57, %v7860_v24 }
 0x3c8   :  { %v3400_v33 = vpop.permute.xlu1 %3399  ;;  %v3218_v34 = vpop.permute.xlu0 %3217 }
 0x3c9   :  { %4190 = vmatmul.mubr.bf16.vlgmr.msra.gmra.mrb[208].mxu1 %v3560_v30  ;;  %3419 = vst.msk [vmem:[#allocation3 + $0x1b0] sm:$0xff] %vm2510_vm3, %v3400_v33  ;;  %3238 = vst.msk [vmem:[#allocation3 + $0x170] sm:$0xff] %vm2510_vm3, %v3218_v34  ;;  %v4048_v30 = vadd.f32 %v7699_v11, %v7860_v24  ;;  %v6105_v33 = vld [vmem:[%s8041_s5] sm:$0xff]   ;;  %v6107_v11 = vld [vmem:[%s8041_s5 + $0x8] sm:$0xff]  }
 0x3ca   :  { %4197 = vmatprep.mubr.bf16.mxu1 %v3568_v32  ;;  %5865 = vmatpush3.bf16.msra.mxu1 %v6102_v29  ;;  %v6104_v29 = vld [vmem:[%s8041_s5 + $0x40] sm:$0xff]  }
 0x3cb   :  { %5866 = vmatprep.subr.bf16.mxu1 %v6148_v0 }
 0x3cc   :  { %v3220_v27 = vpop.permute.xlu1 %3219  ;;  %v3452_v38 = vpop.permute.xlu0 %3451 }
 0x3cd   :  { %3239 = vst.msk [vmem:[#allocation3 + $0x1a8] sm:$0xff] %vm2510_vm3, %v3220_v27 }
 0x3ce   :  { %3472 = vst.msk [vmem:[#allocation3 + $0x178] sm:$0xff] %vm2565_vm4, %v3452_v38  ;;  %5867 = vmatpush3.bf16.msra.mxu1 %v6103_v63  ;;  %v6106_v63 = vld [vmem:[%s8041_s5 + $0x48] sm:$0xff]  }
 0x3cf   :  { %5342 = vmatprep.subr.bf16.mxu1 %v6104_v29 }
 0x3d0   :  { %v3454_v46 = vpop.permute.xlu1 %3453  ;;  %v3272_v47 = vpop.permute.xlu0 %3271 }
 0x3d1   :  { %4198 = vmatmul.mubr.bf16.gmra.mrb[212].mxu1 %v3567_v43  ;;  %3473 = vst.msk [vmem:[#allocation3 + $0x1b0] sm:$0xff] %vm2565_vm4, %v3454_v46  ;;  %3292 = vst.msk [vmem:[#allocation3 + $0x170] sm:$0xff] %vm2565_vm4, %v3272_v47  ;;  %v4056_v46 = vadd.f32 %v7709_v25, %v7860_v24 }
 0x3d2   :  { %4205 = vmatprep.mubr.bf16.mxu1 %v3575_v45  ;;  %v6110_v45 = vld [vmem:[%s8041_s5 + $0x58] sm:$0xff]  }
 0x3d4   :  { %v3274_v50 = vpop.permute.xlu1 %3273  ;;  %v3348_v51 = vpop.permute.xlu0 %3347 }
 0x3d5   :  { %3293 = vst.msk [vmem:[#allocation3 + $0x1a8] sm:$0xff] %vm2565_vm4, %v3274_v50  ;;  %v3540_v58 = vld [vmem:[#allocation3 + $0x178] sm:$0xff]  ;;  %v6111_v50 = vld [vmem:[%s8041_s5 + $0x18] sm:$0xff]  }
 0x3d6   :  { %3366 = vst.msk [vmem:[#allocation3 + $0x1e8] sm:$0xff] %vm2455_vm2, %v3348_v51 }
 0x3d8   :  { %v3168_v55 = vpop.permute.xlu1 %3167  ;;  %v3402_v56 = vpop.permute.xlu0 %3401  ;;  %v3547_v59 = vld [vmem:[#allocation3 + $0x1b0] sm:$0xff] }
 0x3d9   :  { %4206 = vmatmul.mubr.bf16.gmra.mrb[216].mxu1 %v3574_v54  ;;  %3186 = vst.msk [vmem:[#allocation3 + $0x1e0] sm:$0xff] %vm2455_vm2, %v3168_v55  ;;  %v3582_v60 = vpack.c.bf16 %v3547_v59, %v3540_v58  ;;  %v3539_v1 = vld [vmem:[#allocation3 + $0x170] sm:$0xff]  ;;  %v4059_v54 = vadd.f32 %v7714_v31, %v7860_v24  ;;  %v6113_v59 = vld [vmem:[%s8041_s5 + $0x20] sm:$0xff]   ;;  %v4067_v31 = vadd.f32 %v7724_v42, %v7860_v24 }
 0x3da   :  { %3420 = vst.msk [vmem:[#allocation3 + $0x1e8] sm:$0xff] %vm2510_vm3, %v3402_v56 }
 0x3db   :  { %4213 = vmatprep.mubr.bf16.mxu1 %v3582_v60 }
 0x3dc   :  { %v3222_v61 = vpop.permute.xlu1 %3221  ;;  %v3456_v62 = vpop.permute.xlu0 %3455  ;;  %v3546_v2 = vld [vmem:[#allocation3 + $0x1a8] sm:$0xff] }
 0x3dd   :  { %3240 = vst.msk [vmem:[#allocation3 + $0x1e0] sm:$0xff] %vm2510_vm3, %v3222_v61  ;;  %v3581_v3 = vpack.c.bf16 %v3546_v2, %v3539_v1  ;;  %v4064_v61 = vadd.f32 %v7719_v35, %v7860_v24  ;;  %v4075_v35 = vadd.f32 %v7733_v53, %v7860_v24 }
 0x3de   :  { %3474 = vst.msk [vmem:[#allocation3 + $0x1e8] sm:$0xff] %vm2565_vm4, %v3456_v62 }
 0x3e0   :  { %v3276_v4 = vpop.permute.xlu1 %3275 }
 0x3e1   :  { %4214 = vmatmul.mubr.bf16.gmra.mrb[220].mxu1 %v3581_v3  ;;  %3294 = vst.msk [vmem:[#allocation3 + $0x1e0] sm:$0xff] %vm2565_vm4, %v3276_v4 }
 0x3e5   :  { %v3554_v5 = vld [vmem:[#allocation3 + $0x1e8] sm:$0xff] }
 0x3e6   :  { %v3589_v6 = vpack.c.bf16 %v3554_v5, %v3554_v5 }
 0x3e8   :  { %4221 = vmatprep.mubr.bf16.mxu1 %v3589_v6  ;;  %v3553_v7 = vld [vmem:[#allocation3 + $0x1e0] sm:$0xff] }
 0x3e9   :  { %v3588_v8 = vpack.c.bf16 %v3553_v7, %v3553_v7 }
 0x3eb   :  { %4222 = vmatmul.mubr.bf16.gmra.mrb[224].mxu1 %v3588_v8  ;;  %v4072_v8 = vadd.f32 %v7729_v48, %v7860_v24 }
 0x3ec   :  { %5868 = vmatprep.mubr.msk.bf16.mxu1 %vm6149_vm0, %v6148_v0 }
 0x3f3   :  { %5869 = vmatmul.mubr.msk.bf16.vlgmr.msra.gmra.mrb[228].mxu1 %vm2166_vm1, %v3562_v10 }
 0x3f4   :  { %5872 = vmatprep.mubr.msk.bf16.mxu1 %vm6149_vm0, %v6148_v0  ;;  %5343 = vmatpush3.bf16.msra.mxu1 %v6105_v33 }
 0x3f5   :  { %5344 = vmatprep.subr.bf16.mxu1 %v6106_v63 }
 0x3f8   :  { %5345 = vmatpush3.bf16.msra.mxu1 %v6107_v11 }
 0x3f9   :  { %5346 = vmatprep.subr.bf16.mxu1 %v6108_v39 }
 0x3fb   :  { %5873 = vmatmul.mubr.msk.bf16.gmra.mrb[232].mxu1 %vm2166_vm1, %v3569_v13 }
 0x3fc   :  { %5876 = vmatprep.mubr.msk.bf16.mxu1 %vm6149_vm0, %v6148_v0  ;;  %5347 = vmatpush3.bf16.msra.mxu1 %v6109_v44 }
 0x3fd   :  { %5348 = vmatprep.subr.bf16.mxu1 %v6110_v45 }
 0x400   :  { %5349 = vmatpush3.bf16.msra.mxu1 %v6111_v50 }
 0x401   :  { %5350 = vmatprep.subr.bf16.mxu1 %v6112_v52 }
 0x403   :  { %5877 = vmatmul.mubr.msk.bf16.gmra.mrb[236].mxu1 %vm2166_vm1, %v3576_v17 }
 0x404   :  { %5880 = vmatprep.mubr.msk.bf16.mxu1 %vm6149_vm0, %v6148_v0  ;;  %5351 = vmatpush3.bf16.msra.mxu1 %v6113_v59  ;;  %v6114_v59 = vld [vmem:[%s8041_s5 + $0x68] sm:$0xff]  }
 0x405   :  { %5352 = vmatprep.subr.bf16.mxu1 %v6114_v59 }
 0x40b   :  { %5881 = vmatmul.mubr.msk.bf16.gmra.mrb[240].mxu1 %vm2166_vm1, %v3583_v21 }
 0x40c   :  { %5884 = vmatprep.mubr.msk.bf16.mxu1 %vm6149_vm0, %v6148_v0 }
 0x413   :  { %5885 = vmatmul.mubr.msk.bf16.gmra.mrb[244].mxu1 %vm2166_vm1, %v3590_v23 }
 0x473   :  { %v5259_v26 = vpop.f32.mrb[188].mxu1 }
 0x474   :  { %v5260_v28 = vpop.f32.mrb[189].mxu1 }
 0x475   :  { %v5261_v41 = vadd.f32 %v5260_v28, %v5259_v26  ;;  %v5262_v32 = vpop.f32.mrb[190].mxu1 }
 0x476   :  { %v5263_v34 = vpop.f32.mrb[191].mxu1 }
 0x477   :  { %v4120_v27 = vadd.f32 %v5261_v41, %v4048_v30  ;;  %v5264_v38 = vadd.f32 %v5263_v34, %v5262_v32 }
 0x479   :  { %v4123_v40 = vadd.f32 %v5264_v38, %v4051_v37 }
 0x47c   :  { %v5265_v43 = vpop.f32.mrb[192].mxu1 }
 0x47d   :  { %v5266_v18 = vpop.f32.mrb[193].mxu1 }
 0x47e   :  { %v5267_v47 = vadd.f32 %v5266_v18, %v5265_v43  ;;  %v5268_v49 = vpop.f32.mrb[194].mxu1 }
 0x47f   :  { %v5269_v51 = vpop.f32.mrb[195].mxu1 }
 0x480   :  { %v4128_v55 = vadd.f32 %v5267_v47, %v4056_v46  ;;  %v5270_v56 = vadd.f32 %v5269_v51, %v5268_v49 }
 0x482   :  { %v4131_v58 = vadd.f32 %v5270_v56, %v4059_v54 }
 0x484   :  { %v5271_v25 = vpop.f32.mrb[196].mxu1 }
 0x485   :  { %v5272_v60 = vpop.f32.mrb[197].mxu1 }
 0x486   :  { %v5273_v62 = vadd.f32 %v5272_v60, %v5271_v25  ;;  %v5274_v1 = vpop.f32.mrb[198].mxu1  ;;  %v6115_v60 = vld [vmem:[%s8041_s5 + $0x28] sm:$0xff]  }
 0x487   :  { %v5275_v2 = vpop.f32.mrb[199].mxu1  ;;  %5353 = vmatpush3.bf16.msra.mxu1 %v6115_v60 }
 0x488   :  { %v4136_v3 = vadd.f32 %v5273_v62, %v4064_v61  ;;  %v5276_v4 = vadd.f32 %v5275_v2, %v5274_v1 }
 0x48a   :  { %v4139_v5 = vadd.f32 %v5276_v4, %v4067_v31  ;;  %v6116_v4 = vld [vmem:[%s8041_s5 + $0x70] sm:$0xff]  }
 0x48b   :  { %5354 = vmatprep.subr.bf16.mxu1 %v6116_v4  ;;  %v6135_v4 = vld [vmem:[%s8041_s5 + $0xb8] sm:$0xff]  }
 0x48c   :  { %v5277_v6 = vpop.f32.mrb[200].mxu1 }
 0x48d   :  { %v5278_v7 = vpop.f32.mrb[201].mxu1 }
 0x48e   :  { %v5279_v15 = vadd.f32 %v5278_v7, %v5277_v6  ;;  %v5280_v9 = vpop.f32.mrb[202].mxu1  ;;  %v6118_v6 = vld [vmem:[%s8041_s5 + $0x78] sm:$0xff]  }
 0x48f   :  { %v5281_v10 = vpop.f32.mrb[203].mxu1 }
 0x490   :  { %v4144_v12 = vadd.f32 %v5279_v15, %v4072_v8  ;;  %v5282_v36 = vadd.f32 %v5281_v10, %v5280_v9  ;;  %v6119_v10 = vld [vmem:[%s8041_s5 + $0x38] sm:$0xff]  }
 0x492   :  { %v4147_v13 = vadd.f32 %v5282_v36, %v4075_v35 }
 0x494   :  { %v5283_v14 = vpop.f32.mrb[204].mxu1 }
 0x495   :  { %v5284_v42 = vpop.f32.mrb[205].mxu1 }
 0x496   :  { %v5285_v17 = vadd.f32 %v5284_v42, %v5283_v14  ;;  %v5286_v19 = vpop.f32.mrb[206].mxu1 }
 0x497   :  { %v5287_v20 = vpop.f32.mrb[207].mxu1 }
 0x498   :  { %v4152_v21 = vadd.f32 %v5285_v17, %v4080_v16  ;;  %v6120_v17 = vld [vmem:[%s8041_s5 + $0xc0] sm:$0xff]  }
 0x49c   :  { %v5305_v22 = vpop.f32.mrb[208].mxu1 }
 0x49d   :  { %v5306_v48 = vpop.f32.mrb[209].mxu1 }
 0x49e   :  { %v5307_v23 = vadd.f32 %v5306_v48, %v5305_v22  ;;  %v5308_v26 = vpop.f32.mrb[210].mxu1 }
 0x49f   :  { %v5309_v28 = vpop.f32.mrb[211].mxu1 }
 0x4a0   :  { %v5310_v29 = vadd.f32 %v5309_v28, %v5308_v26  ;;  %v4192_v30 = vadd.f32 %v5307_v23, %v4120_v27 }
 0x4a2   :  { %v4195_v53 = vadd.f32 %v5310_v29, %v4123_v40 }
 0x4a4   :  { %v5311_v41 = vpop.f32.mrb[212].mxu1 }
 0x4a5   :  { %v5312_v32 = vpop.f32.mrb[213].mxu1 }
 0x4a6   :  { %v5313_v33 = vadd.f32 %v5312_v32, %v5311_v41  ;;  %v5314_v34 = vpop.f32.mrb[214].mxu1 }
 0x4a7   :  { %v5315_v63 = vpop.f32.mrb[215].mxu1 }
 0x4a8   :  { %v5316_v37 = vadd.f32 %v5315_v63, %v5314_v34  ;;  %v4200_v38 = vadd.f32 %v5313_v33, %v4128_v55 }
 0x4aa   :  { %v4203_v57 = vadd.f32 %v5316_v37, %v4131_v58 }
 0x4ac   :  { %v5317_v24 = vpop.f32.mrb[216].mxu1 }
 0x4ad   :  { %v5318_v11 = vpop.f32.mrb[217].mxu1 }
 0x4ae   :  { %v5319_v39 = vadd.f32 %v5318_v11, %v5317_v24  ;;  %v5320_v43 = vpop.f32.mrb[218].mxu1 }
 0x4af   :  { %v5321_v44 = vpop.f32.mrb[219].mxu1 }
 0x4b0   :  { %v5322_v18 = vadd.f32 %v5321_v44, %v5320_v43  ;;  %v4208_v45 = vadd.f32 %v5319_v39, %v4136_v3 }
 0x4b2   :  { %v4211_v46 = vadd.f32 %v5322_v18, %v4139_v5  ;;  %v6117_v5 = vld [vmem:[%s8041_s5 + $0x30] sm:$0xff]  }
 0x4b3   :  { %5355 = vmatpush3.bf16.msra.mxu1 %v6117_v5 }
 0x4b4   :  { %v5323_v47 = vpop.f32.mrb[220].mxu1  ;;  %5356 = vmatprep.subr.bf16.mxu1 %v6118_v6  ;;  %v6136_v6 = vld [vmem:[%s8041_s5 + $0x100] sm:$0xff]  }
 0x4b5   :  { %v5324_v49 = vpop.f32.mrb[221].mxu1 }
 0x4b6   :  { %v5325_v27 = vadd.f32 %v5324_v49, %v5323_v47  ;;  %v5326_v40 = vpop.f32.mrb[222].mxu1 }
 0x4b7   :  { %v5327_v50 = vpop.f32.mrb[223].mxu1  ;;  %5357 = vmatpush3.bf16.msra.mxu1 %v6119_v10 }
 0x4b8   :  { %v5328_v51 = vadd.f32 %v5327_v50, %v5326_v40  ;;  %v4216_v52 = vadd.f32 %v5325_v27, %v4144_v12  ;;  %5364 = vmatprep.subr.bf16.mxu1 %v6120_v17  ;;  %v6121_v27 = vld [vmem:[%s8041_s5 + $0x80] sm:$0xff]   ;;  %v6122_v50 = vld [vmem:[%s8041_s5 + $0xc8] sm:$0xff]  }
 0x4ba   :  { %v4219_v54 = vadd.f32 %v5328_v51, %v4147_v13  ;;  %v6123_v51 = vld [vmem:[%s8041_s5 + $0x88] sm:$0xff]  }
 0x4be   :  { %v5329_v56 = vpop.f32.mrb[224].mxu1 }
 0x4bf   :  { %v5330_v25 = vpop.f32.mrb[225].mxu1 }
 0x4c0   :  { %v5331_v55 = vadd.f32 %v5330_v25, %v5329_v56  ;;  %v5332_v58 = vpop.f32.mrb[226].mxu1  ;;  %v6125_v56 = vld [vmem:[%s8041_s5 + $0x90] sm:$0xff]   ;;  %v6126_v25 = vld [vmem:[%s8041_s5 + $0xd8] sm:$0xff]  }
 0x4c1   :  { %v5333_v61 = vpop.f32.mrb[227].mxu1  ;;  %v6128_v58 = vld [vmem:[%s8041_s5 + $0xe0] sm:$0xff]  }
 0x4c2   :  { %v4224_v62 = vadd.f32 %v5331_v55, %v4152_v21  ;;  %v6127_v55 = vld [vmem:[%s8041_s5 + $0x98] sm:$0xff]   ;;  %v6129_v61 = vld [vmem:[%s8041_s5 + $0xa0] sm:$0xff]  }
 0x4c6   :  { %v4263_v1 = vpop.f32.mrb[228].mxu1 }
 0x4c7   :  { %v4264_v2 = vadd.f32 %v4263_v1, %v4192_v30  ;;  %v5870_v31 = vpop.f32.mrb[229].mxu1  ;;  %v6131_v1 = vld [vmem:[%s8041_s5 + $0xa8] sm:$0xff]  }
 0x4c8   :  { %v4266_v3 = vpop.f32.mrb[230].mxu1  ;;  %v6133_v31 = vld [vmem:[%s8041_s5 + $0xb0] sm:$0xff]  }
 0x4c9   :  { %v4301_v7 = vmax.f32 %v4264_v2, 0.0  ;;  %v4267_v8 = vadd.f32 %v4266_v3, %v4195_v53  ;;  %v5871_v15 = vpop.f32.mrb[231].mxu1  ;;  %v6132_v2 = vld [vmem:[%s8041_s5 + $0xf0] sm:$0xff]   ;;  %v6134_v3 = vld [vmem:[%s8041_s5 + $0xf8] sm:$0xff]  }
 0x4ca   :  { %v6138_v15 = vld [vmem:[%s8041_s5 + $0x110] sm:$0xff]  }
 0x4cb   :  { %4311 = vst.msk [vmem:[#allocation4] sm:$0xff] %vm4310_vm5, %v4301_v7  ;;  %v4302_v9 = vmax.f32 %v4267_v8, 0.0  ;;  %v6137_v8 = vld [vmem:[%s8041_s5 + $0x108] sm:$0xff]  }
 0x4cd   :  { %4313 = vrot.lane.b32.xlu1 %v4302_v9, %s6152_s20  ;;  %v6139_v9 = vld [vmem:[%s8041_s5 + $0x118] sm:$0xff]  }
 0x4ce   :  { %v4271_v35 = vpop.f32.mrb[232].mxu1 }
 0x4cf   :  { %v4272_v12 = vadd.f32 %v4271_v35, %v4200_v38  ;;  %v5874_v36 = vpop.f32.mrb[233].mxu1 }
 0x4d0   :  { %v4274_v13 = vpop.f32.mrb[234].mxu1  ;;  %v6141_v36 = vld [vmem:[%s8042_s7 + $0x8] sm:$0xff]  }
 0x4d1   :  { %v4303_v14 = vmax.f32 %v4272_v12, 0.0  ;;  %v4275_v42 = vadd.f32 %v4274_v13, %v4203_v57  ;;  %v5875_v16 = vpop.f32.mrb[235].mxu1  ;;  %v6140_v12 = vld [vmem:[%s8042_s7] sm:$0xff]   ;;  %v6142_v13 = vld [vmem:[%s8042_s7 + $0x10] sm:$0xff]  }
 0x4d3   :  { %4318 = vst.msk [vmem:[#allocation4 + $0x8] sm:$0xff] %vm4310_vm5, %v4303_v14  ;;  %v4304_v19 = vmax.f32 %v4275_v42, 0.0  ;;  %v6143_v14 = vld [vmem:[%s8042_s7 + $0x18] sm:$0xff]  }
 0x4d5   :  { %4320 = vrot.lane.b32.xlu0 %v4304_v19, %s6152_s20 }
 0x4d6   :  { %v4279_v20 = vpop.f32.mrb[236].mxu1 }
 0x4d7   :  { %v4280_v21 = vadd.f32 %v4279_v20, %v4208_v45  ;;  %v5878_v22 = vpop.f32.mrb[237].mxu1 }
 0x4d8   :  { %v4282_v48 = vpop.f32.mrb[238].mxu1 }
 0x4d9   :  { %v4305_v23 = vmax.f32 %v4280_v21, 0.0  ;;  %v4283_v26 = vadd.f32 %v4282_v48, %v4211_v46  ;;  %v5879_v28 = vpop.f32.mrb[239].mxu1  ;;  %v5032_v21 = vld [vmem:[%s8043_s6] ss:$0 sm:$0xff] }
 0x4db   :  { %4324 = vst.msk [vmem:[#allocation4 + $0x10] sm:$0xff] %vm4310_vm5, %v4305_v23  ;;  %v4306_v29 = vmax.f32 %v4283_v26, 0.0 }
 0x4dd   :  { %4326 = vrot.lane.b32.xlu1 %v4306_v29, %s6152_s20 }
 0x4de   :  { %v4287_v30 = vpop.f32.mrb[240].mxu1 }
 0x4df   :  { %v4288_v53 = vadd.f32 %v4287_v30, %v4216_v52  ;;  %v5882_v41 = vpop.f32.mrb[241].mxu1  ;;  %v6124_v52 = vld [vmem:[%s8041_s5 + $0xd0] sm:$0xff]  }
 0x4e0   :  { %v4290_v32 = vpop.f32.mrb[242].mxu1 }
 0x4e1   :  { %v4307_v33 = vmax.f32 %v4288_v53, 0.0  ;;  %v4291_v34 = vadd.f32 %v4290_v32, %v4219_v54  ;;  %v5883_v63 = vpop.f32.mrb[243].mxu1 }
 0x4e3   :  { %4330 = vst.msk [vmem:[#allocation4 + $0x18] sm:$0xff] %vm4310_vm5, %v4307_v33  ;;  %v4308_v37 = vmax.f32 %v4291_v34, 0.0 }
 0x4e5   :  { %4332 = vrot.lane.b32.xlu0 %v4308_v37, %s6152_s20  ;;  %v5070_v37 = vld [vmem:[%s8044_s8] ss:$0 sm:$0xff] }
 0x4e6   :  { %v4295_v38 = vpop.f32.mrb[244].mxu1 }
 0x4e7   :  { %v4296_v57 = vadd.f32 %v4295_v38, %v4224_v62  ;;  %v5886_v24 = vpop.f32.mrb[245].mxu1  ;;  %v6130_v62 = vld [vmem:[%s8041_s5 + $0xe8] sm:$0xff]  }
 0x4e8   :  { %v4298_v11 = vpop.f32.mrb[246].mxu1 }
 0x4e9   :  { %v4309_v39 = vmax.f32 %v4296_v57, 0.0  ;;  %v5887_v43 = vpop.f32.mrb[247].mxu1 }
 0x4eb   :  { %4336 = vst.msk [vmem:[#allocation4 + $0x20] sm:$0xff] %vm4310_vm5, %v4309_v39 }
 0x4f2   :  { %v4341_v10 = vld [vmem:[#allocation4 + $0x20] sm:$0xff] }
 0x4f3   :  { %v4346_v35 = vpack.c.bf16 %v4341_v10, %v4341_v10 }
 0x53f   :  { %v4314_v44 = vpop.permute.xlu1 %4313 }
 0x540   :  { %4317 = vst.msk [vmem:[#allocation4] sm:$0xff] %vm4316_vm6, %v4314_v44 }
 0x547   :  { %v4321_v18 = vpop.permute.xlu0 %4320  ;;  %v4337_v45 = vld [vmem:[#allocation4] sm:$0xff] }
 0x548   :  { %4323 = vst.msk [vmem:[#allocation4 + $0x8] sm:$0xff] %vm4316_vm6, %v4321_v18  ;;  %v4342_v40 = vpack.c.bf16 %v4337_v45, %v4337_v45 }
 0x54f   :  { %v4327_v46 = vpop.permute.xlu1 %4326  ;;  %v4338_v47 = vld [vmem:[#allocation4 + $0x8] sm:$0xff] }
 0x550   :  { %4329 = vst.msk [vmem:[#allocation4 + $0x10] sm:$0xff] %vm4316_vm6, %v4327_v46  ;;  %v4343_v49 = vpack.c.bf16 %v4338_v47, %v4338_v47 }
 0x552   :  { %4677 = vmatprep.mubr.bf16.mxu1 %v4343_v49 }
 0x553   :  { %4678 = vmatmul.mubr.bf16.vlgmr.msra.gmra.mrb[248].mxu1 %v4342_v40 }
 0x554   :  { %5365 = vmatpush3.bf16.msra.mxu1 %v6121_v27 }
 0x555   :  { %5366 = vmatprep.subr.bf16.mxu1 %v6122_v50 }
 0x557   :  { %v4333_v54 = vpop.permute.xlu0 %4332  ;;  %v4339_v5 = vld [vmem:[#allocation4 + $0x10] sm:$0xff] }
 0x558   :  { %5367 = vmatpush3.bf16.msra.mxu1 %v6123_v51  ;;  %4335 = vst.msk [vmem:[#allocation4 + $0x18] sm:$0xff] %vm4316_vm6, %v4333_v54  ;;  %v4344_v7 = vpack.c.bf16 %v4339_v5, %v4339_v5 }
 0x559   :  { %5368 = vmatprep.subr.bf16.mxu1 %v6124_v52 }
 0x55c   :  { %5369 = vmatpush3.bf16.msra.mxu1 %v6125_v56 }
 0x55d   :  { %5370 = vmatprep.subr.bf16.mxu1 %v6126_v25 }
 0x55f   :  { %v4340_v59 = vld [vmem:[#allocation4 + $0x18] sm:$0xff] }
 0x560   :  { %5371 = vmatpush3.bf16.msra.mxu1 %v6127_v55  ;;  %v4345_v60 = vpack.c.bf16 %v4340_v59, %v4340_v59 }
 0x561   :  { %5372 = vmatprep.subr.bf16.mxu1 %v6128_v58 }
 0x562   :  { %4717 = vmatprep.mubr.bf16.mxu1 %v4345_v60 }
 0x564   :  { %5373 = vmatpush3.bf16.msra.mxu1 %v6129_v61 }
 0x565   :  { %5374 = vmatprep.subr.bf16.mxu1 %v6130_v62 }
 0x568   :  { %5375 = vmatpush3.bf16.msra.mxu1 %v6131_v1 }
 0x569   :  { %5376 = vmatprep.subr.bf16.mxu1 %v6132_v2 }
 0x56c   :  { %5377 = vmatpush3.bf16.msra.mxu1 %v6133_v31 }
 0x56d   :  { %5378 = vmatprep.subr.bf16.mxu1 %v6134_v3 }
 0x570   :  { %5379 = vmatpush3.bf16.msra.mxu1 %v6135_v4 }
 0x571   :  { %5888 = vmatprep.subr.bf16.mxu1 %v6148_v0 }
 0x573   :  { %4718 = vmatmul.mubr.bf16.vlgmr.msra.gmra.mrb[252].mxu1 %v4344_v7 }
 0x574   :  { %5889 = vmatpush3.bf16.msra.mxu1 %v6136_v6  ;;  %5896 = vmatprep.mubr.msk.bf16.mxu1 %vm6149_vm0, %v6148_v0 }
 0x575   :  { %5890 = vmatprep.subr.bf16.mxu1 %v6148_v0 }
 0x578   :  { %5891 = vmatpush3.bf16.msra.mxu1 %v6137_v8 }
 0x579   :  { %5892 = vmatprep.subr.bf16.mxu1 %v6148_v0 }
 0x57c   :  { %5893 = vmatpush3.bf16.msra.mxu1 %v6138_v15 }
 0x57d   :  { %5894 = vmatprep.subr.bf16.mxu1 %v6148_v0 }
 0x580   :  { %5895 = vmatpush3.bf16.msra.mxu1 %v6139_v9 }
 0x581   :  { %5900 = vmatprep.subr.bf16.mxu1 %v6148_v0 }
 0x583   :  { %5897 = vmatmul.mubr.msk.bf16.vlgmr.msra.gmra.mrb[0].mxu1 %vm4310_vm5, %v4346_v35 }
 0x584   :  { %5908 = vmatprep.mubr.msk.bf16.mxu1 %vm6149_vm0, %v6148_v0  ;;  %5901 = vmatpush3.bf16.msra.mxu1 %v6140_v12 }
 0x585   :  { %5902 = vmatprep.subr.bf16.mxu1 %v6148_v0 }
 0x588   :  { %5903 = vmatpush3.bf16.msra.mxu1 %v6141_v36 }
 0x589   :  { %5904 = vmatprep.subr.bf16.mxu1 %v6148_v0 }
 0x58c   :  { %5905 = vmatpush3.bf16.msra.mxu1 %v6142_v13 }
 0x58d   :  { %5906 = vmatprep.subr.bf16.mxu1 %v6148_v0 }
 0x590   :  { %5907 = vmatpush3.bf16.msra.mxu1 %v6143_v14 }
 0x626   :  { %v5358_v42 = vpop.f32.mrb[248].mxu1 }
 0x627   :  { %v5359_v16 = vpop.f32.mrb[249].mxu1 }
 0x628   :  { %v5360_v17 = vadd.f32 %v5359_v16, %v5358_v42  ;;  %v5361_v19 = vpop.f32.mrb[250].mxu1 }
 0x629   :  { %v5362_v20 = vpop.f32.mrb[251].mxu1 }
 0x62a   :  { %v4680_v23 = vadd.f32 %v5360_v17, %v5032_v21 }
 0x646   :  { %v5380_v22 = vpop.f32.mrb[252].mxu1 }
 0x647   :  { %v5381_v48 = vpop.f32.mrb[253].mxu1 }
 0x648   :  { %v5382_v26 = vadd.f32 %v5381_v48, %v5380_v22  ;;  %v5383_v28 = vpop.f32.mrb[254].mxu1 }
 0x649   :  { %v5384_v0 = vpop.f32.mrb[255].mxu1 }
 0x64a   :  { %v4720_v29 = vadd.f32 %v5382_v26, %v4680_v23 }
 0x656   :  { %v4759_v30 = vpop.f32.mrb[0].mxu1 }
 0x657   :  { %v4760_v53 = vadd.f32 %v4759_v30, %v4720_v29  ;;  %v5898_v41 = vpop.f32.mrb[1].mxu1 }
 0x658   :  { %v4762_v32 = vpop.f32.mrb[2].mxu1 }
 0x659   :  { %v4765_v33 = vmax.f32 %v4760_v53, 0.0  ;;  %v5899_v34 = vpop.f32.mrb[3].mxu1 }
 0x65b   :  { %v4766_v63 = vpack.c.bf16 %v4765_v33, %v4765_v33 }
 0x65d   :  { %5909 = vmatmul.mubr.msk.bf16.vlgmr.msra.gmra.mrb[4].mxu1 %vm4310_vm5, %v4766_v63 }
 0x730   :  { %v4843_v38 = vpop.f32.mrb[4].mxu1 }
 0x731   :  { %v4844_v57 = vadd.f32 %v5070_v37, %v4843_v38  ;;  %v5910_v24 = vpop.f32.mrb[5].mxu1 }
 0x732   :  { %v4846_v11 = vpop.f32.mrb[6].mxu1 }
 0x733   :  { %4849 = vst [vmem:[%s8045_s9] sm:$0xff] %v4844_v57  ;;  %v5911_v39 = vpop.f32.mrb[7].mxu1 }

</bundles_post_ra>
